<compile_context>
chip_gen: v7x
topology: tpu7x:2x2x1
jax: 0.10.0
libtpu: 0.0.40
codegen_flags: <defaults>
</compile_context>

<pallas_src>
import jax
import jax.numpy as jnp
import numpy as np
from jax.experimental import pallas as pl
from jax.experimental.pallas import tpu as pltpu

# ----------------------------- dimensions ----------------------------------
B = 2                    # frames / packed batch
C = 3                    # image channels
H_IN, W_IN = 32, 32      # raw camera resolution
H_OUT, W_OUT = 16, 16    # INPUT_IMAGE_SIZE
ROUTE_DIM = 10
ROUTE_FEAT = 16
ACT_DIM = 6
HIST_DIM = 32
SAMP_DIM = 16
IMG_FEAT = 32
POLY_DIM = 64            # action_policy.poly_state_dim
GOAL_DIM = 2             # cos/sin of goal heading
ACTOR_HID = 64
IMG_ROWS = C * H_OUT * W_OUT   # 768

FP = jnp.float32
WP = jnp.bfloat16        # weight storage dtype

# ----------------- packed weight-slab layout (rows, 128 lanes, bf16) --------
# W2   : history + route fused.  rows: [hist 32 | speed 1 | act 6 | pad 1 |
#        img_feat 32 | route 10 | pad 6]; cols: [hist 0:32 | route_feat 32:48]
# W3   : rows [samp 16 | hist 32]; cols 0:16
# W46  : rows [hist 32 | samp 16 | route_feat 16]; cols [poly 0:64 | act 64:70]
# W7   : rows [poly 64 | cos 1 | sin 1 | pad 6]; cols 0:64
# W8   : rows [actor_hid 64]; cols 0:6
# BIAS : 8 rows: b_img | (b_h|b_r) | b_s | (b_f|b_a) | b_p1 | b_p2 | unused x2
# WIMG : (768, 32) image encoder weight on 2x2-mean-pooled image
W2_OFF = 0
W3_OFF = 88
W46_OFF = 136
W7_OFF = 200
W8_OFF = 272
BIAS_OFF = 336
WIMG_OFF = 344
SLAB_ROWS = WIMG_OFF + IMG_ROWS          # 1112

# ------------- small-input packing layout (B, 128), lane-dense --------------
#  0:32  history_input | 32:33 speed | 33:39 action | 39:40 pad
# 40:56  sample_input  | 56:57 goal  | 57:64 pad
# 64:74  route         | 74:128 pad


def _bilinear_matrix(out_size: int, in_size: int) -> np.ndarray:
    """PyTorch F.interpolate(mode='bilinear', align_corners=False) as a matrix."""
    scale = in_size / out_size
    m = np.zeros((out_size, in_size), dtype=np.float64)
    for o in range(out_size):
        src = (o + 0.5) * scale - 0.5
        src = min(max(src, 0.0), in_size - 1)
        i0 = int(np.floor(src))
        i1 = min(i0 + 1, in_size - 1)
        w = src - i0
        m[o, i0] += 1.0 - w
        m[o, i1] += w
    return m


# -------------------- fully fused policy kernel (Pallas) --------------------
def _policy_kernel(img_ref, small_ref, wslab_ref, out_ref):
    w = wslab_ref
    # bf16 x bf16 matmul, f32 accumulation.
    dot = lambda a, b: jnp.dot(a.astype(WP), b, preferred_element_type=jnp.float32)
    bias = w[BIAS_OFF:BIAS_OFF + 8, :].astype(jnp.float32)                         # (8, 128)
    small = small_ref[...]                                                         # (B, 128)

    # --- image encoder on 2x2-mean-pooled image (resize done in the wrapper) ----
    img_feat = jnp.tanh(
        dot(img_ref[...], w[WIMG_OFF:WIMG_OFF + IMG_ROWS, :]) + bias[0:1, :]
    )[:, 0:IMG_FEAT]                                                               # (B, 32)

    # --- history + route encoder fused into ONE matmul --------------------------
    # x2 cols: [hist 0:32 | speed 32:33 | act 33:39 | pad 39:40 | img_feat 40:72 | route 72:88]
    x2 = jnp.concatenate([small[:, 0:40], img_feat, small[:, 64:80]], axis=1)      # (B, 88)
    z2 = dot(x2, w[W2_OFF:W2_OFF + 88, :]) + bias[1:2, :]                          # (B, 128)
    history = jnp.tanh(z2[:, 0:HIST_DIM])                                          # (B, 32)
    route_feat = jnp.maximum(z2[:, 32:32 + ROUTE_FEAT], 0.0)                       # (B, 16)

    # --- sample ------------------------------------------------------------------
    x3 = jnp.concatenate([small[:, 40:56], history], axis=1)                       # (B, 48)
    sample = jnp.tanh(dot(x3, w[W3_OFF:W3_OFF + 48, :]) + bias[2:3, :])[:, 0:SAMP_DIM]

    # --- fused base_action + policy_state_fusion ----------------------------------
    x46 = jnp.concatenate([history, sample, route_feat], axis=1)                   # (B, 64)
    z46 = dot(x46, w[W46_OFF:W46_OFF + 64, :]) + bias[3:4, :]                      # (B, 128)
    base_policy_state = jnp.maximum(z46[:, 0:POLY_DIM], 0.0)                       # (B, 64)
    base_action = z46[:, POLY_DIM:POLY_DIM + ACT_DIM]                              # (B, 6)

    # --- residual_policy.act_inference: goal cos/sin folded as input columns ------
    g = small[:, 56:57]
    x7 = jnp.concatenate(
        [base_policy_state, jnp.cos(g), jnp.sin(g), jnp.zeros((B, 6), jnp.float32)],
        axis=1)                                                                    # (B, 72)
    h1 = jnp.tanh(dot(x7, w[W7_OFF:W7_OFF + 72, :]) + bias[4:5, :])[:, 0:ACTOR_HID]
    resid = dot(h1, w[W8_OFF:W8_OFF + 64, :]) + bias[5:6, :]                       # (B, 128)

    final_action = base_action + resid[:, 0:ACT_DIM]                               # (B, 6)

    # --- single lane-dense packed output: [act 0:6 | pad | hist 32:64 | samp 64:80 | pad]
    out_ref[...] = jnp.concatenate(
        [final_action, jnp.zeros((B, 32 - ACT_DIM), jnp.float32),
         history, sample, jnp.zeros((B, 48), jnp.float32)], axis=1)


@jax.jit
def _forward(image, route, speed, action_input, history_input, sample_input,
             goal_heading, w_slab):
    # image: (1, B, C, 32, 32).  For 32->16 bilinear / align_corners=False the resize
    # is exactly a 2x2 mean pool -> do it here (cheap VPU work, fusible into the call).
    img = jnp.squeeze(image, axis=0)                                       # (B, C, 32, 32)
    img_pooled = img.reshape(B, C, H_OUT, 2, W_OUT, 2).mean(axis=(3, 5))   # (B, C, 16, 16)
    img_flat = img_pooled.reshape(B, IMG_ROWS)                             # (B, 768)

    zcol = lambda n: jnp.zeros((B, n), FP)
    small = jnp.concatenate([
        history_input,                               # 0:32
        speed.reshape(B, 1),                         # 32:33
        action_input.reshape(B, ACT_DIM),            # 33:39
        zcol(1),                                     # 39:40
        sample_input,                                # 40:56
        goal_heading.reshape(B, 1),                  # 56:57
        zcol(7),                                     # 57:64
        route.reshape(B, ROUTE_DIM),                 # 64:74
        zcol(128 - 74),                              # 74:128
    ], axis=1)                                       # (B, 128)

    vmem = pl.BlockSpec(memory_space=pltpu.MemorySpace.VMEM)
    out = pl.pallas_call(
        _policy_kernel,
        out_shape=jax.ShapeDtypeStruct((B, 128), FP),
        in_specs=[vmem, vmem, vmem],
        out_specs=vmem,
        compiler_params=pltpu.CompilerParams(
            # let the wrapper-side pooling / packing fuse into the call inputs
            allow_input_fusion=[True, True, False]),
    )(img_flat, small, w_slab)

    final_action = out[:, 0:ACT_DIM]
    history = out[:, 32:32 + HIST_DIM]
    sample = out[:, 64:64 + SAMP_DIM]
    return final_action, history, sample


class SpecialistPolicyInferencePallas:
    """Deterministic synthetic stand-in for SpecialistPolicyInference (single fused kernel)."""

    def __init__(self, seed: int = 42):
        keys = jax.random.split(jax.random.PRNGKey(seed), 32)
        pr = lambda k, shape: 0.1 * jax.random.normal(keys[k], shape, dtype=FP)
        p = {
            'w_img': pr(0, (IMG_ROWS, IMG_FEAT)), 'b_img': pr(1, (1, IMG_FEAT)),
            'w_hh': pr(2, (HIST_DIM, HIST_DIM)), 'w_hi': pr(3, (IMG_FEAT, HIST_DIM)),
            'w_hv': pr(4, (1, HIST_DIM)), 'w_ha': pr(5, (ACT_DIM, HIST_DIM)), 'b_h': pr(6, (1, HIST_DIM)),
            'w_ss': pr(7, (SAMP_DIM, SAMP_DIM)), 'w_sh': pr(8, (HIST_DIM, SAMP_DIM)), 'b_s': pr(9, (1, SAMP_DIM)),
            'w_ah': pr(10, (HIST_DIM, ACT_DIM)), 'w_as': pr(11, (SAMP_DIM, ACT_DIM)), 'b_a': pr(12, (1, ACT_DIM)),
            'w_r': pr(13, (ROUTE_DIM, ROUTE_FEAT)), 'b_r': pr(14, (1, ROUTE_FEAT)),
            'w_fh': pr(15, (HIST_DIM, POLY_DIM)), 'w_fs': pr(16, (SAMP_DIM, POLY_DIM)),
            'w_fr': pr(17, (ROUTE_FEAT, POLY_DIM)), 'b_f': pr(18, (1, POLY_DIM)),
            'w_p1b': pr(19, (POLY_DIM, ACTOR_HID)), 'w_p1c': pr(20, (1, ACTOR_HID)),
            'w_p1s': pr(21, (1, ACTOR_HID)), 'b_p1': pr(22, (1, ACTOR_HID)),
            'w_p2': pr(23, (ACTOR_HID, ACT_DIM)), 'b_p2': pr(24, (1, ACT_DIM)),
        }
        self.params = p
        pn = {k: np.asarray(v, np.float64) for k, v in p.items()}

        # --- pack ALL weights + biases into one 128-lane bf16 slab (one DMA) --------
        slab = np.zeros((SLAB_ROWS, 128), np.float64)

        def put(off, mat, col=0):
            r, c = mat.shape
            slab[off:off + r, col:col + c] = mat

        # W2: history (cols 0:32) + route encoder fused (cols 32:48)
        put(W2_OFF + 0,  pn['w_hh'])                    # hist rows 0:32
        put(W2_OFF + 32, pn['w_hv'])                    # speed row
        put(W2_OFF + 33, pn['w_ha'])                    # action rows
        put(W2_OFF + 40, pn['w_hi'])                    # img_feat rows 40:72
        put(W2_OFF + 72, pn['w_r'], col=32)             # route rows -> route_feat cols 32:48
        # W3: sample
        put(W3_OFF + 0,  pn['w_ss'])
        put(W3_OFF + 16, pn['w_sh'])
        # W46: policy_state_fusion (cols 0:64) + base_action head (cols 64:70)
        put(W46_OFF + 0,  np.hstack([pn['w_fh'], pn['w_ah']]))
        put(W46_OFF + 32, np.hstack([pn['w_fs'], pn['w_as']]))
        put(W46_OFF + 48, pn['w_fr'])
        # W7 / W8: residual actor
        put(W7_OFF + 0,  pn['w_p1b'])
        put(W7_OFF + 64, pn['w_p1c'])
        put(W7_OFF + 65, pn['w_p1s'])
        put(W8_OFF, pn['w_p2'])
        # biases
        put(BIAS_OFF + 0, pn['b_img'])
        put(BIAS_OFF + 1, pn['b_h'])
        put(BIAS_OFF + 1, pn['b_r'], col=32)
        put(BIAS_OFF + 2, pn['b_s'])
        put(BIAS_OFF + 3, np.hstack([pn['b_f'], pn['b_a']]))
        put(BIAS_OFF + 4, pn['b_p1'])
        put(BIAS_OFF + 5, pn['b_p2'])
        # image encoder weight (un-folded: operates on 2x2-mean-pooled image)
        put(WIMG_OFF, pn['w_img'])

        self.w_slab = jnp.asarray(slab, WP)

    def __call__(self, image, route, speed, action_input, history_input,
                 sample_input, goal_heading):
        return _forward(image, route, speed, action_input, history_input,
                        sample_input, goal_heading, self.w_slab)


# ----------------------- pure-numpy reference (float64) ---------------------
def _reference_forward(params, image, route, speed, action_input, history_input,
                       sample_input, goal_heading):
    p = {k: np.asarray(v, np.float64) for k, v in params.items()}
    rh = _bilinear_matrix(H_OUT, H_IN)
    rw = _bilinear_matrix(W_OUT, W_IN)
    img = np.asarray(image, np.float64)[0]                                   # (B, C, 32, 32)
    img_r = np.einsum('oi,bcij,pj->bcop', rh, img, rw)                       # bilinear resize
    img_flat = img_r.reshape(B, IMG_ROWS)
    img_feat = np.tanh(img_flat @ p['w_img'] + p['b_img'])
    sp = np.asarray(speed, np.float64).reshape(B, 1)
    act = np.asarray(action_input, np.float64).reshape(B, ACT_DIM)
    rt = np.asarray(route, np.float64).reshape(B, ROUTE_DIM)
    hist_in = np.asarray(history_input, np.float64)
    samp_in = np.asarray(sample_input, np.float64)
    gh = np.asarray(goal_heading, np.float64).reshape(B, 1)

    history = np.tanh(hist_in @ p['w_hh'] + img_feat @ p['w_hi'] + sp * p['w_hv']
                      + act @ p['w_ha'] + p['b_h'])
    sample = np.tanh(samp_in @ p['w_ss'] + history @ p['w_sh'] + p['b_s'])
    base_action = history @ p['w_ah'] + sample @ p['w_as'] + p['b_a']
    route_feat = np.maximum(rt @ p['w_r'] + p['b_r'], 0.0)
    bps = np.maximum(history @ p['w_fh'] + sample @ p['w_fs']
                     + route_feat @ p['w_fr'] + p['b_f'], 0.0)
    h1 = np.tanh(bps @ p['w_p1b'] + np.cos(gh) * p['w_p1c'] + np.sin(gh) * p['w_p1s'] + p['b_p1'])
    resid = h1 @ p['w_p2'] + p['b_p2']
    return base_action + resid, history, sample


# ------------------------------- main ---------------------------------------
if __name__ == "__main__":
    key = jax.random.PRNGKey(0)
    k = jax.random.split(key, 7)
    image = jax.random.normal(k[0], (1, B, C, H_IN, W_IN), dtype=FP)
    route = jax.random.normal(k[1], (B, 1, ROUTE_DIM), dtype=FP)
    speed = jax.random.normal(k[2], (B, 1, 1), dtype=FP)
    action_input = jax.random.normal(k[3], (B, 1, ACT_DIM), dtype=FP)
    history_input = jax.random.normal(k[4], (B, HIST_DIM), dtype=FP)
    sample_input = jax.random.normal(k[5], (B, SAMP_DIM), dtype=FP)
    goal_heading = jax.random.normal(k[6], (B, 1), dtype=FP)

    model = SpecialistPolicyInferencePallas(seed=42)
    final_action, history, sample = model(
        image, route, speed, action_input, history_input, sample_input, goal_heading
    )
    jax.block_until_ready((final_action, history, sample))

    assert final_action.shape == (B, ACT_DIM)
    assert history.shape == (B, HIST_DIM)
    assert sample.shape == (B, SAMP_DIM)
    assert bool(jnp.all(jnp.isfinite(final_action)))

    ref_fa, ref_h, ref_s = _reference_forward(
        model.params, image, route, speed, action_input, history_input,
        sample_input, goal_heading
    )
    np.testing.assert_allclose(np.asarray(final_action), ref_fa, rtol=5e-2, atol=5e-2)
    np.testing.assert_allclose(np.asarray(history), ref_h, rtol=5e-2, atol=5e-2)
    np.testing.assert_allclose(np.asarray(sample), ref_s, rtol=5e-2, atol=5e-2)

    print("KERNEL_OK")
</pallas_src>

<mosaic_0001>
module attributes {stable_mosaic.version = 11 : i64} {
  func.func @_policy_kernel(%arg0: memref<2x768xf32, #tpu.memory_space<vmem>>, %arg1: memref<2x128xf32, #tpu.memory_space<vmem>>, %arg2: memref<1112x128xbf16, #tpu.memory_space<vmem>>, %arg3: memref<2x128xf32, #tpu.memory_space<vmem>>) attributes {dimension_semantics = [], scalar_prefetch = 0 : i64, scratch_operands = 0 : i64, tpu.core_type = #tpu.core_type<tc>} {
    %c336 = arith.constant 336 : index
    %c0 = arith.constant 0 : index
    %0 = vector.load %arg2[%c336, %c0] : memref<1112x128xbf16, #tpu.memory_space<vmem>>, vector<8x128xbf16>
    %1 = arith.extf %0 : vector<8x128xbf16> to vector<8x128xf32>
    %c0_0 = arith.constant 0 : index
    %c0_1 = arith.constant 0 : index
    %2 = vector.load %arg1[%c0_0, %c0_1] : memref<2x128xf32, #tpu.memory_space<vmem>>, vector<2x128xf32>
    %c0_2 = arith.constant 0 : index
    %c0_3 = arith.constant 0 : index
    %3 = vector.load %arg0[%c0_2, %c0_3] : memref<2x768xf32, #tpu.memory_space<vmem>>, vector<2x768xf32>
    %c344 = arith.constant 344 : index
    %c0_4 = arith.constant 0 : index
    %4 = vector.load %arg2[%c344, %c0_4] : memref<1112x128xbf16, #tpu.memory_space<vmem>>, vector<768x128xbf16>
    %5 = arith.truncf %3 : vector<2x768xf32> to vector<2x768xbf16>
    %cst = arith.constant dense<0.000000e+00> : vector<2x128xf32>
    %6 = tpu.matmul %5, %4, %cst {dimension_numbers = #tpu.dot_dimension_numbers<[1], [0], [0], [1], [0, 0, 1, 1], [], []>} : vector<2x768xbf16>, vector<768x128xbf16>, vector<2x128xf32> -> vector<2x128xf32>
    %7 = vector.extract_strided_slice %1 {offsets = [0, 0], sizes = [1, 128], strides = [1, 1]} : vector<8x128xf32> to vector<1x128xf32>
    %8 = vector.broadcast %7 : vector<1x128xf32> to vector<2x128xf32>
    %9 = arith.addf %6, %8 : vector<2x128xf32>
    %10 = math.tanh %9 : vector<2x128xf32>
    %11 = vector.extract_strided_slice %10 {offsets = [0, 0], sizes = [2, 32], strides = [1, 1]} : vector<2x128xf32> to vector<2x32xf32>
    %12 = vector.extract_strided_slice %2 {offsets = [0, 0], sizes = [2, 40], strides = [1, 1]} : vector<2x128xf32> to vector<2x40xf32>
    %13 = vector.extract_strided_slice %2 {offsets = [0, 64], sizes = [2, 16], strides = [1, 1]} : vector<2x128xf32> to vector<2x16xf32>
    %14 = tpu.concatenate %12, %11, %13 in 1 : vector<2x40xf32>, vector<2x32xf32>, vector<2x16xf32> -> vector<2x88xf32>
    %c0_5 = arith.constant 0 : index
    %c0_6 = arith.constant 0 : index
    %15 = vector.load %arg2[%c0_5, %c0_6] : memref<1112x128xbf16, #tpu.memory_space<vmem>>, vector<88x128xbf16>
    %16 = arith.truncf %14 : vector<2x88xf32> to vector<2x88xbf16>
    %cst_7 = arith.constant dense<0.000000e+00> : vector<2x128xf32>
    %17 = tpu.matmul %16, %15, %cst_7 {dimension_numbers = #tpu.dot_dimension_numbers<[1], [0], [0], [1], [0, 0, 1, 1], [], []>} : vector<2x88xbf16>, vector<88x128xbf16>, vector<2x128xf32> -> vector<2x128xf32>
    %18 = vector.extract_strided_slice %1 {offsets = [1, 0], sizes = [1, 128], strides = [1, 1]} : vector<8x128xf32> to vector<1x128xf32>
    %19 = vector.broadcast %18 : vector<1x128xf32> to vector<2x128xf32>
    %20 = arith.addf %17, %19 : vector<2x128xf32>
    %21 = vector.extract_strided_slice %20 {offsets = [0, 0], sizes = [2, 32], strides = [1, 1]} : vector<2x128xf32> to vector<2x32xf32>
    %22 = math.tanh %21 : vector<2x32xf32>
    %23 = vector.extract_strided_slice %20 {offsets = [0, 32], sizes = [2, 16], strides = [1, 1]} : vector<2x128xf32> to vector<2x16xf32>
    %cst_8 = arith.constant 0.000000e+00 : f32
    %24 = vector.broadcast %cst_8 : f32 to vector<2x16xf32>
    %25 = arith.maximumf %23, %24 : vector<2x16xf32>
    %26 = vector.extract_strided_slice %2 {offsets = [0, 40], sizes = [2, 16], strides = [1, 1]} : vector<2x128xf32> to vector<2x16xf32>
    %27 = tpu.concatenate %26, %22 in 1 : vector<2x16xf32>, vector<2x32xf32> -> vector<2x48xf32>
    %c88 = arith.constant 88 : index
    %c0_9 = arith.constant 0 : index
    %28 = vector.load %arg2[%c88, %c0_9] : memref<1112x128xbf16, #tpu.memory_space<vmem>>, vector<48x128xbf16>
    %29 = arith.truncf %27 : vector<2x48xf32> to vector<2x48xbf16>
    %cst_10 = arith.constant dense<0.000000e+00> : vector<2x128xf32>
    %30 = tpu.matmul %29, %28, %cst_10 {dimension_numbers = #tpu.dot_dimension_numbers<[1], [0], [0], [1], [0, 0, 1, 1], [], []>} : vector<2x48xbf16>, vector<48x128xbf16>, vector<2x128xf32> -> vector<2x128xf32>
    %31 = vector.extract_strided_slice %1 {offsets = [2, 0], sizes = [1, 128], strides = [1, 1]} : vector<8x128xf32> to vector<1x128xf32>
    %32 = vector.broadcast %31 : vector<1x128xf32> to vector<2x128xf32>
    %33 = arith.addf %30, %32 : vector<2x128xf32>
    %34 = math.tanh %33 : vector<2x128xf32>
    %35 = vector.extract_strided_slice %34 {offsets = [0, 0], sizes = [2, 16], strides = [1, 1]} : vector<2x128xf32> to vector<2x16xf32>
    %36 = tpu.concatenate %22, %35, %25 in 1 : vector<2x32xf32>, vector<2x16xf32>, vector<2x16xf32> -> vector<2x64xf32>
    %c136 = arith.constant 136 : index
    %c0_11 = arith.constant 0 : index
    %37 = vector.load %arg2[%c136, %c0_11] : memref<1112x128xbf16, #tpu.memory_space<vmem>>, vector<64x128xbf16>
    %38 = arith.truncf %36 : vector<2x64xf32> to vector<2x64xbf16>
    %cst_12 = arith.constant dense<0.000000e+00> : vector<2x128xf32>
    %39 = tpu.matmul %38, %37, %cst_12 {dimension_numbers = #tpu.dot_dimension_numbers<[1], [0], [0], [1], [0, 0, 1, 1], [], []>} : vector<2x64xbf16>, vector<64x128xbf16>, vector<2x128xf32> -> vector<2x128xf32>
    %40 = vector.extract_strided_slice %1 {offsets = [3, 0], sizes = [1, 128], strides = [1, 1]} : vector<8x128xf32> to vector<1x128xf32>
    %41 = vector.broadcast %40 : vector<1x128xf32> to vector<2x128xf32>
    %42 = arith.addf %39, %41 : vector<2x128xf32>
    %43 = vector.extract_strided_slice %42 {offsets = [0, 0], sizes = [2, 64], strides = [1, 1]} : vector<2x128xf32> to vector<2x64xf32>
    %cst_13 = arith.constant 0.000000e+00 : f32
    %44 = vector.broadcast %cst_13 : f32 to vector<2x64xf32>
    %45 = arith.maximumf %43, %44 : vector<2x64xf32>
    %46 = vector.extract_strided_slice %42 {offsets = [0, 64], sizes = [2, 6], strides = [1, 1]} : vector<2x128xf32> to vector<2x6xf32>
    %47 = vector.extract_strided_slice %2 {offsets = [0, 56], sizes = [2, 1], strides = [1, 1]} : vector<2x128xf32> to vector<2x1xf32>
    %48 = math.cos %47 : vector<2x1xf32>
    %49 = math.sin %47 : vector<2x1xf32>
    %cst_14 = arith.constant 0.000000e+00 : f32
    %50 = vector.broadcast %cst_14 : f32 to vector<2x6xf32>
    %51 = tpu.concatenate %45, %48, %49, %50 in 1 : vector<2x64xf32>, vector<2x1xf32>, vector<2x1xf32>, vector<2x6xf32> -> vector<2x72xf32>
    %c200 = arith.constant 200 : index
    %c0_15 = arith.constant 0 : index
    %52 = vector.load %arg2[%c200, %c0_15] : memref<1112x128xbf16, #tpu.memory_space<vmem>>, vector<72x128xbf16>
    %53 = arith.truncf %51 : vector<2x72xf32> to vector<2x72xbf16>
    %cst_16 = arith.constant dense<0.000000e+00> : vector<2x128xf32>
    %54 = tpu.matmul %53, %52, %cst_16 {dimension_numbers = #tpu.dot_dimension_numbers<[1], [0], [0], [1], [0, 0, 1, 1], [], []>} : vector<2x72xbf16>, vector<72x128xbf16>, vector<2x128xf32> -> vector<2x128xf32>
    %55 = vector.extract_strided_slice %1 {offsets = [4, 0], sizes = [1, 128], strides = [1, 1]} : vector<8x128xf32> to vector<1x128xf32>
    %56 = vector.broadcast %55 : vector<1x128xf32> to vector<2x128xf32>
    %57 = arith.addf %54, %56 : vector<2x128xf32>
    %58 = math.tanh %57 : vector<2x128xf32>
    %59 = vector.extract_strided_slice %58 {offsets = [0, 0], sizes = [2, 64], strides = [1, 1]} : vector<2x128xf32> to vector<2x64xf32>
    %c272 = arith.constant 272 : index
    %c0_17 = arith.constant 0 : index
    %60 = vector.load %arg2[%c272, %c0_17] : memref<1112x128xbf16, #tpu.memory_space<vmem>>, vector<64x128xbf16>
    %61 = arith.truncf %59 : vector<2x64xf32> to vector<2x64xbf16>
    %cst_18 = arith.constant dense<0.000000e+00> : vector<2x128xf32>
    %62 = tpu.matmul %61, %60, %cst_18 {dimension_numbers = #tpu.dot_dimension_numbers<[1], [0], [0], [1], [0, 0, 1, 1], [], []>} : vector<2x64xbf16>, vector<64x128xbf16>, vector<2x128xf32> -> vector<2x128xf32>
    %63 = vector.extract_strided_slice %1 {offsets = [5, 0], sizes = [1, 128], strides = [1, 1]} : vector<8x128xf32> to vector<1x128xf32>
    %64 = vector.broadcast %63 : vector<1x128xf32> to vector<2x128xf32>
    %65 = arith.addf %62, %64 : vector<2x128xf32>
    %66 = vector.extract_strided_slice %65 {offsets = [0, 0], sizes = [2, 6], strides = [1, 1]} : vector<2x128xf32> to vector<2x6xf32>
    %67 = arith.addf %46, %66 : vector<2x6xf32>
    %cst_19 = arith.constant 0.000000e+00 : f32
    %68 = vector.broadcast %cst_19 : f32 to vector<2x26xf32>
    %cst_20 = arith.constant 0.000000e+00 : f32
    %69 = vector.broadcast %cst_20 : f32 to vector<2x48xf32>
    %70 = tpu.concatenate %67, %68, %22, %35, %69 in 1 : vector<2x6xf32>, vector<2x26xf32>, vector<2x32xf32>, vector<2x16xf32>, vector<2x48xf32> -> vector<2x128xf32>
    %c0_21 = arith.constant 0 : index
    %c0_22 = arith.constant 0 : index
    %71 = vector.load %arg3[%c0_21, %c0_22] : memref<2x128xf32, #tpu.memory_space<vmem>>, vector<2x128xf32>
    tpu.vector_store %arg3[%c0_21, %c0_22], %70 {strides = array<i32>} : memref<2x128xf32, #tpu.memory_space<vmem>>, vector<2x128xf32>,
    return
  }
}

</mosaic_0001>

<bundles_post_ra>
// kernel: squeeze.1
= control target key start
LH: loop header
LB: loop body
LE: loop exit
PB: predicated region body
PF: predicated region fallthrough
CT: control target
= control target key end

     0   :  { %2 = vsyncpa [#allocation1], 0  ;;  %s6509_s6 = smov [#allocation0]   ;;  %s13579_s0 = inlined_call_operand.hbm [shape: f32[1,2,3,32,32], index: 0, kind: input, shape index: {}]   ;;  %s13580_s1 = inlined_call_operand.vmem [shape: f32[2,3,16,2,16,2], index: 1, kind: output, shape index: {}]  }
   0x1   :  { %s7_s7 = sshll.u32 %s6509_s6, 4  ;;  %s6485_s10 = scalar_lea.hbm %s13579_s0, 3072  ;;  %s8_s7 = int_to_ptr.vmem [resolvable:$true] %s7_s7 }
   0x2   :  { %p6486_p0 = scmp.ne.s32.totalorder %s13579_s0, %s6485_s10  ;;  %p6489_p1 = scmp.lt.u32.totalorder %s6485_s10, %s13579_s0 }
   0x4   :  { %p6491_p2 = pnand %p6489_p1, %p6486_p0 }
   0x6   :  { %6494 = shalt.err (!%p6491_p2)
}
   0x7   :  { %s6495_s15 = scalar_lea.vmem %s8_s7, 3072  ;;  %p6500_p4 = scmp.lt.s32.totalorder %s8_s7, %s8_s7 }
   0x8   :  { %p6496_p3 = scmp.ne.s32.totalorder %s8_s7, %s6495_s15  ;;  %p6501_p5 = scmp.lt.s32.totalorder %s6495_s15, %s6495_s15 }
   0xa   :  { %p6502_p6 = por %p6501_p5, %p6500_p4 }
   0xc   :  { %p6503_p7 = pnand %p6502_p6, %p6496_p3 }
   0xe   :  { %6506 = shalt.err (!%p6503_p7)
}
   0xf   :  { %10 = dma.hbm_to_vmem [thread:$0]  %s13579_s0, 3072, %s8_s7, [#allocation1]  }
  0x10   :  { %6507 = dma.done.wait [#allocation1], 3072  }
  0x11   :  { %6508 = vsyncadd [#allocation1], 4294964224  ;;  %v6547_v0 = vld [vmem:[#allocation0 + $0x10] sm:$0xff]   ;;  %v6549_v1 = vld [vmem:[#allocation0] sm:$0xff]   ;;  %s6510_s0 = smov 126   ;;  %s6511_s18 = smov 124  }
  0x12   :  { %298 = vrot.lane.b32.xlu1 %v6547_v0, %s6510_s0  ;;  %272 = vrot.lane.b32.xlu0 %v6549_v1, %s6510_s0  ;;  %v6555_v2 = vld [vmem:[#allocation0 + $0x18] sm:$0xff]   ;;  %v6557_v3 = vld [vmem:[#allocation0 + $0x8] sm:$0xff]   ;;  %v6565_v5 = vld [vmem:[#allocation0 + $0x20] sm:$0xff]   ;;  %s6512_s19 = smov 122   ;;  %vm13_vm0 = vcmask 15360   ;;  %s6513_s2 = smov 120  }
  0x13   :  { %v6563_v4 = vld [vmem:[#allocation0 + $0x28] sm:$0xff]   ;;  %v6571_v6 = vld [vmem:[#allocation0 + $0x38] sm:$0xff]   ;;  %v6573_v7 = vld [vmem:[#allocation0 + $0x30] sm:$0xff]   ;;  %s6515_s8 = smov 116   ;;  %s6516_s25 = smov 114  }
  0x14   :  { %v6579_v8 = vld [vmem:[#allocation0 + $0x48] sm:$0xff]   ;;  %v6581_v9 = vld [vmem:[#allocation0 + $0x40] sm:$0xff]   ;;  %v6587_v10 = vld [vmem:[#allocation0 + $0x58] sm:$0xff]   ;;  %s6517_s14 = smov 112   ;;  %s6518_s3 = smov 110  }
  0x15   :  { %v6589_v11 = vld [vmem:[#allocation0 + $0x50] sm:$0xff]   ;;  %v6595_v12 = vld [vmem:[#allocation0 + $0x68] sm:$0xff]   ;;  %v6597_v13 = vld [vmem:[#allocation0 + $0x60] sm:$0xff]   ;;  %s6519_s20 = smov 108   ;;  %s6520_s9 = smov 106  }
  0x16   :  { %311 = vrot.lane.b32.xlu1 %v6555_v2, %s6510_s0  ;;  %285 = vrot.lane.b32.xlu0 %v6557_v3, %s6510_s0  ;;  %v6603_v14 = vld [vmem:[#allocation0 + $0x78] sm:$0xff]   ;;  %v6605_v15 = vld [vmem:[#allocation0 + $0x70] sm:$0xff]   ;;  %v6611_v16 = vld [vmem:[#allocation0 + $0x88] sm:$0xff]   ;;  %s6521_s26 = smov 104   ;;  %s6522_s15 = smov 102  }
  0x17   :  { %v6613_v17 = vld [vmem:[#allocation0 + $0x80] sm:$0xff]   ;;  %v6619_v18 = vld [vmem:[#allocation0 + $0x98] sm:$0xff]   ;;  %v6621_v19 = vld [vmem:[#allocation0 + $0x90] sm:$0xff]   ;;  %s6523_s4 = smov 100   ;;  %s6524_s21 = smov 98  }
  0x18   :  { %v6627_v20 = vld [vmem:[#allocation0 + $0xa8] sm:$0xff]   ;;  %v6629_v21 = vld [vmem:[#allocation0 + $0xa0] sm:$0xff]   ;;  %v6635_v22 = vld [vmem:[#allocation0 + $0xb8] sm:$0xff]  }
  0x19   :  { %v6637_v23 = vld [vmem:[#allocation0 + $0xb0] sm:$0xff]  }
  0x1a   :  { %337 = vrot.lane.b32.xlu1 %v6563_v4, %s6510_s0  ;;  %324 = vrot.lane.b32.xlu0 %v6565_v5, %s6510_s0 }
  0x1e   :  { %363 = vrot.lane.b32.xlu1 %v6571_v6, %s6510_s0  ;;  %350 = vrot.lane.b32.xlu0 %v6573_v7, %s6510_s0 }
  0x22   :  { %389 = vrot.lane.b32.xlu1 %v6579_v8, %s6510_s0  ;;  %376 = vrot.lane.b32.xlu0 %v6581_v9, %s6510_s0 }
  0x26   :  { %415 = vrot.lane.b32.xlu1 %v6587_v10, %s6510_s0  ;;  %402 = vrot.lane.b32.xlu0 %v6589_v11, %s6510_s0 }
  0x2a   :  { %441 = vrot.lane.b32.xlu1 %v6595_v12, %s6510_s0  ;;  %428 = vrot.lane.b32.xlu0 %v6597_v13, %s6510_s0 }
  0x2e   :  { %467 = vrot.lane.b32.xlu1 %v6603_v14, %s6510_s0  ;;  %454 = vrot.lane.b32.xlu0 %v6605_v15, %s6510_s0 }
  0x32   :  { %493 = vrot.lane.b32.xlu1 %v6611_v16, %s6510_s0  ;;  %480 = vrot.lane.b32.xlu0 %v6613_v17, %s6510_s0 }
  0x36   :  { %519 = vrot.lane.b32.xlu1 %v6619_v18, %s6510_s0  ;;  %506 = vrot.lane.b32.xlu0 %v6621_v19, %s6510_s0 }
  0x3a   :  { %545 = vrot.lane.b32.xlu1 %v6627_v20, %s6510_s0  ;;  %532 = vrot.lane.b32.xlu0 %v6629_v21, %s6510_s0 }
  0x3e   :  { %571 = vrot.lane.b32.xlu1 %v6635_v22, %s6510_s0  ;;  %558 = vrot.lane.b32.xlu0 %v6637_v23, %s6510_s0 }
  0x42   :  { %596 = vrot.lane.b32.xlu1 %v6557_v3, %s6511_s18  ;;  %583 = vrot.lane.b32.xlu0 %v6549_v1, %s6511_s18 }
  0x46   :  { %622 = vrot.lane.b32.xlu1 %v6555_v2, %s6511_s18  ;;  %609 = vrot.lane.b32.xlu0 %v6547_v0, %s6511_s18 }
  0x4a   :  { %648 = vrot.lane.b32.xlu1 %v6563_v4, %s6511_s18  ;;  %635 = vrot.lane.b32.xlu0 %v6565_v5, %s6511_s18 }
  0x4e   :  { %674 = vrot.lane.b32.xlu1 %v6571_v6, %s6511_s18  ;;  %661 = vrot.lane.b32.xlu0 %v6573_v7, %s6511_s18 }
  0x52   :  { %700 = vrot.lane.b32.xlu1 %v6579_v8, %s6511_s18  ;;  %687 = vrot.lane.b32.xlu0 %v6581_v9, %s6511_s18 }
  0x56   :  { %726 = vrot.lane.b32.xlu1 %v6587_v10, %s6511_s18  ;;  %713 = vrot.lane.b32.xlu0 %v6589_v11, %s6511_s18 }
  0x5a   :  { %752 = vrot.lane.b32.xlu1 %v6595_v12, %s6511_s18  ;;  %739 = vrot.lane.b32.xlu0 %v6597_v13, %s6511_s18 }
  0x5e   :  { %778 = vrot.lane.b32.xlu1 %v6603_v14, %s6511_s18  ;;  %765 = vrot.lane.b32.xlu0 %v6605_v15, %s6511_s18 }
  0x62   :  { %804 = vrot.lane.b32.xlu1 %v6611_v16, %s6511_s18  ;;  %791 = vrot.lane.b32.xlu0 %v6613_v17, %s6511_s18 }
  0x66   :  { %830 = vrot.lane.b32.xlu1 %v6619_v18, %s6511_s18  ;;  %817 = vrot.lane.b32.xlu0 %v6621_v19, %s6511_s18 }
  0x6a   :  { %856 = vrot.lane.b32.xlu1 %v6627_v20, %s6511_s18  ;;  %843 = vrot.lane.b32.xlu0 %v6629_v21, %s6511_s18 }
  0x6e   :  { %882 = vrot.lane.b32.xlu1 %v6635_v22, %s6511_s18  ;;  %869 = vrot.lane.b32.xlu0 %v6637_v23, %s6511_s18  ;;  %s6514_s18 = smov 118  }
  0x72   :  { %907 = vrot.lane.b32.xlu1 %v6557_v3, %s6512_s19  ;;  %894 = vrot.lane.b32.xlu0 %v6549_v1, %s6512_s19 }
  0x76   :  { %933 = vrot.lane.b32.xlu1 %v6555_v2, %s6512_s19  ;;  %920 = vrot.lane.b32.xlu0 %v6547_v0, %s6512_s19 }
  0x7a   :  { %959 = vrot.lane.b32.xlu1 %v6563_v4, %s6512_s19  ;;  %946 = vrot.lane.b32.xlu0 %v6565_v5, %s6512_s19 }
  0x7e   :  { %985 = vrot.lane.b32.xlu1 %v6571_v6, %s6512_s19  ;;  %972 = vrot.lane.b32.xlu0 %v6573_v7, %s6512_s19 }
  0x82   :  { %1011 = vrot.lane.b32.xlu1 %v6579_v8, %s6512_s19  ;;  %998 = vrot.lane.b32.xlu0 %v6581_v9, %s6512_s19 }
  0x84   :  { %v299_v24 = vpop.permute.xlu1 %298   ;;  %v273_v25 = vpop.permute.xlu0 %272  }
  0x85   :  { %5037 = vst.msk [vmem:[%s13580_s1 + $0x101] ss:$16 sm:$0x3] %vm13_vm0, %v299_v24   ;;  %5038 = vst.msk [vmem:[%s13580_s1 + $0x101] ss:$16 sm:$0xc] %vm13_vm0, %v299_v24  }
  0x86   :  { %5039 = vst.msk [vmem:[%s13580_s1 + $0x101] ss:$16 sm:$0x30] %vm13_vm0, %v299_v24   ;;  %5040 = vst.msk [vmem:[%s13580_s1 + $0x101] ss:$16 sm:$0xc0] %vm13_vm0, %v299_v24   ;;  %1037 = vrot.lane.b32.xlu1 %v6587_v10, %s6512_s19  ;;  %1024 = vrot.lane.b32.xlu0 %v6589_v11, %s6512_s19 }
  0x87   :  { %5029 = vst.msk [vmem:[%s13580_s1 + $0x1] ss:$16 sm:$0x3] %vm13_vm0, %v273_v25   ;;  %5030 = vst.msk [vmem:[%s13580_s1 + $0x1] ss:$16 sm:$0xc] %vm13_vm0, %v273_v25  }
  0x88   :  { %5031 = vst.msk [vmem:[%s13580_s1 + $0x1] ss:$16 sm:$0x30] %vm13_vm0, %v273_v25   ;;  %5032 = vst.msk [vmem:[%s13580_s1 + $0x1] ss:$16 sm:$0xc0] %vm13_vm0, %v273_v25   ;;  %v312_v26 = vpop.permute.xlu1 %311   ;;  %v286_v27 = vpop.permute.xlu0 %285  }
  0x89   :  { %5041 = vst.msk [vmem:[%s13580_s1 + $0x181] ss:$16 sm:$0x3] %vm13_vm0, %v312_v26   ;;  %5042 = vst.msk [vmem:[%s13580_s1 + $0x181] ss:$16 sm:$0xc] %vm13_vm0, %v312_v26  }
  0x8a   :  { %5043 = vst.msk [vmem:[%s13580_s1 + $0x181] ss:$16 sm:$0x30] %vm13_vm0, %v312_v26   ;;  %5044 = vst.msk [vmem:[%s13580_s1 + $0x181] ss:$16 sm:$0xc0] %vm13_vm0, %v312_v26   ;;  %1063 = vrot.lane.b32.xlu1 %v6595_v12, %s6512_s19  ;;  %1050 = vrot.lane.b32.xlu0 %v6597_v13, %s6512_s19 }
  0x8b   :  { %5033 = vst.msk [vmem:[%s13580_s1 + $0x81] ss:$16 sm:$0x3] %vm13_vm0, %v286_v27   ;;  %5034 = vst.msk [vmem:[%s13580_s1 + $0x81] ss:$16 sm:$0xc] %vm13_vm0, %v286_v27  }
  0x8c   :  { %5035 = vst.msk [vmem:[%s13580_s1 + $0x81] ss:$16 sm:$0x30] %vm13_vm0, %v286_v27   ;;  %5036 = vst.msk [vmem:[%s13580_s1 + $0x81] ss:$16 sm:$0xc0] %vm13_vm0, %v286_v27   ;;  %v338_v28 = vpop.permute.xlu1 %337   ;;  %v325_v29 = vpop.permute.xlu0 %324  }
  0x8d   :  { %5049 = vst.msk [vmem:[%s13580_s1 + $0x281] ss:$16 sm:$0x3] %vm13_vm0, %v338_v28   ;;  %5050 = vst.msk [vmem:[%s13580_s1 + $0x281] ss:$16 sm:$0xc] %vm13_vm0, %v338_v28  }
  0x8e   :  { %5051 = vst.msk [vmem:[%s13580_s1 + $0x281] ss:$16 sm:$0x30] %vm13_vm0, %v338_v28   ;;  %5052 = vst.msk [vmem:[%s13580_s1 + $0x281] ss:$16 sm:$0xc0] %vm13_vm0, %v338_v28   ;;  %1089 = vrot.lane.b32.xlu1 %v6603_v14, %s6512_s19  ;;  %1076 = vrot.lane.b32.xlu0 %v6605_v15, %s6512_s19 }
  0x8f   :  { %5045 = vst.msk [vmem:[%s13580_s1 + $0x201] ss:$16 sm:$0x3] %vm13_vm0, %v325_v29   ;;  %5046 = vst.msk [vmem:[%s13580_s1 + $0x201] ss:$16 sm:$0xc] %vm13_vm0, %v325_v29  }
  0x90   :  { %5047 = vst.msk [vmem:[%s13580_s1 + $0x201] ss:$16 sm:$0x30] %vm13_vm0, %v325_v29   ;;  %5048 = vst.msk [vmem:[%s13580_s1 + $0x201] ss:$16 sm:$0xc0] %vm13_vm0, %v325_v29   ;;  %v364_v30 = vpop.permute.xlu1 %363   ;;  %v351_v31 = vpop.permute.xlu0 %350  }
  0x91   :  { %5057 = vst.msk [vmem:[%s13580_s1 + $0x381] ss:$16 sm:$0x3] %vm13_vm0, %v364_v30   ;;  %5058 = vst.msk [vmem:[%s13580_s1 + $0x381] ss:$16 sm:$0xc] %vm13_vm0, %v364_v30  }
  0x92   :  { %5059 = vst.msk [vmem:[%s13580_s1 + $0x381] ss:$16 sm:$0x30] %vm13_vm0, %v364_v30   ;;  %5060 = vst.msk [vmem:[%s13580_s1 + $0x381] ss:$16 sm:$0xc0] %vm13_vm0, %v364_v30   ;;  %1115 = vrot.lane.b32.xlu1 %v6611_v16, %s6512_s19  ;;  %1102 = vrot.lane.b32.xlu0 %v6613_v17, %s6512_s19 }
  0x93   :  { %5053 = vst.msk [vmem:[%s13580_s1 + $0x301] ss:$16 sm:$0x3] %vm13_vm0, %v351_v31   ;;  %5054 = vst.msk [vmem:[%s13580_s1 + $0x301] ss:$16 sm:$0xc] %vm13_vm0, %v351_v31  }
  0x94   :  { %5055 = vst.msk [vmem:[%s13580_s1 + $0x301] ss:$16 sm:$0x30] %vm13_vm0, %v351_v31   ;;  %5056 = vst.msk [vmem:[%s13580_s1 + $0x301] ss:$16 sm:$0xc0] %vm13_vm0, %v351_v31   ;;  %v390_v32 = vpop.permute.xlu1 %389   ;;  %v377_v33 = vpop.permute.xlu0 %376  }
  0x95   :  { %5065 = vst.msk [vmem:[%s13580_s1 + $0x481] ss:$16 sm:$0x3] %vm13_vm0, %v390_v32   ;;  %5066 = vst.msk [vmem:[%s13580_s1 + $0x481] ss:$16 sm:$0xc] %vm13_vm0, %v390_v32  }
  0x96   :  { %5067 = vst.msk [vmem:[%s13580_s1 + $0x481] ss:$16 sm:$0x30] %vm13_vm0, %v390_v32   ;;  %5068 = vst.msk [vmem:[%s13580_s1 + $0x481] ss:$16 sm:$0xc0] %vm13_vm0, %v390_v32   ;;  %1141 = vrot.lane.b32.xlu1 %v6619_v18, %s6512_s19  ;;  %1128 = vrot.lane.b32.xlu0 %v6621_v19, %s6512_s19 }
  0x97   :  { %5061 = vst.msk [vmem:[%s13580_s1 + $0x401] ss:$16 sm:$0x3] %vm13_vm0, %v377_v33   ;;  %5062 = vst.msk [vmem:[%s13580_s1 + $0x401] ss:$16 sm:$0xc] %vm13_vm0, %v377_v33  }
  0x98   :  { %5063 = vst.msk [vmem:[%s13580_s1 + $0x401] ss:$16 sm:$0x30] %vm13_vm0, %v377_v33   ;;  %5064 = vst.msk [vmem:[%s13580_s1 + $0x401] ss:$16 sm:$0xc0] %vm13_vm0, %v377_v33   ;;  %v416_v34 = vpop.permute.xlu1 %415   ;;  %v403_v35 = vpop.permute.xlu0 %402  }
  0x99   :  { %5073 = vst.msk [vmem:[%s13580_s1 + $0x581] ss:$16 sm:$0x3] %vm13_vm0, %v416_v34   ;;  %5074 = vst.msk [vmem:[%s13580_s1 + $0x581] ss:$16 sm:$0xc] %vm13_vm0, %v416_v34  }
  0x9a   :  { %5075 = vst.msk [vmem:[%s13580_s1 + $0x581] ss:$16 sm:$0x30] %vm13_vm0, %v416_v34   ;;  %5076 = vst.msk [vmem:[%s13580_s1 + $0x581] ss:$16 sm:$0xc0] %vm13_vm0, %v416_v34   ;;  %1167 = vrot.lane.b32.xlu1 %v6627_v20, %s6512_s19  ;;  %1154 = vrot.lane.b32.xlu0 %v6629_v21, %s6512_s19 }
  0x9b   :  { %5069 = vst.msk [vmem:[%s13580_s1 + $0x501] ss:$16 sm:$0x3] %vm13_vm0, %v403_v35   ;;  %5070 = vst.msk [vmem:[%s13580_s1 + $0x501] ss:$16 sm:$0xc] %vm13_vm0, %v403_v35  }
  0x9c   :  { %5071 = vst.msk [vmem:[%s13580_s1 + $0x501] ss:$16 sm:$0x30] %vm13_vm0, %v403_v35   ;;  %5072 = vst.msk [vmem:[%s13580_s1 + $0x501] ss:$16 sm:$0xc0] %vm13_vm0, %v403_v35   ;;  %v442_v36 = vpop.permute.xlu1 %441   ;;  %v429_v37 = vpop.permute.xlu0 %428  }
  0x9d   :  { %5081 = vst.msk [vmem:[%s13580_s1 + $0x681] ss:$16 sm:$0x3] %vm13_vm0, %v442_v36   ;;  %5082 = vst.msk [vmem:[%s13580_s1 + $0x681] ss:$16 sm:$0xc] %vm13_vm0, %v442_v36  }
  0x9e   :  { %5083 = vst.msk [vmem:[%s13580_s1 + $0x681] ss:$16 sm:$0x30] %vm13_vm0, %v442_v36   ;;  %5084 = vst.msk [vmem:[%s13580_s1 + $0x681] ss:$16 sm:$0xc0] %vm13_vm0, %v442_v36   ;;  %1193 = vrot.lane.b32.xlu1 %v6635_v22, %s6512_s19  ;;  %1180 = vrot.lane.b32.xlu0 %v6637_v23, %s6512_s19 }
  0x9f   :  { %5077 = vst.msk [vmem:[%s13580_s1 + $0x601] ss:$16 sm:$0x3] %vm13_vm0, %v429_v37   ;;  %5078 = vst.msk [vmem:[%s13580_s1 + $0x601] ss:$16 sm:$0xc] %vm13_vm0, %v429_v37  }
  0xa0   :  { %5079 = vst.msk [vmem:[%s13580_s1 + $0x601] ss:$16 sm:$0x30] %vm13_vm0, %v429_v37   ;;  %5080 = vst.msk [vmem:[%s13580_s1 + $0x601] ss:$16 sm:$0xc0] %vm13_vm0, %v429_v37   ;;  %v468_v38 = vpop.permute.xlu1 %467   ;;  %v455_v39 = vpop.permute.xlu0 %454  }
  0xa1   :  { %5089 = vst.msk [vmem:[%s13580_s1 + $0x781] ss:$16 sm:$0x3] %vm13_vm0, %v468_v38   ;;  %5090 = vst.msk [vmem:[%s13580_s1 + $0x781] ss:$16 sm:$0xc] %vm13_vm0, %v468_v38  }
  0xa2   :  { %5091 = vst.msk [vmem:[%s13580_s1 + $0x781] ss:$16 sm:$0x30] %vm13_vm0, %v468_v38   ;;  %5092 = vst.msk [vmem:[%s13580_s1 + $0x781] ss:$16 sm:$0xc0] %vm13_vm0, %v468_v38   ;;  %1218 = vrot.lane.b32.xlu1 %v6557_v3, %s6513_s2  ;;  %1205 = vrot.lane.b32.xlu0 %v6549_v1, %s6513_s2 }
  0xa3   :  { %5085 = vst.msk [vmem:[%s13580_s1 + $0x701] ss:$16 sm:$0x3] %vm13_vm0, %v455_v39   ;;  %5086 = vst.msk [vmem:[%s13580_s1 + $0x701] ss:$16 sm:$0xc] %vm13_vm0, %v455_v39  }
  0xa4   :  { %5087 = vst.msk [vmem:[%s13580_s1 + $0x701] ss:$16 sm:$0x30] %vm13_vm0, %v455_v39   ;;  %5088 = vst.msk [vmem:[%s13580_s1 + $0x701] ss:$16 sm:$0xc0] %vm13_vm0, %v455_v39   ;;  %v494_v40 = vpop.permute.xlu1 %493   ;;  %v481_v41 = vpop.permute.xlu0 %480  }
  0xa5   :  { %5097 = vst.msk [vmem:[%s13580_s1 + $0x881] ss:$16 sm:$0x3] %vm13_vm0, %v494_v40   ;;  %5098 = vst.msk [vmem:[%s13580_s1 + $0x881] ss:$16 sm:$0xc] %vm13_vm0, %v494_v40  }
  0xa6   :  { %5099 = vst.msk [vmem:[%s13580_s1 + $0x881] ss:$16 sm:$0x30] %vm13_vm0, %v494_v40   ;;  %5100 = vst.msk [vmem:[%s13580_s1 + $0x881] ss:$16 sm:$0xc0] %vm13_vm0, %v494_v40   ;;  %1244 = vrot.lane.b32.xlu1 %v6555_v2, %s6513_s2  ;;  %1231 = vrot.lane.b32.xlu0 %v6547_v0, %s6513_s2 }
  0xa7   :  { %5093 = vst.msk [vmem:[%s13580_s1 + $0x801] ss:$16 sm:$0x3] %vm13_vm0, %v481_v41   ;;  %5094 = vst.msk [vmem:[%s13580_s1 + $0x801] ss:$16 sm:$0xc] %vm13_vm0, %v481_v41  }
  0xa8   :  { %5095 = vst.msk [vmem:[%s13580_s1 + $0x801] ss:$16 sm:$0x30] %vm13_vm0, %v481_v41   ;;  %5096 = vst.msk [vmem:[%s13580_s1 + $0x801] ss:$16 sm:$0xc0] %vm13_vm0, %v481_v41   ;;  %v520_v42 = vpop.permute.xlu1 %519   ;;  %v507_v43 = vpop.permute.xlu0 %506  }
  0xa9   :  { %5105 = vst.msk [vmem:[%s13580_s1 + $0x981] ss:$16 sm:$0x3] %vm13_vm0, %v520_v42   ;;  %5106 = vst.msk [vmem:[%s13580_s1 + $0x981] ss:$16 sm:$0xc] %vm13_vm0, %v520_v42  }
  0xaa   :  { %5107 = vst.msk [vmem:[%s13580_s1 + $0x981] ss:$16 sm:$0x30] %vm13_vm0, %v520_v42   ;;  %5108 = vst.msk [vmem:[%s13580_s1 + $0x981] ss:$16 sm:$0xc0] %vm13_vm0, %v520_v42   ;;  %1270 = vrot.lane.b32.xlu1 %v6563_v4, %s6513_s2  ;;  %1257 = vrot.lane.b32.xlu0 %v6565_v5, %s6513_s2 }
  0xab   :  { %5101 = vst.msk [vmem:[%s13580_s1 + $0x901] ss:$16 sm:$0x3] %vm13_vm0, %v507_v43   ;;  %5102 = vst.msk [vmem:[%s13580_s1 + $0x901] ss:$16 sm:$0xc] %vm13_vm0, %v507_v43  }
  0xac   :  { %5103 = vst.msk [vmem:[%s13580_s1 + $0x901] ss:$16 sm:$0x30] %vm13_vm0, %v507_v43   ;;  %5104 = vst.msk [vmem:[%s13580_s1 + $0x901] ss:$16 sm:$0xc0] %vm13_vm0, %v507_v43   ;;  %v546_v44 = vpop.permute.xlu1 %545   ;;  %v533_v45 = vpop.permute.xlu0 %532  }
  0xad   :  { %5113 = vst.msk [vmem:[%s13580_s1 + $0xa81] ss:$16 sm:$0x3] %vm13_vm0, %v546_v44   ;;  %5114 = vst.msk [vmem:[%s13580_s1 + $0xa81] ss:$16 sm:$0xc] %vm13_vm0, %v546_v44  }
  0xae   :  { %5115 = vst.msk [vmem:[%s13580_s1 + $0xa81] ss:$16 sm:$0x30] %vm13_vm0, %v546_v44   ;;  %5116 = vst.msk [vmem:[%s13580_s1 + $0xa81] ss:$16 sm:$0xc0] %vm13_vm0, %v546_v44   ;;  %1296 = vrot.lane.b32.xlu1 %v6571_v6, %s6513_s2  ;;  %1283 = vrot.lane.b32.xlu0 %v6573_v7, %s6513_s2 }
  0xaf   :  { %5109 = vst.msk [vmem:[%s13580_s1 + $0xa01] ss:$16 sm:$0x3] %vm13_vm0, %v533_v45   ;;  %5110 = vst.msk [vmem:[%s13580_s1 + $0xa01] ss:$16 sm:$0xc] %vm13_vm0, %v533_v45  }
  0xb0   :  { %5111 = vst.msk [vmem:[%s13580_s1 + $0xa01] ss:$16 sm:$0x30] %vm13_vm0, %v533_v45   ;;  %5112 = vst.msk [vmem:[%s13580_s1 + $0xa01] ss:$16 sm:$0xc0] %vm13_vm0, %v533_v45   ;;  %v572_v46 = vpop.permute.xlu1 %571   ;;  %v559_v47 = vpop.permute.xlu0 %558  }
  0xb1   :  { %5121 = vst.msk [vmem:[%s13580_s1 + $0xb81] ss:$16 sm:$0x3] %vm13_vm0, %v572_v46   ;;  %5122 = vst.msk [vmem:[%s13580_s1 + $0xb81] ss:$16 sm:$0xc] %vm13_vm0, %v572_v46  }
  0xb2   :  { %5123 = vst.msk [vmem:[%s13580_s1 + $0xb81] ss:$16 sm:$0x30] %vm13_vm0, %v572_v46   ;;  %5124 = vst.msk [vmem:[%s13580_s1 + $0xb81] ss:$16 sm:$0xc0] %vm13_vm0, %v572_v46   ;;  %1322 = vrot.lane.b32.xlu1 %v6579_v8, %s6513_s2  ;;  %1309 = vrot.lane.b32.xlu0 %v6581_v9, %s6513_s2 }
  0xb3   :  { %5117 = vst.msk [vmem:[%s13580_s1 + $0xb01] ss:$16 sm:$0x3] %vm13_vm0, %v559_v47   ;;  %5118 = vst.msk [vmem:[%s13580_s1 + $0xb01] ss:$16 sm:$0xc] %vm13_vm0, %v559_v47  }
  0xb4   :  { %5119 = vst.msk [vmem:[%s13580_s1 + $0xb01] ss:$16 sm:$0x30] %vm13_vm0, %v559_v47   ;;  %5120 = vst.msk [vmem:[%s13580_s1 + $0xb01] ss:$16 sm:$0xc0] %vm13_vm0, %v559_v47   ;;  %v597_v48 = vpop.permute.xlu1 %596   ;;  %v584_v49 = vpop.permute.xlu0 %583  }
  0xb5   :  { %5129 = vst.msk [vmem:[%s13580_s1 + $0x82] ss:$16 sm:$0x3] %vm13_vm0, %v597_v48   ;;  %5130 = vst.msk [vmem:[%s13580_s1 + $0x82] ss:$16 sm:$0xc] %vm13_vm0, %v597_v48  }
  0xb6   :  { %5131 = vst.msk [vmem:[%s13580_s1 + $0x82] ss:$16 sm:$0x30] %vm13_vm0, %v597_v48   ;;  %5132 = vst.msk [vmem:[%s13580_s1 + $0x82] ss:$16 sm:$0xc0] %vm13_vm0, %v597_v48   ;;  %1348 = vrot.lane.b32.xlu1 %v6587_v10, %s6513_s2  ;;  %1335 = vrot.lane.b32.xlu0 %v6589_v11, %s6513_s2 }
  0xb7   :  { %5125 = vst.msk [vmem:[%s13580_s1 + $0x2] ss:$16 sm:$0x3] %vm13_vm0, %v584_v49   ;;  %5126 = vst.msk [vmem:[%s13580_s1 + $0x2] ss:$16 sm:$0xc] %vm13_vm0, %v584_v49  }
  0xb8   :  { %5127 = vst.msk [vmem:[%s13580_s1 + $0x2] ss:$16 sm:$0x30] %vm13_vm0, %v584_v49   ;;  %5128 = vst.msk [vmem:[%s13580_s1 + $0x2] ss:$16 sm:$0xc0] %vm13_vm0, %v584_v49   ;;  %v623_v50 = vpop.permute.xlu1 %622   ;;  %v610_v51 = vpop.permute.xlu0 %609  }
  0xb9   :  { %5137 = vst.msk [vmem:[%s13580_s1 + $0x182] ss:$16 sm:$0x3] %vm13_vm0, %v623_v50   ;;  %5138 = vst.msk [vmem:[%s13580_s1 + $0x182] ss:$16 sm:$0xc] %vm13_vm0, %v623_v50  }
  0xba   :  { %5139 = vst.msk [vmem:[%s13580_s1 + $0x182] ss:$16 sm:$0x30] %vm13_vm0, %v623_v50   ;;  %5140 = vst.msk [vmem:[%s13580_s1 + $0x182] ss:$16 sm:$0xc0] %vm13_vm0, %v623_v50   ;;  %1374 = vrot.lane.b32.xlu1 %v6595_v12, %s6513_s2  ;;  %1361 = vrot.lane.b32.xlu0 %v6597_v13, %s6513_s2 }
  0xbb   :  { %5133 = vst.msk [vmem:[%s13580_s1 + $0x102] ss:$16 sm:$0x3] %vm13_vm0, %v610_v51   ;;  %5134 = vst.msk [vmem:[%s13580_s1 + $0x102] ss:$16 sm:$0xc] %vm13_vm0, %v610_v51  }
  0xbc   :  { %5135 = vst.msk [vmem:[%s13580_s1 + $0x102] ss:$16 sm:$0x30] %vm13_vm0, %v610_v51   ;;  %5136 = vst.msk [vmem:[%s13580_s1 + $0x102] ss:$16 sm:$0xc0] %vm13_vm0, %v610_v51   ;;  %v649_v52 = vpop.permute.xlu1 %648   ;;  %v636_v53 = vpop.permute.xlu0 %635  }
  0xbd   :  { %5145 = vst.msk [vmem:[%s13580_s1 + $0x282] ss:$16 sm:$0x3] %vm13_vm0, %v649_v52   ;;  %5146 = vst.msk [vmem:[%s13580_s1 + $0x282] ss:$16 sm:$0xc] %vm13_vm0, %v649_v52  }
  0xbe   :  { %5147 = vst.msk [vmem:[%s13580_s1 + $0x282] ss:$16 sm:$0x30] %vm13_vm0, %v649_v52   ;;  %5148 = vst.msk [vmem:[%s13580_s1 + $0x282] ss:$16 sm:$0xc0] %vm13_vm0, %v649_v52   ;;  %1400 = vrot.lane.b32.xlu1 %v6603_v14, %s6513_s2  ;;  %1387 = vrot.lane.b32.xlu0 %v6605_v15, %s6513_s2 }
  0xbf   :  { %5141 = vst.msk [vmem:[%s13580_s1 + $0x202] ss:$16 sm:$0x3] %vm13_vm0, %v636_v53   ;;  %5142 = vst.msk [vmem:[%s13580_s1 + $0x202] ss:$16 sm:$0xc] %vm13_vm0, %v636_v53  }
  0xc0   :  { %5143 = vst.msk [vmem:[%s13580_s1 + $0x202] ss:$16 sm:$0x30] %vm13_vm0, %v636_v53   ;;  %5144 = vst.msk [vmem:[%s13580_s1 + $0x202] ss:$16 sm:$0xc0] %vm13_vm0, %v636_v53   ;;  %v675_v54 = vpop.permute.xlu1 %674   ;;  %v662_v55 = vpop.permute.xlu0 %661  }
  0xc1   :  { %5153 = vst.msk [vmem:[%s13580_s1 + $0x382] ss:$16 sm:$0x3] %vm13_vm0, %v675_v54   ;;  %5154 = vst.msk [vmem:[%s13580_s1 + $0x382] ss:$16 sm:$0xc] %vm13_vm0, %v675_v54  }
  0xc2   :  { %5155 = vst.msk [vmem:[%s13580_s1 + $0x382] ss:$16 sm:$0x30] %vm13_vm0, %v675_v54   ;;  %5156 = vst.msk [vmem:[%s13580_s1 + $0x382] ss:$16 sm:$0xc0] %vm13_vm0, %v675_v54   ;;  %1426 = vrot.lane.b32.xlu1 %v6611_v16, %s6513_s2  ;;  %1413 = vrot.lane.b32.xlu0 %v6613_v17, %s6513_s2 }
  0xc3   :  { %5149 = vst.msk [vmem:[%s13580_s1 + $0x302] ss:$16 sm:$0x3] %vm13_vm0, %v662_v55   ;;  %5150 = vst.msk [vmem:[%s13580_s1 + $0x302] ss:$16 sm:$0xc] %vm13_vm0, %v662_v55  }
  0xc4   :  { %5151 = vst.msk [vmem:[%s13580_s1 + $0x302] ss:$16 sm:$0x30] %vm13_vm0, %v662_v55   ;;  %5152 = vst.msk [vmem:[%s13580_s1 + $0x302] ss:$16 sm:$0xc0] %vm13_vm0, %v662_v55   ;;  %v701_v56 = vpop.permute.xlu1 %700   ;;  %v688_v57 = vpop.permute.xlu0 %687  }
  0xc5   :  { %5161 = vst.msk [vmem:[%s13580_s1 + $0x482] ss:$16 sm:$0x3] %vm13_vm0, %v701_v56   ;;  %5162 = vst.msk [vmem:[%s13580_s1 + $0x482] ss:$16 sm:$0xc] %vm13_vm0, %v701_v56  }
  0xc6   :  { %5163 = vst.msk [vmem:[%s13580_s1 + $0x482] ss:$16 sm:$0x30] %vm13_vm0, %v701_v56   ;;  %5164 = vst.msk [vmem:[%s13580_s1 + $0x482] ss:$16 sm:$0xc0] %vm13_vm0, %v701_v56   ;;  %1452 = vrot.lane.b32.xlu1 %v6619_v18, %s6513_s2  ;;  %1439 = vrot.lane.b32.xlu0 %v6621_v19, %s6513_s2 }
  0xc7   :  { %5157 = vst.msk [vmem:[%s13580_s1 + $0x402] ss:$16 sm:$0x3] %vm13_vm0, %v688_v57   ;;  %5158 = vst.msk [vmem:[%s13580_s1 + $0x402] ss:$16 sm:$0xc] %vm13_vm0, %v688_v57  }
  0xc8   :  { %5159 = vst.msk [vmem:[%s13580_s1 + $0x402] ss:$16 sm:$0x30] %vm13_vm0, %v688_v57   ;;  %5160 = vst.msk [vmem:[%s13580_s1 + $0x402] ss:$16 sm:$0xc0] %vm13_vm0, %v688_v57   ;;  %v727_v58 = vpop.permute.xlu1 %726   ;;  %v714_v59 = vpop.permute.xlu0 %713  }
  0xc9   :  { %5169 = vst.msk [vmem:[%s13580_s1 + $0x582] ss:$16 sm:$0x3] %vm13_vm0, %v727_v58   ;;  %5170 = vst.msk [vmem:[%s13580_s1 + $0x582] ss:$16 sm:$0xc] %vm13_vm0, %v727_v58  }
  0xca   :  { %5171 = vst.msk [vmem:[%s13580_s1 + $0x582] ss:$16 sm:$0x30] %vm13_vm0, %v727_v58   ;;  %5172 = vst.msk [vmem:[%s13580_s1 + $0x582] ss:$16 sm:$0xc0] %vm13_vm0, %v727_v58   ;;  %1478 = vrot.lane.b32.xlu1 %v6627_v20, %s6513_s2  ;;  %1465 = vrot.lane.b32.xlu0 %v6629_v21, %s6513_s2 }
  0xcb   :  { %5165 = vst.msk [vmem:[%s13580_s1 + $0x502] ss:$16 sm:$0x3] %vm13_vm0, %v714_v59   ;;  %5166 = vst.msk [vmem:[%s13580_s1 + $0x502] ss:$16 sm:$0xc] %vm13_vm0, %v714_v59  }
  0xcc   :  { %5167 = vst.msk [vmem:[%s13580_s1 + $0x502] ss:$16 sm:$0x30] %vm13_vm0, %v714_v59   ;;  %5168 = vst.msk [vmem:[%s13580_s1 + $0x502] ss:$16 sm:$0xc0] %vm13_vm0, %v714_v59   ;;  %v753_v60 = vpop.permute.xlu1 %752   ;;  %v740_v61 = vpop.permute.xlu0 %739  }
  0xcd   :  { %5177 = vst.msk [vmem:[%s13580_s1 + $0x682] ss:$16 sm:$0x3] %vm13_vm0, %v753_v60   ;;  %5178 = vst.msk [vmem:[%s13580_s1 + $0x682] ss:$16 sm:$0xc] %vm13_vm0, %v753_v60  }
  0xce   :  { %5179 = vst.msk [vmem:[%s13580_s1 + $0x682] ss:$16 sm:$0x30] %vm13_vm0, %v753_v60   ;;  %5180 = vst.msk [vmem:[%s13580_s1 + $0x682] ss:$16 sm:$0xc0] %vm13_vm0, %v753_v60   ;;  %1504 = vrot.lane.b32.xlu1 %v6635_v22, %s6513_s2  ;;  %1491 = vrot.lane.b32.xlu0 %v6637_v23, %s6513_s2 }
  0xcf   :  { %5173 = vst.msk [vmem:[%s13580_s1 + $0x602] ss:$16 sm:$0x3] %vm13_vm0, %v740_v61   ;;  %5174 = vst.msk [vmem:[%s13580_s1 + $0x602] ss:$16 sm:$0xc] %vm13_vm0, %v740_v61  }
  0xd0   :  { %5175 = vst.msk [vmem:[%s13580_s1 + $0x602] ss:$16 sm:$0x30] %vm13_vm0, %v740_v61   ;;  %5176 = vst.msk [vmem:[%s13580_s1 + $0x602] ss:$16 sm:$0xc0] %vm13_vm0, %v740_v61   ;;  %v779_v62 = vpop.permute.xlu1 %778   ;;  %v766_v63 = vpop.permute.xlu0 %765  }
  0xd1   :  { %5185 = vst.msk [vmem:[%s13580_s1 + $0x782] ss:$16 sm:$0x3] %vm13_vm0, %v779_v62   ;;  %5186 = vst.msk [vmem:[%s13580_s1 + $0x782] ss:$16 sm:$0xc] %vm13_vm0, %v779_v62  }
  0xd2   :  { %5187 = vst.msk [vmem:[%s13580_s1 + $0x782] ss:$16 sm:$0x30] %vm13_vm0, %v779_v62   ;;  %5188 = vst.msk [vmem:[%s13580_s1 + $0x782] ss:$16 sm:$0xc0] %vm13_vm0, %v779_v62   ;;  %1529 = vrot.lane.b32.xlu1 %v6557_v3, %s6514_s18  ;;  %1516 = vrot.lane.b32.xlu0 %v6549_v1, %s6514_s18 }
  0xd3   :  { %5181 = vst.msk [vmem:[%s13580_s1 + $0x702] ss:$16 sm:$0x3] %vm13_vm0, %v766_v63   ;;  %5182 = vst.msk [vmem:[%s13580_s1 + $0x702] ss:$16 sm:$0xc] %vm13_vm0, %v766_v63  }
  0xd4   :  { %5183 = vst.msk [vmem:[%s13580_s1 + $0x702] ss:$16 sm:$0x30] %vm13_vm0, %v766_v63   ;;  %5184 = vst.msk [vmem:[%s13580_s1 + $0x702] ss:$16 sm:$0xc0] %vm13_vm0, %v766_v63   ;;  %v805_v1 = vpop.permute.xlu1 %804   ;;  %v792_v3 = vpop.permute.xlu0 %791  }
  0xd5   :  { %5193 = vst.msk [vmem:[%s13580_s1 + $0x882] ss:$16 sm:$0x3] %vm13_vm0, %v805_v1   ;;  %5194 = vst.msk [vmem:[%s13580_s1 + $0x882] ss:$16 sm:$0xc] %vm13_vm0, %v805_v1  }
  0xd6   :  { %5195 = vst.msk [vmem:[%s13580_s1 + $0x882] ss:$16 sm:$0x30] %vm13_vm0, %v805_v1   ;;  %5196 = vst.msk [vmem:[%s13580_s1 + $0x882] ss:$16 sm:$0xc0] %vm13_vm0, %v805_v1   ;;  %1555 = vrot.lane.b32.xlu1 %v6555_v2, %s6514_s18  ;;  %1542 = vrot.lane.b32.xlu0 %v6547_v0, %s6514_s18 }
  0xd7   :  { %5189 = vst.msk [vmem:[%s13580_s1 + $0x802] ss:$16 sm:$0x3] %vm13_vm0, %v792_v3   ;;  %5190 = vst.msk [vmem:[%s13580_s1 + $0x802] ss:$16 sm:$0xc] %vm13_vm0, %v792_v3  }
  0xd8   :  { %5191 = vst.msk [vmem:[%s13580_s1 + $0x802] ss:$16 sm:$0x30] %vm13_vm0, %v792_v3   ;;  %5192 = vst.msk [vmem:[%s13580_s1 + $0x802] ss:$16 sm:$0xc0] %vm13_vm0, %v792_v3   ;;  %v831_v0 = vpop.permute.xlu1 %830   ;;  %v818_v2 = vpop.permute.xlu0 %817  }
  0xd9   :  { %5201 = vst.msk [vmem:[%s13580_s1 + $0x982] ss:$16 sm:$0x3] %vm13_vm0, %v831_v0   ;;  %5202 = vst.msk [vmem:[%s13580_s1 + $0x982] ss:$16 sm:$0xc] %vm13_vm0, %v831_v0  }
  0xda   :  { %5203 = vst.msk [vmem:[%s13580_s1 + $0x982] ss:$16 sm:$0x30] %vm13_vm0, %v831_v0   ;;  %5204 = vst.msk [vmem:[%s13580_s1 + $0x982] ss:$16 sm:$0xc0] %vm13_vm0, %v831_v0   ;;  %1581 = vrot.lane.b32.xlu1 %v6563_v4, %s6514_s18  ;;  %1568 = vrot.lane.b32.xlu0 %v6565_v5, %s6514_s18 }
  0xdb   :  { %5197 = vst.msk [vmem:[%s13580_s1 + $0x902] ss:$16 sm:$0x3] %vm13_vm0, %v818_v2   ;;  %5198 = vst.msk [vmem:[%s13580_s1 + $0x902] ss:$16 sm:$0xc] %vm13_vm0, %v818_v2  }
  0xdc   :  { %5199 = vst.msk [vmem:[%s13580_s1 + $0x902] ss:$16 sm:$0x30] %vm13_vm0, %v818_v2   ;;  %5200 = vst.msk [vmem:[%s13580_s1 + $0x902] ss:$16 sm:$0xc0] %vm13_vm0, %v818_v2   ;;  %v857_v4 = vpop.permute.xlu1 %856   ;;  %v844_v5 = vpop.permute.xlu0 %843  }
  0xdd   :  { %5209 = vst.msk [vmem:[%s13580_s1 + $0xa82] ss:$16 sm:$0x3] %vm13_vm0, %v857_v4   ;;  %5210 = vst.msk [vmem:[%s13580_s1 + $0xa82] ss:$16 sm:$0xc] %vm13_vm0, %v857_v4  }
  0xde   :  { %5211 = vst.msk [vmem:[%s13580_s1 + $0xa82] ss:$16 sm:$0x30] %vm13_vm0, %v857_v4   ;;  %5212 = vst.msk [vmem:[%s13580_s1 + $0xa82] ss:$16 sm:$0xc0] %vm13_vm0, %v857_v4   ;;  %1607 = vrot.lane.b32.xlu1 %v6571_v6, %s6514_s18  ;;  %1594 = vrot.lane.b32.xlu0 %v6573_v7, %s6514_s18 }
  0xdf   :  { %5205 = vst.msk [vmem:[%s13580_s1 + $0xa02] ss:$16 sm:$0x3] %vm13_vm0, %v844_v5   ;;  %5206 = vst.msk [vmem:[%s13580_s1 + $0xa02] ss:$16 sm:$0xc] %vm13_vm0, %v844_v5  }
  0xe0   :  { %5207 = vst.msk [vmem:[%s13580_s1 + $0xa02] ss:$16 sm:$0x30] %vm13_vm0, %v844_v5   ;;  %5208 = vst.msk [vmem:[%s13580_s1 + $0xa02] ss:$16 sm:$0xc0] %vm13_vm0, %v844_v5   ;;  %v883_v6 = vpop.permute.xlu1 %882   ;;  %v870_v7 = vpop.permute.xlu0 %869  }
  0xe1   :  { %5217 = vst.msk [vmem:[%s13580_s1 + $0xb82] ss:$16 sm:$0x3] %vm13_vm0, %v883_v6   ;;  %5218 = vst.msk [vmem:[%s13580_s1 + $0xb82] ss:$16 sm:$0xc] %vm13_vm0, %v883_v6  }
  0xe2   :  { %5219 = vst.msk [vmem:[%s13580_s1 + $0xb82] ss:$16 sm:$0x30] %vm13_vm0, %v883_v6   ;;  %5220 = vst.msk [vmem:[%s13580_s1 + $0xb82] ss:$16 sm:$0xc0] %vm13_vm0, %v883_v6   ;;  %1633 = vrot.lane.b32.xlu1 %v6579_v8, %s6514_s18  ;;  %1620 = vrot.lane.b32.xlu0 %v6581_v9, %s6514_s18 }
  0xe3   :  { %5213 = vst.msk [vmem:[%s13580_s1 + $0xb02] ss:$16 sm:$0x3] %vm13_vm0, %v870_v7   ;;  %5214 = vst.msk [vmem:[%s13580_s1 + $0xb02] ss:$16 sm:$0xc] %vm13_vm0, %v870_v7  }
  0xe4   :  { %5215 = vst.msk [vmem:[%s13580_s1 + $0xb02] ss:$16 sm:$0x30] %vm13_vm0, %v870_v7   ;;  %5216 = vst.msk [vmem:[%s13580_s1 + $0xb02] ss:$16 sm:$0xc0] %vm13_vm0, %v870_v7   ;;  %v908_v8 = vpop.permute.xlu1 %907   ;;  %v895_v9 = vpop.permute.xlu0 %894  }
  0xe5   :  { %5225 = vst.msk [vmem:[%s13580_s1 + $0x83] ss:$16 sm:$0x3] %vm13_vm0, %v908_v8   ;;  %5226 = vst.msk [vmem:[%s13580_s1 + $0x83] ss:$16 sm:$0xc] %vm13_vm0, %v908_v8  }
  0xe6   :  { %5227 = vst.msk [vmem:[%s13580_s1 + $0x83] ss:$16 sm:$0x30] %vm13_vm0, %v908_v8   ;;  %5228 = vst.msk [vmem:[%s13580_s1 + $0x83] ss:$16 sm:$0xc0] %vm13_vm0, %v908_v8   ;;  %1659 = vrot.lane.b32.xlu1 %v6587_v10, %s6514_s18  ;;  %1646 = vrot.lane.b32.xlu0 %v6589_v11, %s6514_s18 }
  0xe7   :  { %5221 = vst.msk [vmem:[%s13580_s1 + $0x3] ss:$16 sm:$0x3] %vm13_vm0, %v895_v9   ;;  %5222 = vst.msk [vmem:[%s13580_s1 + $0x3] ss:$16 sm:$0xc] %vm13_vm0, %v895_v9  }
  0xe8   :  { %5223 = vst.msk [vmem:[%s13580_s1 + $0x3] ss:$16 sm:$0x30] %vm13_vm0, %v895_v9   ;;  %5224 = vst.msk [vmem:[%s13580_s1 + $0x3] ss:$16 sm:$0xc0] %vm13_vm0, %v895_v9   ;;  %v934_v10 = vpop.permute.xlu1 %933   ;;  %v921_v11 = vpop.permute.xlu0 %920  }
  0xe9   :  { %5233 = vst.msk [vmem:[%s13580_s1 + $0x183] ss:$16 sm:$0x3] %vm13_vm0, %v934_v10   ;;  %5234 = vst.msk [vmem:[%s13580_s1 + $0x183] ss:$16 sm:$0xc] %vm13_vm0, %v934_v10  }
  0xea   :  { %5235 = vst.msk [vmem:[%s13580_s1 + $0x183] ss:$16 sm:$0x30] %vm13_vm0, %v934_v10   ;;  %5236 = vst.msk [vmem:[%s13580_s1 + $0x183] ss:$16 sm:$0xc0] %vm13_vm0, %v934_v10   ;;  %1685 = vrot.lane.b32.xlu1 %v6595_v12, %s6514_s18  ;;  %1672 = vrot.lane.b32.xlu0 %v6597_v13, %s6514_s18 }
  0xeb   :  { %5229 = vst.msk [vmem:[%s13580_s1 + $0x103] ss:$16 sm:$0x3] %vm13_vm0, %v921_v11   ;;  %5230 = vst.msk [vmem:[%s13580_s1 + $0x103] ss:$16 sm:$0xc] %vm13_vm0, %v921_v11  }
  0xec   :  { %5231 = vst.msk [vmem:[%s13580_s1 + $0x103] ss:$16 sm:$0x30] %vm13_vm0, %v921_v11   ;;  %5232 = vst.msk [vmem:[%s13580_s1 + $0x103] ss:$16 sm:$0xc0] %vm13_vm0, %v921_v11   ;;  %v960_v12 = vpop.permute.xlu1 %959   ;;  %v947_v13 = vpop.permute.xlu0 %946  }
  0xed   :  { %5241 = vst.msk [vmem:[%s13580_s1 + $0x283] ss:$16 sm:$0x3] %vm13_vm0, %v960_v12   ;;  %5242 = vst.msk [vmem:[%s13580_s1 + $0x283] ss:$16 sm:$0xc] %vm13_vm0, %v960_v12  }
  0xee   :  { %5243 = vst.msk [vmem:[%s13580_s1 + $0x283] ss:$16 sm:$0x30] %vm13_vm0, %v960_v12   ;;  %5244 = vst.msk [vmem:[%s13580_s1 + $0x283] ss:$16 sm:$0xc0] %vm13_vm0, %v960_v12   ;;  %1711 = vrot.lane.b32.xlu1 %v6603_v14, %s6514_s18  ;;  %1698 = vrot.lane.b32.xlu0 %v6605_v15, %s6514_s18 }
  0xef   :  { %5237 = vst.msk [vmem:[%s13580_s1 + $0x203] ss:$16 sm:$0x3] %vm13_vm0, %v947_v13   ;;  %5238 = vst.msk [vmem:[%s13580_s1 + $0x203] ss:$16 sm:$0xc] %vm13_vm0, %v947_v13  }
  0xf0   :  { %5239 = vst.msk [vmem:[%s13580_s1 + $0x203] ss:$16 sm:$0x30] %vm13_vm0, %v947_v13   ;;  %5240 = vst.msk [vmem:[%s13580_s1 + $0x203] ss:$16 sm:$0xc0] %vm13_vm0, %v947_v13   ;;  %v986_v14 = vpop.permute.xlu1 %985   ;;  %v973_v15 = vpop.permute.xlu0 %972  }
  0xf1   :  { %5249 = vst.msk [vmem:[%s13580_s1 + $0x383] ss:$16 sm:$0x3] %vm13_vm0, %v986_v14   ;;  %5250 = vst.msk [vmem:[%s13580_s1 + $0x383] ss:$16 sm:$0xc] %vm13_vm0, %v986_v14  }
  0xf2   :  { %5251 = vst.msk [vmem:[%s13580_s1 + $0x383] ss:$16 sm:$0x30] %vm13_vm0, %v986_v14   ;;  %5252 = vst.msk [vmem:[%s13580_s1 + $0x383] ss:$16 sm:$0xc0] %vm13_vm0, %v986_v14   ;;  %1737 = vrot.lane.b32.xlu1 %v6611_v16, %s6514_s18  ;;  %1724 = vrot.lane.b32.xlu0 %v6613_v17, %s6514_s18 }
  0xf3   :  { %5245 = vst.msk [vmem:[%s13580_s1 + $0x303] ss:$16 sm:$0x3] %vm13_vm0, %v973_v15   ;;  %5246 = vst.msk [vmem:[%s13580_s1 + $0x303] ss:$16 sm:$0xc] %vm13_vm0, %v973_v15  }
  0xf4   :  { %5247 = vst.msk [vmem:[%s13580_s1 + $0x303] ss:$16 sm:$0x30] %vm13_vm0, %v973_v15   ;;  %5248 = vst.msk [vmem:[%s13580_s1 + $0x303] ss:$16 sm:$0xc0] %vm13_vm0, %v973_v15   ;;  %v1012_v16 = vpop.permute.xlu1 %1011   ;;  %v999_v17 = vpop.permute.xlu0 %998  }
  0xf5   :  { %5257 = vst.msk [vmem:[%s13580_s1 + $0x483] ss:$16 sm:$0x3] %vm13_vm0, %v1012_v16   ;;  %5258 = vst.msk [vmem:[%s13580_s1 + $0x483] ss:$16 sm:$0xc] %vm13_vm0, %v1012_v16  }
  0xf6   :  { %5259 = vst.msk [vmem:[%s13580_s1 + $0x483] ss:$16 sm:$0x30] %vm13_vm0, %v1012_v16   ;;  %5260 = vst.msk [vmem:[%s13580_s1 + $0x483] ss:$16 sm:$0xc0] %vm13_vm0, %v1012_v16   ;;  %1763 = vrot.lane.b32.xlu1 %v6619_v18, %s6514_s18  ;;  %1750 = vrot.lane.b32.xlu0 %v6621_v19, %s6514_s18 }
  0xf7   :  { %5253 = vst.msk [vmem:[%s13580_s1 + $0x403] ss:$16 sm:$0x3] %vm13_vm0, %v999_v17   ;;  %5254 = vst.msk [vmem:[%s13580_s1 + $0x403] ss:$16 sm:$0xc] %vm13_vm0, %v999_v17  }
  0xf8   :  { %5255 = vst.msk [vmem:[%s13580_s1 + $0x403] ss:$16 sm:$0x30] %vm13_vm0, %v999_v17   ;;  %5256 = vst.msk [vmem:[%s13580_s1 + $0x403] ss:$16 sm:$0xc0] %vm13_vm0, %v999_v17   ;;  %v1038_v18 = vpop.permute.xlu1 %1037   ;;  %v1025_v19 = vpop.permute.xlu0 %1024  }
  0xf9   :  { %5265 = vst.msk [vmem:[%s13580_s1 + $0x583] ss:$16 sm:$0x3] %vm13_vm0, %v1038_v18   ;;  %5266 = vst.msk [vmem:[%s13580_s1 + $0x583] ss:$16 sm:$0xc] %vm13_vm0, %v1038_v18  }
  0xfa   :  { %5267 = vst.msk [vmem:[%s13580_s1 + $0x583] ss:$16 sm:$0x30] %vm13_vm0, %v1038_v18   ;;  %5268 = vst.msk [vmem:[%s13580_s1 + $0x583] ss:$16 sm:$0xc0] %vm13_vm0, %v1038_v18   ;;  %1789 = vrot.lane.b32.xlu1 %v6627_v20, %s6514_s18  ;;  %1776 = vrot.lane.b32.xlu0 %v6629_v21, %s6514_s18 }
  0xfb   :  { %5261 = vst.msk [vmem:[%s13580_s1 + $0x503] ss:$16 sm:$0x3] %vm13_vm0, %v1025_v19   ;;  %5262 = vst.msk [vmem:[%s13580_s1 + $0x503] ss:$16 sm:$0xc] %vm13_vm0, %v1025_v19  }
  0xfc   :  { %5263 = vst.msk [vmem:[%s13580_s1 + $0x503] ss:$16 sm:$0x30] %vm13_vm0, %v1025_v19   ;;  %5264 = vst.msk [vmem:[%s13580_s1 + $0x503] ss:$16 sm:$0xc0] %vm13_vm0, %v1025_v19   ;;  %v1064_v20 = vpop.permute.xlu1 %1063   ;;  %v1051_v21 = vpop.permute.xlu0 %1050  }
  0xfd   :  { %5273 = vst.msk [vmem:[%s13580_s1 + $0x683] ss:$16 sm:$0x3] %vm13_vm0, %v1064_v20   ;;  %5274 = vst.msk [vmem:[%s13580_s1 + $0x683] ss:$16 sm:$0xc] %vm13_vm0, %v1064_v20  }
  0xfe   :  { %5275 = vst.msk [vmem:[%s13580_s1 + $0x683] ss:$16 sm:$0x30] %vm13_vm0, %v1064_v20   ;;  %5276 = vst.msk [vmem:[%s13580_s1 + $0x683] ss:$16 sm:$0xc0] %vm13_vm0, %v1064_v20   ;;  %1815 = vrot.lane.b32.xlu1 %v6635_v22, %s6514_s18  ;;  %1802 = vrot.lane.b32.xlu0 %v6637_v23, %s6514_s18 }
  0xff   :  { %5269 = vst.msk [vmem:[%s13580_s1 + $0x603] ss:$16 sm:$0x3] %vm13_vm0, %v1051_v21   ;;  %5270 = vst.msk [vmem:[%s13580_s1 + $0x603] ss:$16 sm:$0xc] %vm13_vm0, %v1051_v21  }
 0x100   :  { %5271 = vst.msk [vmem:[%s13580_s1 + $0x603] ss:$16 sm:$0x30] %vm13_vm0, %v1051_v21   ;;  %5272 = vst.msk [vmem:[%s13580_s1 + $0x603] ss:$16 sm:$0xc0] %vm13_vm0, %v1051_v21   ;;  %v1090_v24 = vpop.permute.xlu1 %1089   ;;  %v1077_v25 = vpop.permute.xlu0 %1076  }
 0x101   :  { %v7803_v22 = vld [vmem:[#allocation0 + $0x8] sm:$0xff]   ;;  %v7805_v23 = vld [vmem:[#allocation0] sm:$0xff]   ;;  %5281 = vst.msk [vmem:[%s13580_s1 + $0x783] ss:$16 sm:$0x3] %vm13_vm0, %v1090_v24   ;;  %v7843_v26 = vld [vmem:[#allocation0 + $0x18] sm:$0xff]  }
 0x102   :  { %5282 = vst.msk [vmem:[%s13580_s1 + $0x783] ss:$16 sm:$0xc] %vm13_vm0, %v1090_v24   ;;  %5283 = vst.msk [vmem:[%s13580_s1 + $0x783] ss:$16 sm:$0x30] %vm13_vm0, %v1090_v24   ;;  %1840 = vrot.lane.b32.xlu1 %v7803_v22, %s6515_s8  ;;  %1827 = vrot.lane.b32.xlu0 %v7805_v23, %s6515_s8 }
 0x103   :  { %5284 = vst.msk [vmem:[%s13580_s1 + $0x783] ss:$16 sm:$0xc0] %vm13_vm0, %v1090_v24   ;;  %5277 = vst.msk [vmem:[%s13580_s1 + $0x703] ss:$16 sm:$0x3] %vm13_vm0, %v1077_v25  }
 0x104   :  { %5278 = vst.msk [vmem:[%s13580_s1 + $0x703] ss:$16 sm:$0xc] %vm13_vm0, %v1077_v25   ;;  %5279 = vst.msk [vmem:[%s13580_s1 + $0x703] ss:$16 sm:$0x30] %vm13_vm0, %v1077_v25   ;;  %v1116_v28 = vpop.permute.xlu1 %1115   ;;  %v1103_v29 = vpop.permute.xlu0 %1102  }
 0x105   :  { %5280 = vst.msk [vmem:[%s13580_s1 + $0x703] ss:$16 sm:$0xc0] %vm13_vm0, %v1077_v25   ;;  %v7845_v27 = vld [vmem:[#allocation0 + $0x10] sm:$0xff]   ;;  %v7883_v30 = vld [vmem:[#allocation0 + $0x28] sm:$0xff]   ;;  %v7885_v31 = vld [vmem:[#allocation0 + $0x20] sm:$0xff]  }
 0x106   :  { %5289 = vst.msk [vmem:[%s13580_s1 + $0x883] ss:$16 sm:$0x3] %vm13_vm0, %v1116_v28   ;;  %5290 = vst.msk [vmem:[%s13580_s1 + $0x883] ss:$16 sm:$0xc] %vm13_vm0, %v1116_v28   ;;  %1866 = vrot.lane.b32.xlu1 %v7843_v26, %s6515_s8  ;;  %1853 = vrot.lane.b32.xlu0 %v7845_v27, %s6515_s8 }
 0x107   :  { %5291 = vst.msk [vmem:[%s13580_s1 + $0x883] ss:$16 sm:$0x30] %vm13_vm0, %v1116_v28   ;;  %5292 = vst.msk [vmem:[%s13580_s1 + $0x883] ss:$16 sm:$0xc0] %vm13_vm0, %v1116_v28  }
 0x108   :  { %5285 = vst.msk [vmem:[%s13580_s1 + $0x803] ss:$16 sm:$0x3] %vm13_vm0, %v1103_v29   ;;  %5286 = vst.msk [vmem:[%s13580_s1 + $0x803] ss:$16 sm:$0xc] %vm13_vm0, %v1103_v29   ;;  %v1142_v32 = vpop.permute.xlu1 %1141   ;;  %v1129_v33 = vpop.permute.xlu0 %1128  }
 0x109   :  { %5287 = vst.msk [vmem:[%s13580_s1 + $0x803] ss:$16 sm:$0x30] %vm13_vm0, %v1103_v29   ;;  %5288 = vst.msk [vmem:[%s13580_s1 + $0x803] ss:$16 sm:$0xc0] %vm13_vm0, %v1103_v29  }
 0x10a   :  { %5297 = vst.msk [vmem:[%s13580_s1 + $0x983] ss:$16 sm:$0x3] %vm13_vm0, %v1142_v32   ;;  %5298 = vst.msk [vmem:[%s13580_s1 + $0x983] ss:$16 sm:$0xc] %vm13_vm0, %v1142_v32   ;;  %1892 = vrot.lane.b32.xlu1 %v7883_v30, %s6515_s8  ;;  %1879 = vrot.lane.b32.xlu0 %v7885_v31, %s6515_s8 }
 0x10b   :  { %5299 = vst.msk [vmem:[%s13580_s1 + $0x983] ss:$16 sm:$0x30] %vm13_vm0, %v1142_v32   ;;  %5300 = vst.msk [vmem:[%s13580_s1 + $0x983] ss:$16 sm:$0xc0] %vm13_vm0, %v1142_v32  }
 0x10c   :  { %5293 = vst.msk [vmem:[%s13580_s1 + $0x903] ss:$16 sm:$0x3] %vm13_vm0, %v1129_v33   ;;  %5294 = vst.msk [vmem:[%s13580_s1 + $0x903] ss:$16 sm:$0xc] %vm13_vm0, %v1129_v33   ;;  %v1168_v36 = vpop.permute.xlu1 %1167   ;;  %v1155_v37 = vpop.permute.xlu0 %1154  }
 0x10d   :  { %5295 = vst.msk [vmem:[%s13580_s1 + $0x903] ss:$16 sm:$0x30] %vm13_vm0, %v1129_v33   ;;  %5296 = vst.msk [vmem:[%s13580_s1 + $0x903] ss:$16 sm:$0xc0] %vm13_vm0, %v1129_v33  }
 0x10e   :  { %v7923_v34 = vld [vmem:[#allocation0 + $0x38] sm:$0xff]   ;;  %v7925_v35 = vld [vmem:[#allocation0 + $0x30] sm:$0xff]   ;;  %5305 = vst.msk [vmem:[%s13580_s1 + $0xa83] ss:$16 sm:$0x3] %vm13_vm0, %v1168_v36   ;;  %v7963_v38 = vld [vmem:[#allocation0 + $0x48] sm:$0xff]  }
 0x10f   :  { %5306 = vst.msk [vmem:[%s13580_s1 + $0xa83] ss:$16 sm:$0xc] %vm13_vm0, %v1168_v36   ;;  %5307 = vst.msk [vmem:[%s13580_s1 + $0xa83] ss:$16 sm:$0x30] %vm13_vm0, %v1168_v36   ;;  %1918 = vrot.lane.b32.xlu1 %v7923_v34, %s6515_s8  ;;  %1905 = vrot.lane.b32.xlu0 %v7925_v35, %s6515_s8 }
 0x110   :  { %5308 = vst.msk [vmem:[%s13580_s1 + $0xa83] ss:$16 sm:$0xc0] %vm13_vm0, %v1168_v36   ;;  %5301 = vst.msk [vmem:[%s13580_s1 + $0xa03] ss:$16 sm:$0x3] %vm13_vm0, %v1155_v37   ;;  %v1194_v40 = vpop.permute.xlu1 %1193   ;;  %v1181_v41 = vpop.permute.xlu0 %1180  }
 0x111   :  { %5302 = vst.msk [vmem:[%s13580_s1 + $0xa03] ss:$16 sm:$0xc] %vm13_vm0, %v1155_v37   ;;  %5303 = vst.msk [vmem:[%s13580_s1 + $0xa03] ss:$16 sm:$0x30] %vm13_vm0, %v1155_v37  }
 0x112   :  { %5304 = vst.msk [vmem:[%s13580_s1 + $0xa03] ss:$16 sm:$0xc0] %vm13_vm0, %v1155_v37   ;;  %v7965_v39 = vld [vmem:[#allocation0 + $0x40] sm:$0xff]   ;;  %v8003_v42 = vld [vmem:[#allocation0 + $0x58] sm:$0xff]   ;;  %v8005_v43 = vld [vmem:[#allocation0 + $0x50] sm:$0xff]  }
 0x113   :  { %5313 = vst.msk [vmem:[%s13580_s1 + $0xb83] ss:$16 sm:$0x3] %vm13_vm0, %v1194_v40   ;;  %5314 = vst.msk [vmem:[%s13580_s1 + $0xb83] ss:$16 sm:$0xc] %vm13_vm0, %v1194_v40   ;;  %1944 = vrot.lane.b32.xlu1 %v7963_v38, %s6515_s8  ;;  %1931 = vrot.lane.b32.xlu0 %v7965_v39, %s6515_s8 }
 0x114   :  { %5315 = vst.msk [vmem:[%s13580_s1 + $0xb83] ss:$16 sm:$0x30] %vm13_vm0, %v1194_v40   ;;  %5316 = vst.msk [vmem:[%s13580_s1 + $0xb83] ss:$16 sm:$0xc0] %vm13_vm0, %v1194_v40   ;;  %v1219_v44 = vpop.permute.xlu1 %1218   ;;  %v1206_v45 = vpop.permute.xlu0 %1205  }
 0x115   :  { %5309 = vst.msk [vmem:[%s13580_s1 + $0xb03] ss:$16 sm:$0x3] %vm13_vm0, %v1181_v41   ;;  %5310 = vst.msk [vmem:[%s13580_s1 + $0xb03] ss:$16 sm:$0xc] %vm13_vm0, %v1181_v41  }
 0x116   :  { %5311 = vst.msk [vmem:[%s13580_s1 + $0xb03] ss:$16 sm:$0x30] %vm13_vm0, %v1181_v41   ;;  %5312 = vst.msk [vmem:[%s13580_s1 + $0xb03] ss:$16 sm:$0xc0] %vm13_vm0, %v1181_v41  }
 0x117   :  { %5321 = vst.msk [vmem:[%s13580_s1 + $0x84] ss:$16 sm:$0x3] %vm13_vm0, %v1219_v44   ;;  %5322 = vst.msk [vmem:[%s13580_s1 + $0x84] ss:$16 sm:$0xc] %vm13_vm0, %v1219_v44   ;;  %1970 = vrot.lane.b32.xlu1 %v8003_v42, %s6515_s8  ;;  %1957 = vrot.lane.b32.xlu0 %v8005_v43, %s6515_s8 }
 0x118   :  { %5323 = vst.msk [vmem:[%s13580_s1 + $0x84] ss:$16 sm:$0x30] %vm13_vm0, %v1219_v44   ;;  %5324 = vst.msk [vmem:[%s13580_s1 + $0x84] ss:$16 sm:$0xc0] %vm13_vm0, %v1219_v44   ;;  %v1245_v48 = vpop.permute.xlu1 %1244   ;;  %v1232_v49 = vpop.permute.xlu0 %1231  }
 0x119   :  { %5317 = vst.msk [vmem:[%s13580_s1 + $0x4] ss:$16 sm:$0x3] %vm13_vm0, %v1206_v45   ;;  %5318 = vst.msk [vmem:[%s13580_s1 + $0x4] ss:$16 sm:$0xc] %vm13_vm0, %v1206_v45  }
 0x11a   :  { %5319 = vst.msk [vmem:[%s13580_s1 + $0x4] ss:$16 sm:$0x30] %vm13_vm0, %v1206_v45   ;;  %5320 = vst.msk [vmem:[%s13580_s1 + $0x4] ss:$16 sm:$0xc0] %vm13_vm0, %v1206_v45  }
 0x11b   :  { %v8043_v46 = vld [vmem:[#allocation0 + $0x68] sm:$0xff]   ;;  %v8045_v47 = vld [vmem:[#allocation0 + $0x60] sm:$0xff]   ;;  %5329 = vst.msk [vmem:[%s13580_s1 + $0x184] ss:$16 sm:$0x3] %vm13_vm0, %v1245_v48   ;;  %v8083_v50 = vld [vmem:[#allocation0 + $0x78] sm:$0xff]  }
 0x11c   :  { %5330 = vst.msk [vmem:[%s13580_s1 + $0x184] ss:$16 sm:$0xc] %vm13_vm0, %v1245_v48   ;;  %5331 = vst.msk [vmem:[%s13580_s1 + $0x184] ss:$16 sm:$0x30] %vm13_vm0, %v1245_v48   ;;  %1996 = vrot.lane.b32.xlu1 %v8043_v46, %s6515_s8  ;;  %1983 = vrot.lane.b32.xlu0 %v8045_v47, %s6515_s8  ;;  %v1271_v52 = vpop.permute.xlu1 %1270   ;;  %v1258_v53 = vpop.permute.xlu0 %1257  }
 0x11d   :  { %5332 = vst.msk [vmem:[%s13580_s1 + $0x184] ss:$16 sm:$0xc0] %vm13_vm0, %v1245_v48   ;;  %5325 = vst.msk [vmem:[%s13580_s1 + $0x104] ss:$16 sm:$0x3] %vm13_vm0, %v1232_v49  }
 0x11e   :  { %5326 = vst.msk [vmem:[%s13580_s1 + $0x104] ss:$16 sm:$0xc] %vm13_vm0, %v1232_v49   ;;  %5327 = vst.msk [vmem:[%s13580_s1 + $0x104] ss:$16 sm:$0x30] %vm13_vm0, %v1232_v49  }
 0x11f   :  { %5328 = vst.msk [vmem:[%s13580_s1 + $0x104] ss:$16 sm:$0xc0] %vm13_vm0, %v1232_v49   ;;  %v8085_v51 = vld [vmem:[#allocation0 + $0x70] sm:$0xff]   ;;  %v8123_v54 = vld [vmem:[#allocation0 + $0x88] sm:$0xff]   ;;  %v8125_v55 = vld [vmem:[#allocation0 + $0x80] sm:$0xff]  }
 0x120   :  { %5337 = vst.msk [vmem:[%s13580_s1 + $0x284] ss:$16 sm:$0x3] %vm13_vm0, %v1271_v52   ;;  %5338 = vst.msk [vmem:[%s13580_s1 + $0x284] ss:$16 sm:$0xc] %vm13_vm0, %v1271_v52   ;;  %2022 = vrot.lane.b32.xlu1 %v8083_v50, %s6515_s8  ;;  %2009 = vrot.lane.b32.xlu0 %v8085_v51, %s6515_s8  ;;  %v1297_v56 = vpop.permute.xlu1 %1296   ;;  %v1284_v57 = vpop.permute.xlu0 %1283  }
 0x121   :  { %5339 = vst.msk [vmem:[%s13580_s1 + $0x284] ss:$16 sm:$0x30] %vm13_vm0, %v1271_v52   ;;  %5340 = vst.msk [vmem:[%s13580_s1 + $0x284] ss:$16 sm:$0xc0] %vm13_vm0, %v1271_v52  }
 0x122   :  { %5333 = vst.msk [vmem:[%s13580_s1 + $0x204] ss:$16 sm:$0x3] %vm13_vm0, %v1258_v53   ;;  %5334 = vst.msk [vmem:[%s13580_s1 + $0x204] ss:$16 sm:$0xc] %vm13_vm0, %v1258_v53  }
 0x123   :  { %5335 = vst.msk [vmem:[%s13580_s1 + $0x204] ss:$16 sm:$0x30] %vm13_vm0, %v1258_v53   ;;  %5336 = vst.msk [vmem:[%s13580_s1 + $0x204] ss:$16 sm:$0xc0] %vm13_vm0, %v1258_v53  }
 0x124   :  { %5345 = vst.msk [vmem:[%s13580_s1 + $0x384] ss:$16 sm:$0x3] %vm13_vm0, %v1297_v56   ;;  %5346 = vst.msk [vmem:[%s13580_s1 + $0x384] ss:$16 sm:$0xc] %vm13_vm0, %v1297_v56   ;;  %2048 = vrot.lane.b32.xlu1 %v8123_v54, %s6515_s8  ;;  %2035 = vrot.lane.b32.xlu0 %v8125_v55, %s6515_s8  ;;  %v1323_v60 = vpop.permute.xlu1 %1322   ;;  %v1310_v61 = vpop.permute.xlu0 %1309  }
 0x125   :  { %5347 = vst.msk [vmem:[%s13580_s1 + $0x384] ss:$16 sm:$0x30] %vm13_vm0, %v1297_v56   ;;  %5348 = vst.msk [vmem:[%s13580_s1 + $0x384] ss:$16 sm:$0xc0] %vm13_vm0, %v1297_v56  }
 0x126   :  { %5341 = vst.msk [vmem:[%s13580_s1 + $0x304] ss:$16 sm:$0x3] %vm13_vm0, %v1284_v57   ;;  %5342 = vst.msk [vmem:[%s13580_s1 + $0x304] ss:$16 sm:$0xc] %vm13_vm0, %v1284_v57  }
 0x127   :  { %5343 = vst.msk [vmem:[%s13580_s1 + $0x304] ss:$16 sm:$0x30] %vm13_vm0, %v1284_v57   ;;  %5344 = vst.msk [vmem:[%s13580_s1 + $0x304] ss:$16 sm:$0xc0] %vm13_vm0, %v1284_v57  }
 0x128   :  { %v8163_v58 = vld [vmem:[#allocation0 + $0x98] sm:$0xff]   ;;  %v8165_v59 = vld [vmem:[#allocation0 + $0x90] sm:$0xff]   ;;  %5353 = vst.msk [vmem:[%s13580_s1 + $0x484] ss:$16 sm:$0x3] %vm13_vm0, %v1323_v60   ;;  %v8203_v62 = vld [vmem:[#allocation0 + $0xa8] sm:$0xff]   ;;  %v1349_v1 = vpop.permute.xlu1 %1348   ;;  %v1336_v3 = vpop.permute.xlu0 %1335  }
 0x129   :  { %5354 = vst.msk [vmem:[%s13580_s1 + $0x484] ss:$16 sm:$0xc] %vm13_vm0, %v1323_v60   ;;  %5355 = vst.msk [vmem:[%s13580_s1 + $0x484] ss:$16 sm:$0x30] %vm13_vm0, %v1323_v60   ;;  %2074 = vrot.lane.b32.xlu1 %v8163_v58, %s6515_s8  ;;  %2061 = vrot.lane.b32.xlu0 %v8165_v59, %s6515_s8 }
 0x12a   :  { %5356 = vst.msk [vmem:[%s13580_s1 + $0x484] ss:$16 sm:$0xc0] %vm13_vm0, %v1323_v60   ;;  %5349 = vst.msk [vmem:[%s13580_s1 + $0x404] ss:$16 sm:$0x3] %vm13_vm0, %v1310_v61  }
 0x12b   :  { %5350 = vst.msk [vmem:[%s13580_s1 + $0x404] ss:$16 sm:$0xc] %vm13_vm0, %v1310_v61   ;;  %5351 = vst.msk [vmem:[%s13580_s1 + $0x404] ss:$16 sm:$0x30] %vm13_vm0, %v1310_v61  }
 0x12c   :  { %5352 = vst.msk [vmem:[%s13580_s1 + $0x404] ss:$16 sm:$0xc0] %vm13_vm0, %v1310_v61   ;;  %v8205_v63 = vld [vmem:[#allocation0 + $0xa0] sm:$0xff]   ;;  %v8243_v0 = vld [vmem:[#allocation0 + $0xb8] sm:$0xff]   ;;  %v8245_v2 = vld [vmem:[#allocation0 + $0xb0] sm:$0xff]   ;;  %v1375_v4 = vpop.permute.xlu1 %1374   ;;  %v1362_v5 = vpop.permute.xlu0 %1361  }
 0x12d   :  { %5361 = vst.msk [vmem:[%s13580_s1 + $0x584] ss:$16 sm:$0x3] %vm13_vm0, %v1349_v1   ;;  %5362 = vst.msk [vmem:[%s13580_s1 + $0x584] ss:$16 sm:$0xc] %vm13_vm0, %v1349_v1   ;;  %2100 = vrot.lane.b32.xlu1 %v8203_v62, %s6515_s8  ;;  %2087 = vrot.lane.b32.xlu0 %v8205_v63, %s6515_s8 }
 0x12e   :  { %5363 = vst.msk [vmem:[%s13580_s1 + $0x584] ss:$16 sm:$0x30] %vm13_vm0, %v1349_v1   ;;  %5364 = vst.msk [vmem:[%s13580_s1 + $0x584] ss:$16 sm:$0xc0] %vm13_vm0, %v1349_v1  }
 0x12f   :  { %5357 = vst.msk [vmem:[%s13580_s1 + $0x504] ss:$16 sm:$0x3] %vm13_vm0, %v1336_v3   ;;  %5358 = vst.msk [vmem:[%s13580_s1 + $0x504] ss:$16 sm:$0xc] %vm13_vm0, %v1336_v3  }
 0x130   :  { %5359 = vst.msk [vmem:[%s13580_s1 + $0x504] ss:$16 sm:$0x30] %vm13_vm0, %v1336_v3   ;;  %5360 = vst.msk [vmem:[%s13580_s1 + $0x504] ss:$16 sm:$0xc0] %vm13_vm0, %v1336_v3   ;;  %v1401_v6 = vpop.permute.xlu1 %1400   ;;  %v1388_v7 = vpop.permute.xlu0 %1387  }
 0x131   :  { %5369 = vst.msk [vmem:[%s13580_s1 + $0x684] ss:$16 sm:$0x3] %vm13_vm0, %v1375_v4   ;;  %5370 = vst.msk [vmem:[%s13580_s1 + $0x684] ss:$16 sm:$0xc] %vm13_vm0, %v1375_v4   ;;  %2126 = vrot.lane.b32.xlu1 %v8243_v0, %s6515_s8  ;;  %2113 = vrot.lane.b32.xlu0 %v8245_v2, %s6515_s8 }
 0x132   :  { %5371 = vst.msk [vmem:[%s13580_s1 + $0x684] ss:$16 sm:$0x30] %vm13_vm0, %v1375_v4   ;;  %5372 = vst.msk [vmem:[%s13580_s1 + $0x684] ss:$16 sm:$0xc0] %vm13_vm0, %v1375_v4  }
 0x133   :  { %5365 = vst.msk [vmem:[%s13580_s1 + $0x604] ss:$16 sm:$0x3] %vm13_vm0, %v1362_v5   ;;  %5366 = vst.msk [vmem:[%s13580_s1 + $0x604] ss:$16 sm:$0xc] %vm13_vm0, %v1362_v5  }
 0x134   :  { %5367 = vst.msk [vmem:[%s13580_s1 + $0x604] ss:$16 sm:$0x30] %vm13_vm0, %v1362_v5   ;;  %5368 = vst.msk [vmem:[%s13580_s1 + $0x604] ss:$16 sm:$0xc0] %vm13_vm0, %v1362_v5   ;;  %v1427_v8 = vpop.permute.xlu1 %1426   ;;  %v1414_v9 = vpop.permute.xlu0 %1413  }
 0x135   :  { %5377 = vst.msk [vmem:[%s13580_s1 + $0x784] ss:$16 sm:$0x3] %vm13_vm0, %v1401_v6   ;;  %5378 = vst.msk [vmem:[%s13580_s1 + $0x784] ss:$16 sm:$0xc] %vm13_vm0, %v1401_v6   ;;  %2151 = vrot.lane.b32.xlu1 %v7803_v22, %s6516_s25  ;;  %2138 = vrot.lane.b32.xlu0 %v7805_v23, %s6516_s25 }
 0x136   :  { %5379 = vst.msk [vmem:[%s13580_s1 + $0x784] ss:$16 sm:$0x30] %vm13_vm0, %v1401_v6   ;;  %5380 = vst.msk [vmem:[%s13580_s1 + $0x784] ss:$16 sm:$0xc0] %vm13_vm0, %v1401_v6  }
 0x137   :  { %5373 = vst.msk [vmem:[%s13580_s1 + $0x704] ss:$16 sm:$0x3] %vm13_vm0, %v1388_v7   ;;  %5374 = vst.msk [vmem:[%s13580_s1 + $0x704] ss:$16 sm:$0xc] %vm13_vm0, %v1388_v7  }
 0x138   :  { %5375 = vst.msk [vmem:[%s13580_s1 + $0x704] ss:$16 sm:$0x30] %vm13_vm0, %v1388_v7   ;;  %5376 = vst.msk [vmem:[%s13580_s1 + $0x704] ss:$16 sm:$0xc0] %vm13_vm0, %v1388_v7   ;;  %v1453_v10 = vpop.permute.xlu1 %1452   ;;  %v1440_v11 = vpop.permute.xlu0 %1439  }
 0x139   :  { %5385 = vst.msk [vmem:[%s13580_s1 + $0x884] ss:$16 sm:$0x3] %vm13_vm0, %v1427_v8   ;;  %5386 = vst.msk [vmem:[%s13580_s1 + $0x884] ss:$16 sm:$0xc] %vm13_vm0, %v1427_v8   ;;  %2177 = vrot.lane.b32.xlu1 %v7843_v26, %s6516_s25  ;;  %2164 = vrot.lane.b32.xlu0 %v7845_v27, %s6516_s25 }
 0x13a   :  { %5387 = vst.msk [vmem:[%s13580_s1 + $0x884] ss:$16 sm:$0x30] %vm13_vm0, %v1427_v8   ;;  %5388 = vst.msk [vmem:[%s13580_s1 + $0x884] ss:$16 sm:$0xc0] %vm13_vm0, %v1427_v8  }
 0x13b   :  { %5381 = vst.msk [vmem:[%s13580_s1 + $0x804] ss:$16 sm:$0x3] %vm13_vm0, %v1414_v9   ;;  %5382 = vst.msk [vmem:[%s13580_s1 + $0x804] ss:$16 sm:$0xc] %vm13_vm0, %v1414_v9  }
 0x13c   :  { %5383 = vst.msk [vmem:[%s13580_s1 + $0x804] ss:$16 sm:$0x30] %vm13_vm0, %v1414_v9   ;;  %5384 = vst.msk [vmem:[%s13580_s1 + $0x804] ss:$16 sm:$0xc0] %vm13_vm0, %v1414_v9   ;;  %v1479_v12 = vpop.permute.xlu1 %1478   ;;  %v1466_v13 = vpop.permute.xlu0 %1465  }
 0x13d   :  { %5393 = vst.msk [vmem:[%s13580_s1 + $0x984] ss:$16 sm:$0x3] %vm13_vm0, %v1453_v10   ;;  %5394 = vst.msk [vmem:[%s13580_s1 + $0x984] ss:$16 sm:$0xc] %vm13_vm0, %v1453_v10   ;;  %2203 = vrot.lane.b32.xlu1 %v7883_v30, %s6516_s25  ;;  %2190 = vrot.lane.b32.xlu0 %v7885_v31, %s6516_s25 }
 0x13e   :  { %5395 = vst.msk [vmem:[%s13580_s1 + $0x984] ss:$16 sm:$0x30] %vm13_vm0, %v1453_v10   ;;  %5396 = vst.msk [vmem:[%s13580_s1 + $0x984] ss:$16 sm:$0xc0] %vm13_vm0, %v1453_v10  }
 0x13f   :  { %5389 = vst.msk [vmem:[%s13580_s1 + $0x904] ss:$16 sm:$0x3] %vm13_vm0, %v1440_v11   ;;  %5390 = vst.msk [vmem:[%s13580_s1 + $0x904] ss:$16 sm:$0xc] %vm13_vm0, %v1440_v11  }
 0x140   :  { %5391 = vst.msk [vmem:[%s13580_s1 + $0x904] ss:$16 sm:$0x30] %vm13_vm0, %v1440_v11   ;;  %5392 = vst.msk [vmem:[%s13580_s1 + $0x904] ss:$16 sm:$0xc0] %vm13_vm0, %v1440_v11   ;;  %v1505_v14 = vpop.permute.xlu1 %1504   ;;  %v1492_v15 = vpop.permute.xlu0 %1491  }
 0x141   :  { %5401 = vst.msk [vmem:[%s13580_s1 + $0xa84] ss:$16 sm:$0x3] %vm13_vm0, %v1479_v12   ;;  %5402 = vst.msk [vmem:[%s13580_s1 + $0xa84] ss:$16 sm:$0xc] %vm13_vm0, %v1479_v12   ;;  %2229 = vrot.lane.b32.xlu1 %v7923_v34, %s6516_s25  ;;  %2216 = vrot.lane.b32.xlu0 %v7925_v35, %s6516_s25 }
 0x142   :  { %5403 = vst.msk [vmem:[%s13580_s1 + $0xa84] ss:$16 sm:$0x30] %vm13_vm0, %v1479_v12   ;;  %5404 = vst.msk [vmem:[%s13580_s1 + $0xa84] ss:$16 sm:$0xc0] %vm13_vm0, %v1479_v12  }
 0x143   :  { %5397 = vst.msk [vmem:[%s13580_s1 + $0xa04] ss:$16 sm:$0x3] %vm13_vm0, %v1466_v13   ;;  %5398 = vst.msk [vmem:[%s13580_s1 + $0xa04] ss:$16 sm:$0xc] %vm13_vm0, %v1466_v13  }
 0x144   :  { %5399 = vst.msk [vmem:[%s13580_s1 + $0xa04] ss:$16 sm:$0x30] %vm13_vm0, %v1466_v13   ;;  %5400 = vst.msk [vmem:[%s13580_s1 + $0xa04] ss:$16 sm:$0xc0] %vm13_vm0, %v1466_v13   ;;  %v1530_v16 = vpop.permute.xlu1 %1529   ;;  %v1517_v17 = vpop.permute.xlu0 %1516  }
 0x145   :  { %5409 = vst.msk [vmem:[%s13580_s1 + $0xb84] ss:$16 sm:$0x3] %vm13_vm0, %v1505_v14   ;;  %5410 = vst.msk [vmem:[%s13580_s1 + $0xb84] ss:$16 sm:$0xc] %vm13_vm0, %v1505_v14   ;;  %2255 = vrot.lane.b32.xlu1 %v7963_v38, %s6516_s25  ;;  %2242 = vrot.lane.b32.xlu0 %v7965_v39, %s6516_s25 }
 0x146   :  { %5411 = vst.msk [vmem:[%s13580_s1 + $0xb84] ss:$16 sm:$0x30] %vm13_vm0, %v1505_v14   ;;  %5412 = vst.msk [vmem:[%s13580_s1 + $0xb84] ss:$16 sm:$0xc0] %vm13_vm0, %v1505_v14  }
 0x147   :  { %5405 = vst.msk [vmem:[%s13580_s1 + $0xb04] ss:$16 sm:$0x3] %vm13_vm0, %v1492_v15   ;;  %5406 = vst.msk [vmem:[%s13580_s1 + $0xb04] ss:$16 sm:$0xc] %vm13_vm0, %v1492_v15  }
 0x148   :  { %5407 = vst.msk [vmem:[%s13580_s1 + $0xb04] ss:$16 sm:$0x30] %vm13_vm0, %v1492_v15   ;;  %5408 = vst.msk [vmem:[%s13580_s1 + $0xb04] ss:$16 sm:$0xc0] %vm13_vm0, %v1492_v15   ;;  %v1556_v18 = vpop.permute.xlu1 %1555   ;;  %v1543_v19 = vpop.permute.xlu0 %1542  }
 0x149   :  { %5417 = vst.msk [vmem:[%s13580_s1 + $0x85] ss:$16 sm:$0x3] %vm13_vm0, %v1530_v16   ;;  %5418 = vst.msk [vmem:[%s13580_s1 + $0x85] ss:$16 sm:$0xc] %vm13_vm0, %v1530_v16   ;;  %2281 = vrot.lane.b32.xlu1 %v8003_v42, %s6516_s25  ;;  %2268 = vrot.lane.b32.xlu0 %v8005_v43, %s6516_s25 }
 0x14a   :  { %5419 = vst.msk [vmem:[%s13580_s1 + $0x85] ss:$16 sm:$0x30] %vm13_vm0, %v1530_v16   ;;  %5420 = vst.msk [vmem:[%s13580_s1 + $0x85] ss:$16 sm:$0xc0] %vm13_vm0, %v1530_v16  }
 0x14b   :  { %5413 = vst.msk [vmem:[%s13580_s1 + $0x5] ss:$16 sm:$0x3] %vm13_vm0, %v1517_v17   ;;  %5414 = vst.msk [vmem:[%s13580_s1 + $0x5] ss:$16 sm:$0xc] %vm13_vm0, %v1517_v17  }
 0x14c   :  { %5415 = vst.msk [vmem:[%s13580_s1 + $0x5] ss:$16 sm:$0x30] %vm13_vm0, %v1517_v17   ;;  %5416 = vst.msk [vmem:[%s13580_s1 + $0x5] ss:$16 sm:$0xc0] %vm13_vm0, %v1517_v17   ;;  %v1582_v20 = vpop.permute.xlu1 %1581   ;;  %v1569_v21 = vpop.permute.xlu0 %1568  }
 0x14d   :  { %5425 = vst.msk [vmem:[%s13580_s1 + $0x185] ss:$16 sm:$0x3] %vm13_vm0, %v1556_v18   ;;  %5426 = vst.msk [vmem:[%s13580_s1 + $0x185] ss:$16 sm:$0xc] %vm13_vm0, %v1556_v18   ;;  %2307 = vrot.lane.b32.xlu1 %v8043_v46, %s6516_s25  ;;  %2294 = vrot.lane.b32.xlu0 %v8045_v47, %s6516_s25 }
 0x14e   :  { %5427 = vst.msk [vmem:[%s13580_s1 + $0x185] ss:$16 sm:$0x30] %vm13_vm0, %v1556_v18   ;;  %5428 = vst.msk [vmem:[%s13580_s1 + $0x185] ss:$16 sm:$0xc0] %vm13_vm0, %v1556_v18  }
 0x14f   :  { %5421 = vst.msk [vmem:[%s13580_s1 + $0x105] ss:$16 sm:$0x3] %vm13_vm0, %v1543_v19   ;;  %5422 = vst.msk [vmem:[%s13580_s1 + $0x105] ss:$16 sm:$0xc] %vm13_vm0, %v1543_v19  }
 0x150   :  { %5423 = vst.msk [vmem:[%s13580_s1 + $0x105] ss:$16 sm:$0x30] %vm13_vm0, %v1543_v19   ;;  %5424 = vst.msk [vmem:[%s13580_s1 + $0x105] ss:$16 sm:$0xc0] %vm13_vm0, %v1543_v19   ;;  %v1608_v24 = vpop.permute.xlu1 %1607   ;;  %v1595_v25 = vpop.permute.xlu0 %1594  }
 0x151   :  { %5433 = vst.msk [vmem:[%s13580_s1 + $0x285] ss:$16 sm:$0x3] %vm13_vm0, %v1582_v20   ;;  %5434 = vst.msk [vmem:[%s13580_s1 + $0x285] ss:$16 sm:$0xc] %vm13_vm0, %v1582_v20   ;;  %2333 = vrot.lane.b32.xlu1 %v8083_v50, %s6516_s25  ;;  %2320 = vrot.lane.b32.xlu0 %v8085_v51, %s6516_s25 }
 0x152   :  { %5435 = vst.msk [vmem:[%s13580_s1 + $0x285] ss:$16 sm:$0x30] %vm13_vm0, %v1582_v20   ;;  %5436 = vst.msk [vmem:[%s13580_s1 + $0x285] ss:$16 sm:$0xc0] %vm13_vm0, %v1582_v20  }
 0x153   :  { %5429 = vst.msk [vmem:[%s13580_s1 + $0x205] ss:$16 sm:$0x3] %vm13_vm0, %v1569_v21   ;;  %5430 = vst.msk [vmem:[%s13580_s1 + $0x205] ss:$16 sm:$0xc] %vm13_vm0, %v1569_v21  }
 0x154   :  { %5431 = vst.msk [vmem:[%s13580_s1 + $0x205] ss:$16 sm:$0x30] %vm13_vm0, %v1569_v21   ;;  %5432 = vst.msk [vmem:[%s13580_s1 + $0x205] ss:$16 sm:$0xc0] %vm13_vm0, %v1569_v21   ;;  %v1634_v28 = vpop.permute.xlu1 %1633   ;;  %v1621_v29 = vpop.permute.xlu0 %1620  }
 0x155   :  { %5441 = vst.msk [vmem:[%s13580_s1 + $0x385] ss:$16 sm:$0x3] %vm13_vm0, %v1608_v24   ;;  %5442 = vst.msk [vmem:[%s13580_s1 + $0x385] ss:$16 sm:$0xc] %vm13_vm0, %v1608_v24   ;;  %2359 = vrot.lane.b32.xlu1 %v8123_v54, %s6516_s25  ;;  %2346 = vrot.lane.b32.xlu0 %v8125_v55, %s6516_s25 }
 0x156   :  { %5443 = vst.msk [vmem:[%s13580_s1 + $0x385] ss:$16 sm:$0x30] %vm13_vm0, %v1608_v24   ;;  %5444 = vst.msk [vmem:[%s13580_s1 + $0x385] ss:$16 sm:$0xc0] %vm13_vm0, %v1608_v24  }
 0x157   :  { %5437 = vst.msk [vmem:[%s13580_s1 + $0x305] ss:$16 sm:$0x3] %vm13_vm0, %v1595_v25   ;;  %5438 = vst.msk [vmem:[%s13580_s1 + $0x305] ss:$16 sm:$0xc] %vm13_vm0, %v1595_v25  }
 0x158   :  { %5439 = vst.msk [vmem:[%s13580_s1 + $0x305] ss:$16 sm:$0x30] %vm13_vm0, %v1595_v25   ;;  %5440 = vst.msk [vmem:[%s13580_s1 + $0x305] ss:$16 sm:$0xc0] %vm13_vm0, %v1595_v25   ;;  %v1660_v32 = vpop.permute.xlu1 %1659   ;;  %v1647_v33 = vpop.permute.xlu0 %1646  }
 0x159   :  { %5449 = vst.msk [vmem:[%s13580_s1 + $0x485] ss:$16 sm:$0x3] %vm13_vm0, %v1634_v28   ;;  %5450 = vst.msk [vmem:[%s13580_s1 + $0x485] ss:$16 sm:$0xc] %vm13_vm0, %v1634_v28   ;;  %2385 = vrot.lane.b32.xlu1 %v8163_v58, %s6516_s25  ;;  %2372 = vrot.lane.b32.xlu0 %v8165_v59, %s6516_s25 }
 0x15a   :  { %5451 = vst.msk [vmem:[%s13580_s1 + $0x485] ss:$16 sm:$0x30] %vm13_vm0, %v1634_v28   ;;  %5452 = vst.msk [vmem:[%s13580_s1 + $0x485] ss:$16 sm:$0xc0] %vm13_vm0, %v1634_v28  }
 0x15b   :  { %5445 = vst.msk [vmem:[%s13580_s1 + $0x405] ss:$16 sm:$0x3] %vm13_vm0, %v1621_v29   ;;  %5446 = vst.msk [vmem:[%s13580_s1 + $0x405] ss:$16 sm:$0xc] %vm13_vm0, %v1621_v29  }
 0x15c   :  { %5447 = vst.msk [vmem:[%s13580_s1 + $0x405] ss:$16 sm:$0x30] %vm13_vm0, %v1621_v29   ;;  %5448 = vst.msk [vmem:[%s13580_s1 + $0x405] ss:$16 sm:$0xc0] %vm13_vm0, %v1621_v29   ;;  %v1686_v36 = vpop.permute.xlu1 %1685   ;;  %v1673_v37 = vpop.permute.xlu0 %1672  }
 0x15d   :  { %5457 = vst.msk [vmem:[%s13580_s1 + $0x585] ss:$16 sm:$0x3] %vm13_vm0, %v1660_v32   ;;  %5458 = vst.msk [vmem:[%s13580_s1 + $0x585] ss:$16 sm:$0xc] %vm13_vm0, %v1660_v32   ;;  %2411 = vrot.lane.b32.xlu1 %v8203_v62, %s6516_s25  ;;  %2398 = vrot.lane.b32.xlu0 %v8205_v63, %s6516_s25 }
 0x15e   :  { %5459 = vst.msk [vmem:[%s13580_s1 + $0x585] ss:$16 sm:$0x30] %vm13_vm0, %v1660_v32   ;;  %5460 = vst.msk [vmem:[%s13580_s1 + $0x585] ss:$16 sm:$0xc0] %vm13_vm0, %v1660_v32  }
 0x15f   :  { %5453 = vst.msk [vmem:[%s13580_s1 + $0x505] ss:$16 sm:$0x3] %vm13_vm0, %v1647_v33   ;;  %5454 = vst.msk [vmem:[%s13580_s1 + $0x505] ss:$16 sm:$0xc] %vm13_vm0, %v1647_v33  }
 0x160   :  { %5455 = vst.msk [vmem:[%s13580_s1 + $0x505] ss:$16 sm:$0x30] %vm13_vm0, %v1647_v33   ;;  %5456 = vst.msk [vmem:[%s13580_s1 + $0x505] ss:$16 sm:$0xc0] %vm13_vm0, %v1647_v33   ;;  %v1712_v40 = vpop.permute.xlu1 %1711   ;;  %v1699_v41 = vpop.permute.xlu0 %1698  }
 0x161   :  { %5465 = vst.msk [vmem:[%s13580_s1 + $0x685] ss:$16 sm:$0x3] %vm13_vm0, %v1686_v36   ;;  %5466 = vst.msk [vmem:[%s13580_s1 + $0x685] ss:$16 sm:$0xc] %vm13_vm0, %v1686_v36   ;;  %2437 = vrot.lane.b32.xlu1 %v8243_v0, %s6516_s25  ;;  %2424 = vrot.lane.b32.xlu0 %v8245_v2, %s6516_s25 }
 0x162   :  { %5467 = vst.msk [vmem:[%s13580_s1 + $0x685] ss:$16 sm:$0x30] %vm13_vm0, %v1686_v36   ;;  %5468 = vst.msk [vmem:[%s13580_s1 + $0x685] ss:$16 sm:$0xc0] %vm13_vm0, %v1686_v36  }
 0x163   :  { %5461 = vst.msk [vmem:[%s13580_s1 + $0x605] ss:$16 sm:$0x3] %vm13_vm0, %v1673_v37   ;;  %5462 = vst.msk [vmem:[%s13580_s1 + $0x605] ss:$16 sm:$0xc] %vm13_vm0, %v1673_v37  }
 0x164   :  { %5463 = vst.msk [vmem:[%s13580_s1 + $0x605] ss:$16 sm:$0x30] %vm13_vm0, %v1673_v37   ;;  %5464 = vst.msk [vmem:[%s13580_s1 + $0x605] ss:$16 sm:$0xc0] %vm13_vm0, %v1673_v37   ;;  %v1738_v44 = vpop.permute.xlu1 %1737   ;;  %v1725_v45 = vpop.permute.xlu0 %1724  }
 0x165   :  { %5473 = vst.msk [vmem:[%s13580_s1 + $0x785] ss:$16 sm:$0x3] %vm13_vm0, %v1712_v40   ;;  %5474 = vst.msk [vmem:[%s13580_s1 + $0x785] ss:$16 sm:$0xc] %vm13_vm0, %v1712_v40   ;;  %2462 = vrot.lane.b32.xlu1 %v7803_v22, %s6517_s14  ;;  %2449 = vrot.lane.b32.xlu0 %v7805_v23, %s6517_s14 }
 0x166   :  { %5475 = vst.msk [vmem:[%s13580_s1 + $0x785] ss:$16 sm:$0x30] %vm13_vm0, %v1712_v40   ;;  %5476 = vst.msk [vmem:[%s13580_s1 + $0x785] ss:$16 sm:$0xc0] %vm13_vm0, %v1712_v40  }
 0x167   :  { %5469 = vst.msk [vmem:[%s13580_s1 + $0x705] ss:$16 sm:$0x3] %vm13_vm0, %v1699_v41   ;;  %5470 = vst.msk [vmem:[%s13580_s1 + $0x705] ss:$16 sm:$0xc] %vm13_vm0, %v1699_v41  }
 0x168   :  { %5471 = vst.msk [vmem:[%s13580_s1 + $0x705] ss:$16 sm:$0x30] %vm13_vm0, %v1699_v41   ;;  %5472 = vst.msk [vmem:[%s13580_s1 + $0x705] ss:$16 sm:$0xc0] %vm13_vm0, %v1699_v41   ;;  %v1764_v48 = vpop.permute.xlu1 %1763   ;;  %v1751_v49 = vpop.permute.xlu0 %1750  }
 0x169   :  { %5481 = vst.msk [vmem:[%s13580_s1 + $0x885] ss:$16 sm:$0x3] %vm13_vm0, %v1738_v44   ;;  %5482 = vst.msk [vmem:[%s13580_s1 + $0x885] ss:$16 sm:$0xc] %vm13_vm0, %v1738_v44   ;;  %2488 = vrot.lane.b32.xlu1 %v7843_v26, %s6517_s14  ;;  %2475 = vrot.lane.b32.xlu0 %v7845_v27, %s6517_s14 }
 0x16a   :  { %5483 = vst.msk [vmem:[%s13580_s1 + $0x885] ss:$16 sm:$0x30] %vm13_vm0, %v1738_v44   ;;  %5484 = vst.msk [vmem:[%s13580_s1 + $0x885] ss:$16 sm:$0xc0] %vm13_vm0, %v1738_v44  }
 0x16b   :  { %5477 = vst.msk [vmem:[%s13580_s1 + $0x805] ss:$16 sm:$0x3] %vm13_vm0, %v1725_v45   ;;  %5478 = vst.msk [vmem:[%s13580_s1 + $0x805] ss:$16 sm:$0xc] %vm13_vm0, %v1725_v45  }
 0x16c   :  { %5479 = vst.msk [vmem:[%s13580_s1 + $0x805] ss:$16 sm:$0x30] %vm13_vm0, %v1725_v45   ;;  %5480 = vst.msk [vmem:[%s13580_s1 + $0x805] ss:$16 sm:$0xc0] %vm13_vm0, %v1725_v45   ;;  %v1790_v52 = vpop.permute.xlu1 %1789   ;;  %v1777_v53 = vpop.permute.xlu0 %1776  }
 0x16d   :  { %5489 = vst.msk [vmem:[%s13580_s1 + $0x985] ss:$16 sm:$0x3] %vm13_vm0, %v1764_v48   ;;  %5490 = vst.msk [vmem:[%s13580_s1 + $0x985] ss:$16 sm:$0xc] %vm13_vm0, %v1764_v48   ;;  %2514 = vrot.lane.b32.xlu1 %v7883_v30, %s6517_s14  ;;  %2501 = vrot.lane.b32.xlu0 %v7885_v31, %s6517_s14 }
 0x16e   :  { %5491 = vst.msk [vmem:[%s13580_s1 + $0x985] ss:$16 sm:$0x30] %vm13_vm0, %v1764_v48   ;;  %5492 = vst.msk [vmem:[%s13580_s1 + $0x985] ss:$16 sm:$0xc0] %vm13_vm0, %v1764_v48  }
 0x16f   :  { %5485 = vst.msk [vmem:[%s13580_s1 + $0x905] ss:$16 sm:$0x3] %vm13_vm0, %v1751_v49   ;;  %5486 = vst.msk [vmem:[%s13580_s1 + $0x905] ss:$16 sm:$0xc] %vm13_vm0, %v1751_v49  }
 0x170   :  { %5487 = vst.msk [vmem:[%s13580_s1 + $0x905] ss:$16 sm:$0x30] %vm13_vm0, %v1751_v49   ;;  %5488 = vst.msk [vmem:[%s13580_s1 + $0x905] ss:$16 sm:$0xc0] %vm13_vm0, %v1751_v49   ;;  %v1816_v56 = vpop.permute.xlu1 %1815   ;;  %v1803_v57 = vpop.permute.xlu0 %1802  }
 0x171   :  { %5497 = vst.msk [vmem:[%s13580_s1 + $0xa85] ss:$16 sm:$0x3] %vm13_vm0, %v1790_v52   ;;  %5498 = vst.msk [vmem:[%s13580_s1 + $0xa85] ss:$16 sm:$0xc] %vm13_vm0, %v1790_v52   ;;  %2540 = vrot.lane.b32.xlu1 %v7923_v34, %s6517_s14  ;;  %2527 = vrot.lane.b32.xlu0 %v7925_v35, %s6517_s14 }
 0x172   :  { %5499 = vst.msk [vmem:[%s13580_s1 + $0xa85] ss:$16 sm:$0x30] %vm13_vm0, %v1790_v52   ;;  %5500 = vst.msk [vmem:[%s13580_s1 + $0xa85] ss:$16 sm:$0xc0] %vm13_vm0, %v1790_v52  }
 0x173   :  { %5493 = vst.msk [vmem:[%s13580_s1 + $0xa05] ss:$16 sm:$0x3] %vm13_vm0, %v1777_v53   ;;  %5494 = vst.msk [vmem:[%s13580_s1 + $0xa05] ss:$16 sm:$0xc] %vm13_vm0, %v1777_v53  }
 0x174   :  { %5495 = vst.msk [vmem:[%s13580_s1 + $0xa05] ss:$16 sm:$0x30] %vm13_vm0, %v1777_v53   ;;  %5496 = vst.msk [vmem:[%s13580_s1 + $0xa05] ss:$16 sm:$0xc0] %vm13_vm0, %v1777_v53   ;;  %v1841_v60 = vpop.permute.xlu1 %1840   ;;  %v1828_v61 = vpop.permute.xlu0 %1827  }
 0x175   :  { %5505 = vst.msk [vmem:[%s13580_s1 + $0xb85] ss:$16 sm:$0x3] %vm13_vm0, %v1816_v56   ;;  %5506 = vst.msk [vmem:[%s13580_s1 + $0xb85] ss:$16 sm:$0xc] %vm13_vm0, %v1816_v56   ;;  %2566 = vrot.lane.b32.xlu1 %v7963_v38, %s6517_s14  ;;  %2553 = vrot.lane.b32.xlu0 %v7965_v39, %s6517_s14 }
 0x176   :  { %5507 = vst.msk [vmem:[%s13580_s1 + $0xb85] ss:$16 sm:$0x30] %vm13_vm0, %v1816_v56   ;;  %5508 = vst.msk [vmem:[%s13580_s1 + $0xb85] ss:$16 sm:$0xc0] %vm13_vm0, %v1816_v56  }
 0x177   :  { %5501 = vst.msk [vmem:[%s13580_s1 + $0xb05] ss:$16 sm:$0x3] %vm13_vm0, %v1803_v57   ;;  %5502 = vst.msk [vmem:[%s13580_s1 + $0xb05] ss:$16 sm:$0xc] %vm13_vm0, %v1803_v57  }
 0x178   :  { %5503 = vst.msk [vmem:[%s13580_s1 + $0xb05] ss:$16 sm:$0x30] %vm13_vm0, %v1803_v57   ;;  %5504 = vst.msk [vmem:[%s13580_s1 + $0xb05] ss:$16 sm:$0xc0] %vm13_vm0, %v1803_v57   ;;  %v1867_v1 = vpop.permute.xlu1 %1866   ;;  %v1854_v3 = vpop.permute.xlu0 %1853  }
 0x179   :  { %5513 = vst.msk [vmem:[%s13580_s1 + $0x86] ss:$16 sm:$0x3] %vm13_vm0, %v1841_v60   ;;  %5514 = vst.msk [vmem:[%s13580_s1 + $0x86] ss:$16 sm:$0xc] %vm13_vm0, %v1841_v60   ;;  %2592 = vrot.lane.b32.xlu1 %v8003_v42, %s6517_s14  ;;  %2579 = vrot.lane.b32.xlu0 %v8005_v43, %s6517_s14 }
 0x17a   :  { %5515 = vst.msk [vmem:[%s13580_s1 + $0x86] ss:$16 sm:$0x30] %vm13_vm0, %v1841_v60   ;;  %5516 = vst.msk [vmem:[%s13580_s1 + $0x86] ss:$16 sm:$0xc0] %vm13_vm0, %v1841_v60  }
 0x17b   :  { %5509 = vst.msk [vmem:[%s13580_s1 + $0x6] ss:$16 sm:$0x3] %vm13_vm0, %v1828_v61   ;;  %5510 = vst.msk [vmem:[%s13580_s1 + $0x6] ss:$16 sm:$0xc] %vm13_vm0, %v1828_v61  }
 0x17c   :  { %5511 = vst.msk [vmem:[%s13580_s1 + $0x6] ss:$16 sm:$0x30] %vm13_vm0, %v1828_v61   ;;  %5512 = vst.msk [vmem:[%s13580_s1 + $0x6] ss:$16 sm:$0xc0] %vm13_vm0, %v1828_v61   ;;  %v1893_v4 = vpop.permute.xlu1 %1892   ;;  %v1880_v5 = vpop.permute.xlu0 %1879  }
 0x17d   :  { %5521 = vst.msk [vmem:[%s13580_s1 + $0x186] ss:$16 sm:$0x3] %vm13_vm0, %v1867_v1   ;;  %5522 = vst.msk [vmem:[%s13580_s1 + $0x186] ss:$16 sm:$0xc] %vm13_vm0, %v1867_v1   ;;  %2618 = vrot.lane.b32.xlu1 %v8043_v46, %s6517_s14  ;;  %2605 = vrot.lane.b32.xlu0 %v8045_v47, %s6517_s14 }
 0x17e   :  { %5523 = vst.msk [vmem:[%s13580_s1 + $0x186] ss:$16 sm:$0x30] %vm13_vm0, %v1867_v1   ;;  %5524 = vst.msk [vmem:[%s13580_s1 + $0x186] ss:$16 sm:$0xc0] %vm13_vm0, %v1867_v1  }
 0x17f   :  { %5517 = vst.msk [vmem:[%s13580_s1 + $0x106] ss:$16 sm:$0x3] %vm13_vm0, %v1854_v3   ;;  %5518 = vst.msk [vmem:[%s13580_s1 + $0x106] ss:$16 sm:$0xc] %vm13_vm0, %v1854_v3  }
 0x180   :  { %5519 = vst.msk [vmem:[%s13580_s1 + $0x106] ss:$16 sm:$0x30] %vm13_vm0, %v1854_v3   ;;  %5520 = vst.msk [vmem:[%s13580_s1 + $0x106] ss:$16 sm:$0xc0] %vm13_vm0, %v1854_v3  }
 0x181   :  { %5529 = vst.msk [vmem:[%s13580_s1 + $0x286] ss:$16 sm:$0x3] %vm13_vm0, %v1893_v4   ;;  %5530 = vst.msk [vmem:[%s13580_s1 + $0x286] ss:$16 sm:$0xc] %vm13_vm0, %v1893_v4   ;;  %2644 = vrot.lane.b32.xlu1 %v8083_v50, %s6517_s14  ;;  %2631 = vrot.lane.b32.xlu0 %v8085_v51, %s6517_s14  ;;  %v1919_v6 = vpop.permute.xlu1 %1918   ;;  %v1906_v7 = vpop.permute.xlu0 %1905  }
 0x182   :  { %5531 = vst.msk [vmem:[%s13580_s1 + $0x286] ss:$16 sm:$0x30] %vm13_vm0, %v1893_v4   ;;  %5532 = vst.msk [vmem:[%s13580_s1 + $0x286] ss:$16 sm:$0xc0] %vm13_vm0, %v1893_v4  }
 0x183   :  { %5525 = vst.msk [vmem:[%s13580_s1 + $0x206] ss:$16 sm:$0x3] %vm13_vm0, %v1880_v5   ;;  %5526 = vst.msk [vmem:[%s13580_s1 + $0x206] ss:$16 sm:$0xc] %vm13_vm0, %v1880_v5  }
 0x184   :  { %5527 = vst.msk [vmem:[%s13580_s1 + $0x206] ss:$16 sm:$0x30] %vm13_vm0, %v1880_v5   ;;  %5528 = vst.msk [vmem:[%s13580_s1 + $0x206] ss:$16 sm:$0xc0] %vm13_vm0, %v1880_v5  }
 0x185   :  { %5537 = vst.msk [vmem:[%s13580_s1 + $0x386] ss:$16 sm:$0x3] %vm13_vm0, %v1919_v6   ;;  %5538 = vst.msk [vmem:[%s13580_s1 + $0x386] ss:$16 sm:$0xc] %vm13_vm0, %v1919_v6   ;;  %2670 = vrot.lane.b32.xlu1 %v8123_v54, %s6517_s14  ;;  %2657 = vrot.lane.b32.xlu0 %v8125_v55, %s6517_s14  ;;  %v1945_v8 = vpop.permute.xlu1 %1944   ;;  %v1932_v9 = vpop.permute.xlu0 %1931  }
 0x186   :  { %5539 = vst.msk [vmem:[%s13580_s1 + $0x386] ss:$16 sm:$0x30] %vm13_vm0, %v1919_v6   ;;  %5540 = vst.msk [vmem:[%s13580_s1 + $0x386] ss:$16 sm:$0xc0] %vm13_vm0, %v1919_v6  }
 0x187   :  { %5533 = vst.msk [vmem:[%s13580_s1 + $0x306] ss:$16 sm:$0x3] %vm13_vm0, %v1906_v7   ;;  %5534 = vst.msk [vmem:[%s13580_s1 + $0x306] ss:$16 sm:$0xc] %vm13_vm0, %v1906_v7  }
 0x188   :  { %5535 = vst.msk [vmem:[%s13580_s1 + $0x306] ss:$16 sm:$0x30] %vm13_vm0, %v1906_v7   ;;  %5536 = vst.msk [vmem:[%s13580_s1 + $0x306] ss:$16 sm:$0xc0] %vm13_vm0, %v1906_v7  }
 0x189   :  { %5545 = vst.msk [vmem:[%s13580_s1 + $0x486] ss:$16 sm:$0x3] %vm13_vm0, %v1945_v8   ;;  %5546 = vst.msk [vmem:[%s13580_s1 + $0x486] ss:$16 sm:$0xc] %vm13_vm0, %v1945_v8   ;;  %2696 = vrot.lane.b32.xlu1 %v8163_v58, %s6517_s14  ;;  %2683 = vrot.lane.b32.xlu0 %v8165_v59, %s6517_s14  ;;  %v1971_v10 = vpop.permute.xlu1 %1970   ;;  %v1958_v11 = vpop.permute.xlu0 %1957  }
 0x18a   :  { %5547 = vst.msk [vmem:[%s13580_s1 + $0x486] ss:$16 sm:$0x30] %vm13_vm0, %v1945_v8   ;;  %5548 = vst.msk [vmem:[%s13580_s1 + $0x486] ss:$16 sm:$0xc0] %vm13_vm0, %v1945_v8  }
 0x18b   :  { %5541 = vst.msk [vmem:[%s13580_s1 + $0x406] ss:$16 sm:$0x3] %vm13_vm0, %v1932_v9   ;;  %5542 = vst.msk [vmem:[%s13580_s1 + $0x406] ss:$16 sm:$0xc] %vm13_vm0, %v1932_v9  }
 0x18c   :  { %5543 = vst.msk [vmem:[%s13580_s1 + $0x406] ss:$16 sm:$0x30] %vm13_vm0, %v1932_v9   ;;  %5544 = vst.msk [vmem:[%s13580_s1 + $0x406] ss:$16 sm:$0xc0] %vm13_vm0, %v1932_v9  }
 0x18d   :  { %5553 = vst.msk [vmem:[%s13580_s1 + $0x586] ss:$16 sm:$0x3] %vm13_vm0, %v1971_v10   ;;  %5554 = vst.msk [vmem:[%s13580_s1 + $0x586] ss:$16 sm:$0xc] %vm13_vm0, %v1971_v10   ;;  %2722 = vrot.lane.b32.xlu1 %v8203_v62, %s6517_s14  ;;  %2709 = vrot.lane.b32.xlu0 %v8205_v63, %s6517_s14 }
 0x18e   :  { %5555 = vst.msk [vmem:[%s13580_s1 + $0x586] ss:$16 sm:$0x30] %vm13_vm0, %v1971_v10   ;;  %5556 = vst.msk [vmem:[%s13580_s1 + $0x586] ss:$16 sm:$0xc0] %vm13_vm0, %v1971_v10   ;;  %v1997_v12 = vpop.permute.xlu1 %1996   ;;  %v1984_v13 = vpop.permute.xlu0 %1983  }
 0x18f   :  { %5549 = vst.msk [vmem:[%s13580_s1 + $0x506] ss:$16 sm:$0x3] %vm13_vm0, %v1958_v11   ;;  %5550 = vst.msk [vmem:[%s13580_s1 + $0x506] ss:$16 sm:$0xc] %vm13_vm0, %v1958_v11  }
 0x190   :  { %5551 = vst.msk [vmem:[%s13580_s1 + $0x506] ss:$16 sm:$0x30] %vm13_vm0, %v1958_v11   ;;  %5552 = vst.msk [vmem:[%s13580_s1 + $0x506] ss:$16 sm:$0xc0] %vm13_vm0, %v1958_v11  }
 0x191   :  { %5561 = vst.msk [vmem:[%s13580_s1 + $0x686] ss:$16 sm:$0x3] %vm13_vm0, %v1997_v12   ;;  %5562 = vst.msk [vmem:[%s13580_s1 + $0x686] ss:$16 sm:$0xc] %vm13_vm0, %v1997_v12   ;;  %2748 = vrot.lane.b32.xlu1 %v8243_v0, %s6517_s14  ;;  %2735 = vrot.lane.b32.xlu0 %v8245_v2, %s6517_s14 }
 0x192   :  { %5563 = vst.msk [vmem:[%s13580_s1 + $0x686] ss:$16 sm:$0x30] %vm13_vm0, %v1997_v12   ;;  %5564 = vst.msk [vmem:[%s13580_s1 + $0x686] ss:$16 sm:$0xc0] %vm13_vm0, %v1997_v12   ;;  %v2023_v14 = vpop.permute.xlu1 %2022   ;;  %v2010_v15 = vpop.permute.xlu0 %2009  }
 0x193   :  { %5557 = vst.msk [vmem:[%s13580_s1 + $0x606] ss:$16 sm:$0x3] %vm13_vm0, %v1984_v13   ;;  %5558 = vst.msk [vmem:[%s13580_s1 + $0x606] ss:$16 sm:$0xc] %vm13_vm0, %v1984_v13  }
 0x194   :  { %5559 = vst.msk [vmem:[%s13580_s1 + $0x606] ss:$16 sm:$0x30] %vm13_vm0, %v1984_v13   ;;  %5560 = vst.msk [vmem:[%s13580_s1 + $0x606] ss:$16 sm:$0xc0] %vm13_vm0, %v1984_v13  }
 0x195   :  { %5569 = vst.msk [vmem:[%s13580_s1 + $0x786] ss:$16 sm:$0x3] %vm13_vm0, %v2023_v14   ;;  %5570 = vst.msk [vmem:[%s13580_s1 + $0x786] ss:$16 sm:$0xc] %vm13_vm0, %v2023_v14   ;;  %2773 = vrot.lane.b32.xlu1 %v7803_v22, %s6518_s3  ;;  %2760 = vrot.lane.b32.xlu0 %v7805_v23, %s6518_s3 }
 0x196   :  { %5571 = vst.msk [vmem:[%s13580_s1 + $0x786] ss:$16 sm:$0x30] %vm13_vm0, %v2023_v14   ;;  %5572 = vst.msk [vmem:[%s13580_s1 + $0x786] ss:$16 sm:$0xc0] %vm13_vm0, %v2023_v14   ;;  %v2049_v22 = vpop.permute.xlu1 %2048   ;;  %v2036_v23 = vpop.permute.xlu0 %2035  }
 0x197   :  { %5565 = vst.msk [vmem:[%s13580_s1 + $0x706] ss:$16 sm:$0x3] %vm13_vm0, %v2010_v15   ;;  %5566 = vst.msk [vmem:[%s13580_s1 + $0x706] ss:$16 sm:$0xc] %vm13_vm0, %v2010_v15  }
 0x198   :  { %5567 = vst.msk [vmem:[%s13580_s1 + $0x706] ss:$16 sm:$0x30] %vm13_vm0, %v2010_v15   ;;  %5568 = vst.msk [vmem:[%s13580_s1 + $0x706] ss:$16 sm:$0xc0] %vm13_vm0, %v2010_v15  }
 0x199   :  { %5577 = vst.msk [vmem:[%s13580_s1 + $0x886] ss:$16 sm:$0x3] %vm13_vm0, %v2049_v22   ;;  %5578 = vst.msk [vmem:[%s13580_s1 + $0x886] ss:$16 sm:$0xc] %vm13_vm0, %v2049_v22   ;;  %2799 = vrot.lane.b32.xlu1 %v7843_v26, %s6518_s3  ;;  %2786 = vrot.lane.b32.xlu0 %v7845_v27, %s6518_s3 }
 0x19a   :  { %5579 = vst.msk [vmem:[%s13580_s1 + $0x886] ss:$16 sm:$0x30] %vm13_vm0, %v2049_v22   ;;  %5580 = vst.msk [vmem:[%s13580_s1 + $0x886] ss:$16 sm:$0xc0] %vm13_vm0, %v2049_v22  }
 0x19b   :  { %5573 = vst.msk [vmem:[%s13580_s1 + $0x806] ss:$16 sm:$0x3] %vm13_vm0, %v2036_v23   ;;  %5574 = vst.msk [vmem:[%s13580_s1 + $0x806] ss:$16 sm:$0xc] %vm13_vm0, %v2036_v23   ;;  %v2075_v26 = vpop.permute.xlu1 %2074   ;;  %v2062_v27 = vpop.permute.xlu0 %2061  }
 0x19c   :  { %5575 = vst.msk [vmem:[%s13580_s1 + $0x806] ss:$16 sm:$0x30] %vm13_vm0, %v2036_v23   ;;  %5576 = vst.msk [vmem:[%s13580_s1 + $0x806] ss:$16 sm:$0xc0] %vm13_vm0, %v2036_v23  }
 0x19d   :  { %5585 = vst.msk [vmem:[%s13580_s1 + $0x986] ss:$16 sm:$0x3] %vm13_vm0, %v2075_v26   ;;  %5586 = vst.msk [vmem:[%s13580_s1 + $0x986] ss:$16 sm:$0xc] %vm13_vm0, %v2075_v26   ;;  %2825 = vrot.lane.b32.xlu1 %v7883_v30, %s6518_s3  ;;  %2812 = vrot.lane.b32.xlu0 %v7885_v31, %s6518_s3 }
 0x19e   :  { %5587 = vst.msk [vmem:[%s13580_s1 + $0x986] ss:$16 sm:$0x30] %vm13_vm0, %v2075_v26   ;;  %5588 = vst.msk [vmem:[%s13580_s1 + $0x986] ss:$16 sm:$0xc0] %vm13_vm0, %v2075_v26  }
 0x19f   :  { %5581 = vst.msk [vmem:[%s13580_s1 + $0x906] ss:$16 sm:$0x3] %vm13_vm0, %v2062_v27   ;;  %5582 = vst.msk [vmem:[%s13580_s1 + $0x906] ss:$16 sm:$0xc] %vm13_vm0, %v2062_v27   ;;  %v2101_v30 = vpop.permute.xlu1 %2100   ;;  %v2088_v31 = vpop.permute.xlu0 %2087  }
 0x1a0   :  { %5583 = vst.msk [vmem:[%s13580_s1 + $0x906] ss:$16 sm:$0x30] %vm13_vm0, %v2062_v27   ;;  %5584 = vst.msk [vmem:[%s13580_s1 + $0x906] ss:$16 sm:$0xc0] %vm13_vm0, %v2062_v27  }
 0x1a1   :  { %5593 = vst.msk [vmem:[%s13580_s1 + $0xa86] ss:$16 sm:$0x3] %vm13_vm0, %v2101_v30   ;;  %5594 = vst.msk [vmem:[%s13580_s1 + $0xa86] ss:$16 sm:$0xc] %vm13_vm0, %v2101_v30   ;;  %2851 = vrot.lane.b32.xlu1 %v7923_v34, %s6518_s3  ;;  %2838 = vrot.lane.b32.xlu0 %v7925_v35, %s6518_s3 }
 0x1a2   :  { %5595 = vst.msk [vmem:[%s13580_s1 + $0xa86] ss:$16 sm:$0x30] %vm13_vm0, %v2101_v30   ;;  %5596 = vst.msk [vmem:[%s13580_s1 + $0xa86] ss:$16 sm:$0xc0] %vm13_vm0, %v2101_v30  }
 0x1a3   :  { %5589 = vst.msk [vmem:[%s13580_s1 + $0xa06] ss:$16 sm:$0x3] %vm13_vm0, %v2088_v31   ;;  %5590 = vst.msk [vmem:[%s13580_s1 + $0xa06] ss:$16 sm:$0xc] %vm13_vm0, %v2088_v31   ;;  %v2127_v34 = vpop.permute.xlu1 %2126   ;;  %v2114_v35 = vpop.permute.xlu0 %2113  }
 0x1a4   :  { %5591 = vst.msk [vmem:[%s13580_s1 + $0xa06] ss:$16 sm:$0x30] %vm13_vm0, %v2088_v31   ;;  %5592 = vst.msk [vmem:[%s13580_s1 + $0xa06] ss:$16 sm:$0xc0] %vm13_vm0, %v2088_v31  }
 0x1a5   :  { %5601 = vst.msk [vmem:[%s13580_s1 + $0xb86] ss:$16 sm:$0x3] %vm13_vm0, %v2127_v34   ;;  %5602 = vst.msk [vmem:[%s13580_s1 + $0xb86] ss:$16 sm:$0xc] %vm13_vm0, %v2127_v34   ;;  %2877 = vrot.lane.b32.xlu1 %v7963_v38, %s6518_s3  ;;  %2864 = vrot.lane.b32.xlu0 %v7965_v39, %s6518_s3 }
 0x1a6   :  { %5603 = vst.msk [vmem:[%s13580_s1 + $0xb86] ss:$16 sm:$0x30] %vm13_vm0, %v2127_v34   ;;  %5604 = vst.msk [vmem:[%s13580_s1 + $0xb86] ss:$16 sm:$0xc0] %vm13_vm0, %v2127_v34  }
 0x1a7   :  { %5597 = vst.msk [vmem:[%s13580_s1 + $0xb06] ss:$16 sm:$0x3] %vm13_vm0, %v2114_v35   ;;  %5598 = vst.msk [vmem:[%s13580_s1 + $0xb06] ss:$16 sm:$0xc] %vm13_vm0, %v2114_v35   ;;  %v2152_v38 = vpop.permute.xlu1 %2151   ;;  %v2139_v39 = vpop.permute.xlu0 %2138  }
 0x1a8   :  { %5599 = vst.msk [vmem:[%s13580_s1 + $0xb06] ss:$16 sm:$0x30] %vm13_vm0, %v2114_v35   ;;  %5600 = vst.msk [vmem:[%s13580_s1 + $0xb06] ss:$16 sm:$0xc0] %vm13_vm0, %v2114_v35  }
 0x1a9   :  { %5609 = vst.msk [vmem:[%s13580_s1 + $0x87] ss:$16 sm:$0x3] %vm13_vm0, %v2152_v38   ;;  %5610 = vst.msk [vmem:[%s13580_s1 + $0x87] ss:$16 sm:$0xc] %vm13_vm0, %v2152_v38   ;;  %2903 = vrot.lane.b32.xlu1 %v8003_v42, %s6518_s3  ;;  %2890 = vrot.lane.b32.xlu0 %v8005_v43, %s6518_s3 }
 0x1aa   :  { %5611 = vst.msk [vmem:[%s13580_s1 + $0x87] ss:$16 sm:$0x30] %vm13_vm0, %v2152_v38   ;;  %5612 = vst.msk [vmem:[%s13580_s1 + $0x87] ss:$16 sm:$0xc0] %vm13_vm0, %v2152_v38  }
 0x1ab   :  { %5605 = vst.msk [vmem:[%s13580_s1 + $0x7] ss:$16 sm:$0x3] %vm13_vm0, %v2139_v39   ;;  %5606 = vst.msk [vmem:[%s13580_s1 + $0x7] ss:$16 sm:$0xc] %vm13_vm0, %v2139_v39   ;;  %v2178_v42 = vpop.permute.xlu1 %2177   ;;  %v2165_v43 = vpop.permute.xlu0 %2164  }
 0x1ac   :  { %5607 = vst.msk [vmem:[%s13580_s1 + $0x7] ss:$16 sm:$0x30] %vm13_vm0, %v2139_v39   ;;  %5608 = vst.msk [vmem:[%s13580_s1 + $0x7] ss:$16 sm:$0xc0] %vm13_vm0, %v2139_v39  }
 0x1ad   :  { %5617 = vst.msk [vmem:[%s13580_s1 + $0x187] ss:$16 sm:$0x3] %vm13_vm0, %v2178_v42   ;;  %5618 = vst.msk [vmem:[%s13580_s1 + $0x187] ss:$16 sm:$0xc] %vm13_vm0, %v2178_v42   ;;  %2929 = vrot.lane.b32.xlu1 %v8043_v46, %s6518_s3  ;;  %2916 = vrot.lane.b32.xlu0 %v8045_v47, %s6518_s3 }
 0x1ae   :  { %5619 = vst.msk [vmem:[%s13580_s1 + $0x187] ss:$16 sm:$0x30] %vm13_vm0, %v2178_v42   ;;  %5620 = vst.msk [vmem:[%s13580_s1 + $0x187] ss:$16 sm:$0xc0] %vm13_vm0, %v2178_v42  }
 0x1af   :  { %5613 = vst.msk [vmem:[%s13580_s1 + $0x107] ss:$16 sm:$0x3] %vm13_vm0, %v2165_v43   ;;  %5614 = vst.msk [vmem:[%s13580_s1 + $0x107] ss:$16 sm:$0xc] %vm13_vm0, %v2165_v43   ;;  %v2204_v46 = vpop.permute.xlu1 %2203   ;;  %v2191_v47 = vpop.permute.xlu0 %2190  }
 0x1b0   :  { %5615 = vst.msk [vmem:[%s13580_s1 + $0x107] ss:$16 sm:$0x30] %vm13_vm0, %v2165_v43   ;;  %5616 = vst.msk [vmem:[%s13580_s1 + $0x107] ss:$16 sm:$0xc0] %vm13_vm0, %v2165_v43  }
 0x1b1   :  { %5625 = vst.msk [vmem:[%s13580_s1 + $0x287] ss:$16 sm:$0x3] %vm13_vm0, %v2204_v46   ;;  %5626 = vst.msk [vmem:[%s13580_s1 + $0x287] ss:$16 sm:$0xc] %vm13_vm0, %v2204_v46   ;;  %2955 = vrot.lane.b32.xlu1 %v8083_v50, %s6518_s3  ;;  %2942 = vrot.lane.b32.xlu0 %v8085_v51, %s6518_s3 }
 0x1b2   :  { %5627 = vst.msk [vmem:[%s13580_s1 + $0x287] ss:$16 sm:$0x30] %vm13_vm0, %v2204_v46   ;;  %5628 = vst.msk [vmem:[%s13580_s1 + $0x287] ss:$16 sm:$0xc0] %vm13_vm0, %v2204_v46  }
 0x1b3   :  { %5621 = vst.msk [vmem:[%s13580_s1 + $0x207] ss:$16 sm:$0x3] %vm13_vm0, %v2191_v47   ;;  %5622 = vst.msk [vmem:[%s13580_s1 + $0x207] ss:$16 sm:$0xc] %vm13_vm0, %v2191_v47   ;;  %v2230_v50 = vpop.permute.xlu1 %2229   ;;  %v2217_v51 = vpop.permute.xlu0 %2216  }
 0x1b4   :  { %5623 = vst.msk [vmem:[%s13580_s1 + $0x207] ss:$16 sm:$0x30] %vm13_vm0, %v2191_v47   ;;  %5624 = vst.msk [vmem:[%s13580_s1 + $0x207] ss:$16 sm:$0xc0] %vm13_vm0, %v2191_v47  }
 0x1b5   :  { %5633 = vst.msk [vmem:[%s13580_s1 + $0x387] ss:$16 sm:$0x3] %vm13_vm0, %v2230_v50   ;;  %5634 = vst.msk [vmem:[%s13580_s1 + $0x387] ss:$16 sm:$0xc] %vm13_vm0, %v2230_v50   ;;  %2981 = vrot.lane.b32.xlu1 %v8123_v54, %s6518_s3  ;;  %2968 = vrot.lane.b32.xlu0 %v8125_v55, %s6518_s3 }
 0x1b6   :  { %5635 = vst.msk [vmem:[%s13580_s1 + $0x387] ss:$16 sm:$0x30] %vm13_vm0, %v2230_v50   ;;  %5636 = vst.msk [vmem:[%s13580_s1 + $0x387] ss:$16 sm:$0xc0] %vm13_vm0, %v2230_v50  }
 0x1b7   :  { %5629 = vst.msk [vmem:[%s13580_s1 + $0x307] ss:$16 sm:$0x3] %vm13_vm0, %v2217_v51   ;;  %5630 = vst.msk [vmem:[%s13580_s1 + $0x307] ss:$16 sm:$0xc] %vm13_vm0, %v2217_v51   ;;  %v2256_v54 = vpop.permute.xlu1 %2255   ;;  %v2243_v55 = vpop.permute.xlu0 %2242  }
 0x1b8   :  { %5631 = vst.msk [vmem:[%s13580_s1 + $0x307] ss:$16 sm:$0x30] %vm13_vm0, %v2217_v51   ;;  %5632 = vst.msk [vmem:[%s13580_s1 + $0x307] ss:$16 sm:$0xc0] %vm13_vm0, %v2217_v51  }
 0x1b9   :  { %5641 = vst.msk [vmem:[%s13580_s1 + $0x487] ss:$16 sm:$0x3] %vm13_vm0, %v2256_v54   ;;  %5642 = vst.msk [vmem:[%s13580_s1 + $0x487] ss:$16 sm:$0xc] %vm13_vm0, %v2256_v54   ;;  %3007 = vrot.lane.b32.xlu1 %v8163_v58, %s6518_s3  ;;  %2994 = vrot.lane.b32.xlu0 %v8165_v59, %s6518_s3 }
 0x1ba   :  { %5643 = vst.msk [vmem:[%s13580_s1 + $0x487] ss:$16 sm:$0x30] %vm13_vm0, %v2256_v54   ;;  %5644 = vst.msk [vmem:[%s13580_s1 + $0x487] ss:$16 sm:$0xc0] %vm13_vm0, %v2256_v54  }
 0x1bb   :  { %5637 = vst.msk [vmem:[%s13580_s1 + $0x407] ss:$16 sm:$0x3] %vm13_vm0, %v2243_v55   ;;  %5638 = vst.msk [vmem:[%s13580_s1 + $0x407] ss:$16 sm:$0xc] %vm13_vm0, %v2243_v55   ;;  %v2282_v58 = vpop.permute.xlu1 %2281   ;;  %v2269_v59 = vpop.permute.xlu0 %2268  }
 0x1bc   :  { %5639 = vst.msk [vmem:[%s13580_s1 + $0x407] ss:$16 sm:$0x30] %vm13_vm0, %v2243_v55   ;;  %5640 = vst.msk [vmem:[%s13580_s1 + $0x407] ss:$16 sm:$0xc0] %vm13_vm0, %v2243_v55  }
 0x1bd   :  { %5649 = vst.msk [vmem:[%s13580_s1 + $0x587] ss:$16 sm:$0x3] %vm13_vm0, %v2282_v58   ;;  %5650 = vst.msk [vmem:[%s13580_s1 + $0x587] ss:$16 sm:$0xc] %vm13_vm0, %v2282_v58   ;;  %3033 = vrot.lane.b32.xlu1 %v8203_v62, %s6518_s3  ;;  %3020 = vrot.lane.b32.xlu0 %v8205_v63, %s6518_s3 }
 0x1be   :  { %5651 = vst.msk [vmem:[%s13580_s1 + $0x587] ss:$16 sm:$0x30] %vm13_vm0, %v2282_v58   ;;  %5652 = vst.msk [vmem:[%s13580_s1 + $0x587] ss:$16 sm:$0xc0] %vm13_vm0, %v2282_v58  }
 0x1bf   :  { %5645 = vst.msk [vmem:[%s13580_s1 + $0x507] ss:$16 sm:$0x3] %vm13_vm0, %v2269_v59   ;;  %5646 = vst.msk [vmem:[%s13580_s1 + $0x507] ss:$16 sm:$0xc] %vm13_vm0, %v2269_v59   ;;  %v2308_v62 = vpop.permute.xlu1 %2307   ;;  %v2295_v63 = vpop.permute.xlu0 %2294  }
 0x1c0   :  { %5647 = vst.msk [vmem:[%s13580_s1 + $0x507] ss:$16 sm:$0x30] %vm13_vm0, %v2269_v59   ;;  %5648 = vst.msk [vmem:[%s13580_s1 + $0x507] ss:$16 sm:$0xc0] %vm13_vm0, %v2269_v59  }
 0x1c1   :  { %5657 = vst.msk [vmem:[%s13580_s1 + $0x687] ss:$16 sm:$0x3] %vm13_vm0, %v2308_v62   ;;  %5658 = vst.msk [vmem:[%s13580_s1 + $0x687] ss:$16 sm:$0xc] %vm13_vm0, %v2308_v62   ;;  %3059 = vrot.lane.b32.xlu1 %v8243_v0, %s6518_s3  ;;  %3046 = vrot.lane.b32.xlu0 %v8245_v2, %s6518_s3 }
 0x1c2   :  { %5659 = vst.msk [vmem:[%s13580_s1 + $0x687] ss:$16 sm:$0x30] %vm13_vm0, %v2308_v62   ;;  %5660 = vst.msk [vmem:[%s13580_s1 + $0x687] ss:$16 sm:$0xc0] %vm13_vm0, %v2308_v62  }
 0x1c3   :  { %5653 = vst.msk [vmem:[%s13580_s1 + $0x607] ss:$16 sm:$0x3] %vm13_vm0, %v2295_v63   ;;  %5654 = vst.msk [vmem:[%s13580_s1 + $0x607] ss:$16 sm:$0xc] %vm13_vm0, %v2295_v63   ;;  %v2334_v16 = vpop.permute.xlu1 %2333   ;;  %v2321_v17 = vpop.permute.xlu0 %2320  }
 0x1c4   :  { %5655 = vst.msk [vmem:[%s13580_s1 + $0x607] ss:$16 sm:$0x30] %vm13_vm0, %v2295_v63   ;;  %5656 = vst.msk [vmem:[%s13580_s1 + $0x607] ss:$16 sm:$0xc0] %vm13_vm0, %v2295_v63  }
 0x1c5   :  { %v9579_v0 = vld [vmem:[#allocation0 + $0x8] sm:$0xff]   ;;  %v9581_v2 = vld [vmem:[#allocation0] sm:$0xff]   ;;  %5665 = vst.msk [vmem:[%s13580_s1 + $0x787] ss:$16 sm:$0x3] %vm13_vm0, %v2334_v16   ;;  %v9619_v18 = vld [vmem:[#allocation0 + $0x18] sm:$0xff]  }
 0x1c6   :  { %5666 = vst.msk [vmem:[%s13580_s1 + $0x787] ss:$16 sm:$0xc] %vm13_vm0, %v2334_v16   ;;  %5667 = vst.msk [vmem:[%s13580_s1 + $0x787] ss:$16 sm:$0x30] %vm13_vm0, %v2334_v16   ;;  %3084 = vrot.lane.b32.xlu1 %v9579_v0, %s6519_s20  ;;  %3071 = vrot.lane.b32.xlu0 %v9581_v2, %s6519_s20 }
 0x1c7   :  { %5668 = vst.msk [vmem:[%s13580_s1 + $0x787] ss:$16 sm:$0xc0] %vm13_vm0, %v2334_v16   ;;  %5661 = vst.msk [vmem:[%s13580_s1 + $0x707] ss:$16 sm:$0x3] %vm13_vm0, %v2321_v17   ;;  %v2360_v20 = vpop.permute.xlu1 %2359   ;;  %v2347_v21 = vpop.permute.xlu0 %2346  }
 0x1c8   :  { %5662 = vst.msk [vmem:[%s13580_s1 + $0x707] ss:$16 sm:$0xc] %vm13_vm0, %v2321_v17   ;;  %5663 = vst.msk [vmem:[%s13580_s1 + $0x707] ss:$16 sm:$0x30] %vm13_vm0, %v2321_v17  }
 0x1c9   :  { %5664 = vst.msk [vmem:[%s13580_s1 + $0x707] ss:$16 sm:$0xc0] %vm13_vm0, %v2321_v17   ;;  %v9621_v19 = vld [vmem:[#allocation0 + $0x10] sm:$0xff]   ;;  %v9659_v24 = vld [vmem:[#allocation0 + $0x28] sm:$0xff]   ;;  %v9661_v25 = vld [vmem:[#allocation0 + $0x20] sm:$0xff]  }
 0x1ca   :  { %5673 = vst.msk [vmem:[%s13580_s1 + $0x887] ss:$16 sm:$0x3] %vm13_vm0, %v2360_v20   ;;  %5674 = vst.msk [vmem:[%s13580_s1 + $0x887] ss:$16 sm:$0xc] %vm13_vm0, %v2360_v20   ;;  %3110 = vrot.lane.b32.xlu1 %v9619_v18, %s6519_s20  ;;  %3097 = vrot.lane.b32.xlu0 %v9621_v19, %s6519_s20 }
 0x1cb   :  { %5675 = vst.msk [vmem:[%s13580_s1 + $0x887] ss:$16 sm:$0x30] %vm13_vm0, %v2360_v20   ;;  %5676 = vst.msk [vmem:[%s13580_s1 + $0x887] ss:$16 sm:$0xc0] %vm13_vm0, %v2360_v20   ;;  %v2386_v28 = vpop.permute.xlu1 %2385   ;;  %v2373_v29 = vpop.permute.xlu0 %2372  }
 0x1cc   :  { %5669 = vst.msk [vmem:[%s13580_s1 + $0x807] ss:$16 sm:$0x3] %vm13_vm0, %v2347_v21   ;;  %5670 = vst.msk [vmem:[%s13580_s1 + $0x807] ss:$16 sm:$0xc] %vm13_vm0, %v2347_v21  }
 0x1cd   :  { %5671 = vst.msk [vmem:[%s13580_s1 + $0x807] ss:$16 sm:$0x30] %vm13_vm0, %v2347_v21   ;;  %5672 = vst.msk [vmem:[%s13580_s1 + $0x807] ss:$16 sm:$0xc0] %vm13_vm0, %v2347_v21  }
 0x1ce   :  { %5681 = vst.msk [vmem:[%s13580_s1 + $0x987] ss:$16 sm:$0x3] %vm13_vm0, %v2386_v28   ;;  %5682 = vst.msk [vmem:[%s13580_s1 + $0x987] ss:$16 sm:$0xc] %vm13_vm0, %v2386_v28   ;;  %3136 = vrot.lane.b32.xlu1 %v9659_v24, %s6519_s20  ;;  %3123 = vrot.lane.b32.xlu0 %v9661_v25, %s6519_s20 }
 0x1cf   :  { %5683 = vst.msk [vmem:[%s13580_s1 + $0x987] ss:$16 sm:$0x30] %vm13_vm0, %v2386_v28   ;;  %5684 = vst.msk [vmem:[%s13580_s1 + $0x987] ss:$16 sm:$0xc0] %vm13_vm0, %v2386_v28   ;;  %v2412_v36 = vpop.permute.xlu1 %2411   ;;  %v2399_v37 = vpop.permute.xlu0 %2398  }
 0x1d0   :  { %5677 = vst.msk [vmem:[%s13580_s1 + $0x907] ss:$16 sm:$0x3] %vm13_vm0, %v2373_v29   ;;  %5678 = vst.msk [vmem:[%s13580_s1 + $0x907] ss:$16 sm:$0xc] %vm13_vm0, %v2373_v29  }
 0x1d1   :  { %5679 = vst.msk [vmem:[%s13580_s1 + $0x907] ss:$16 sm:$0x30] %vm13_vm0, %v2373_v29   ;;  %5680 = vst.msk [vmem:[%s13580_s1 + $0x907] ss:$16 sm:$0xc0] %vm13_vm0, %v2373_v29  }
 0x1d2   :  { %v9699_v32 = vld [vmem:[#allocation0 + $0x38] sm:$0xff]   ;;  %v9701_v33 = vld [vmem:[#allocation0 + $0x30] sm:$0xff]   ;;  %5689 = vst.msk [vmem:[%s13580_s1 + $0xa87] ss:$16 sm:$0x3] %vm13_vm0, %v2412_v36   ;;  %v9739_v40 = vld [vmem:[#allocation0 + $0x48] sm:$0xff]  }
 0x1d3   :  { %5690 = vst.msk [vmem:[%s13580_s1 + $0xa87] ss:$16 sm:$0xc] %vm13_vm0, %v2412_v36   ;;  %5691 = vst.msk [vmem:[%s13580_s1 + $0xa87] ss:$16 sm:$0x30] %vm13_vm0, %v2412_v36   ;;  %3162 = vrot.lane.b32.xlu1 %v9699_v32, %s6519_s20  ;;  %3149 = vrot.lane.b32.xlu0 %v9701_v33, %s6519_s20  ;;  %v2438_v44 = vpop.permute.xlu1 %2437   ;;  %v2425_v45 = vpop.permute.xlu0 %2424  }
 0x1d4   :  { %5692 = vst.msk [vmem:[%s13580_s1 + $0xa87] ss:$16 sm:$0xc0] %vm13_vm0, %v2412_v36   ;;  %5685 = vst.msk [vmem:[%s13580_s1 + $0xa07] ss:$16 sm:$0x3] %vm13_vm0, %v2399_v37  }
 0x1d5   :  { %5686 = vst.msk [vmem:[%s13580_s1 + $0xa07] ss:$16 sm:$0xc] %vm13_vm0, %v2399_v37   ;;  %5687 = vst.msk [vmem:[%s13580_s1 + $0xa07] ss:$16 sm:$0x30] %vm13_vm0, %v2399_v37  }
 0x1d6   :  { %5688 = vst.msk [vmem:[%s13580_s1 + $0xa07] ss:$16 sm:$0xc0] %vm13_vm0, %v2399_v37   ;;  %v9741_v41 = vld [vmem:[#allocation0 + $0x40] sm:$0xff]   ;;  %v9779_v48 = vld [vmem:[#allocation0 + $0x58] sm:$0xff]   ;;  %v9781_v49 = vld [vmem:[#allocation0 + $0x50] sm:$0xff]  }
 0x1d7   :  { %5697 = vst.msk [vmem:[%s13580_s1 + $0xb87] ss:$16 sm:$0x3] %vm13_vm0, %v2438_v44   ;;  %5698 = vst.msk [vmem:[%s13580_s1 + $0xb87] ss:$16 sm:$0xc] %vm13_vm0, %v2438_v44   ;;  %3188 = vrot.lane.b32.xlu1 %v9739_v40, %s6519_s20  ;;  %3175 = vrot.lane.b32.xlu0 %v9741_v41, %s6519_s20  ;;  %v2463_v52 = vpop.permute.xlu1 %2462   ;;  %v2450_v53 = vpop.permute.xlu0 %2449  }
 0x1d8   :  { %5699 = vst.msk [vmem:[%s13580_s1 + $0xb87] ss:$16 sm:$0x30] %vm13_vm0, %v2438_v44   ;;  %5700 = vst.msk [vmem:[%s13580_s1 + $0xb87] ss:$16 sm:$0xc0] %vm13_vm0, %v2438_v44  }
 0x1d9   :  { %5693 = vst.msk [vmem:[%s13580_s1 + $0xb07] ss:$16 sm:$0x3] %vm13_vm0, %v2425_v45   ;;  %5694 = vst.msk [vmem:[%s13580_s1 + $0xb07] ss:$16 sm:$0xc] %vm13_vm0, %v2425_v45  }
 0x1da   :  { %5695 = vst.msk [vmem:[%s13580_s1 + $0xb07] ss:$16 sm:$0x30] %vm13_vm0, %v2425_v45   ;;  %5696 = vst.msk [vmem:[%s13580_s1 + $0xb07] ss:$16 sm:$0xc0] %vm13_vm0, %v2425_v45  }
 0x1db   :  { %5705 = vst.msk [vmem:[%s13580_s1 + $0x88] ss:$16 sm:$0x3] %vm13_vm0, %v2463_v52   ;;  %5706 = vst.msk [vmem:[%s13580_s1 + $0x88] ss:$16 sm:$0xc] %vm13_vm0, %v2463_v52   ;;  %3214 = vrot.lane.b32.xlu1 %v9779_v48, %s6519_s20  ;;  %3201 = vrot.lane.b32.xlu0 %v9781_v49, %s6519_s20  ;;  %v2489_v60 = vpop.permute.xlu1 %2488   ;;  %v2476_v61 = vpop.permute.xlu0 %2475  }
 0x1dc   :  { %5707 = vst.msk [vmem:[%s13580_s1 + $0x88] ss:$16 sm:$0x30] %vm13_vm0, %v2463_v52   ;;  %5708 = vst.msk [vmem:[%s13580_s1 + $0x88] ss:$16 sm:$0xc0] %vm13_vm0, %v2463_v52  }
 0x1dd   :  { %5701 = vst.msk [vmem:[%s13580_s1 + $0x8] ss:$16 sm:$0x3] %vm13_vm0, %v2450_v53   ;;  %5702 = vst.msk [vmem:[%s13580_s1 + $0x8] ss:$16 sm:$0xc] %vm13_vm0, %v2450_v53  }
 0x1de   :  { %5703 = vst.msk [vmem:[%s13580_s1 + $0x8] ss:$16 sm:$0x30] %vm13_vm0, %v2450_v53   ;;  %5704 = vst.msk [vmem:[%s13580_s1 + $0x8] ss:$16 sm:$0xc0] %vm13_vm0, %v2450_v53  }
 0x1df   :  { %v9819_v56 = vld [vmem:[#allocation0 + $0x68] sm:$0xff]   ;;  %v9821_v57 = vld [vmem:[#allocation0 + $0x60] sm:$0xff]   ;;  %5713 = vst.msk [vmem:[%s13580_s1 + $0x188] ss:$16 sm:$0x3] %vm13_vm0, %v2489_v60   ;;  %v9859_v1 = vld [vmem:[#allocation0 + $0x78] sm:$0xff]   ;;  %v2515_v4 = vpop.permute.xlu1 %2514   ;;  %v2502_v5 = vpop.permute.xlu0 %2501  }
 0x1e0   :  { %5714 = vst.msk [vmem:[%s13580_s1 + $0x188] ss:$16 sm:$0xc] %vm13_vm0, %v2489_v60   ;;  %5715 = vst.msk [vmem:[%s13580_s1 + $0x188] ss:$16 sm:$0x30] %vm13_vm0, %v2489_v60   ;;  %3240 = vrot.lane.b32.xlu1 %v9819_v56, %s6519_s20  ;;  %3227 = vrot.lane.b32.xlu0 %v9821_v57, %s6519_s20 }
 0x1e1   :  { %5716 = vst.msk [vmem:[%s13580_s1 + $0x188] ss:$16 sm:$0xc0] %vm13_vm0, %v2489_v60   ;;  %5709 = vst.msk [vmem:[%s13580_s1 + $0x108] ss:$16 sm:$0x3] %vm13_vm0, %v2476_v61  }
 0x1e2   :  { %5710 = vst.msk [vmem:[%s13580_s1 + $0x108] ss:$16 sm:$0xc] %vm13_vm0, %v2476_v61   ;;  %5711 = vst.msk [vmem:[%s13580_s1 + $0x108] ss:$16 sm:$0x30] %vm13_vm0, %v2476_v61  }
 0x1e3   :  { %5712 = vst.msk [vmem:[%s13580_s1 + $0x108] ss:$16 sm:$0xc0] %vm13_vm0, %v2476_v61   ;;  %v9861_v3 = vld [vmem:[#allocation0 + $0x70] sm:$0xff]   ;;  %v9899_v6 = vld [vmem:[#allocation0 + $0x88] sm:$0xff]   ;;  %v9901_v7 = vld [vmem:[#allocation0 + $0x80] sm:$0xff]   ;;  %v2541_v8 = vpop.permute.xlu1 %2540   ;;  %v2528_v9 = vpop.permute.xlu0 %2527  }
 0x1e4   :  { %5721 = vst.msk [vmem:[%s13580_s1 + $0x288] ss:$16 sm:$0x3] %vm13_vm0, %v2515_v4   ;;  %5722 = vst.msk [vmem:[%s13580_s1 + $0x288] ss:$16 sm:$0xc] %vm13_vm0, %v2515_v4   ;;  %3266 = vrot.lane.b32.xlu1 %v9859_v1, %s6519_s20  ;;  %3253 = vrot.lane.b32.xlu0 %v9861_v3, %s6519_s20 }
 0x1e5   :  { %5723 = vst.msk [vmem:[%s13580_s1 + $0x288] ss:$16 sm:$0x30] %vm13_vm0, %v2515_v4   ;;  %5724 = vst.msk [vmem:[%s13580_s1 + $0x288] ss:$16 sm:$0xc0] %vm13_vm0, %v2515_v4  }
 0x1e6   :  { %5717 = vst.msk [vmem:[%s13580_s1 + $0x208] ss:$16 sm:$0x3] %vm13_vm0, %v2502_v5   ;;  %5718 = vst.msk [vmem:[%s13580_s1 + $0x208] ss:$16 sm:$0xc] %vm13_vm0, %v2502_v5  }
 0x1e7   :  { %5719 = vst.msk [vmem:[%s13580_s1 + $0x208] ss:$16 sm:$0x30] %vm13_vm0, %v2502_v5   ;;  %5720 = vst.msk [vmem:[%s13580_s1 + $0x208] ss:$16 sm:$0xc0] %vm13_vm0, %v2502_v5   ;;  %v2567_v12 = vpop.permute.xlu1 %2566   ;;  %v2554_v13 = vpop.permute.xlu0 %2553  }
 0x1e8   :  { %5729 = vst.msk [vmem:[%s13580_s1 + $0x388] ss:$16 sm:$0x3] %vm13_vm0, %v2541_v8   ;;  %5730 = vst.msk [vmem:[%s13580_s1 + $0x388] ss:$16 sm:$0xc] %vm13_vm0, %v2541_v8   ;;  %3292 = vrot.lane.b32.xlu1 %v9899_v6, %s6519_s20  ;;  %3279 = vrot.lane.b32.xlu0 %v9901_v7, %s6519_s20 }
 0x1e9   :  { %5731 = vst.msk [vmem:[%s13580_s1 + $0x388] ss:$16 sm:$0x30] %vm13_vm0, %v2541_v8   ;;  %5732 = vst.msk [vmem:[%s13580_s1 + $0x388] ss:$16 sm:$0xc0] %vm13_vm0, %v2541_v8  }
 0x1ea   :  { %5725 = vst.msk [vmem:[%s13580_s1 + $0x308] ss:$16 sm:$0x3] %vm13_vm0, %v2528_v9   ;;  %5726 = vst.msk [vmem:[%s13580_s1 + $0x308] ss:$16 sm:$0xc] %vm13_vm0, %v2528_v9  }
 0x1eb   :  { %5727 = vst.msk [vmem:[%s13580_s1 + $0x308] ss:$16 sm:$0x30] %vm13_vm0, %v2528_v9   ;;  %5728 = vst.msk [vmem:[%s13580_s1 + $0x308] ss:$16 sm:$0xc0] %vm13_vm0, %v2528_v9   ;;  %v2593_v22 = vpop.permute.xlu1 %2592   ;;  %v2580_v23 = vpop.permute.xlu0 %2579  }
 0x1ec   :  { %v9939_v10 = vld [vmem:[#allocation0 + $0x98] sm:$0xff]   ;;  %v9941_v11 = vld [vmem:[#allocation0 + $0x90] sm:$0xff]   ;;  %5737 = vst.msk [vmem:[%s13580_s1 + $0x488] ss:$16 sm:$0x3] %vm13_vm0, %v2567_v12   ;;  %v9979_v14 = vld [vmem:[#allocation0 + $0xa8] sm:$0xff]  }
 0x1ed   :  { %5738 = vst.msk [vmem:[%s13580_s1 + $0x488] ss:$16 sm:$0xc] %vm13_vm0, %v2567_v12   ;;  %5739 = vst.msk [vmem:[%s13580_s1 + $0x488] ss:$16 sm:$0x30] %vm13_vm0, %v2567_v12   ;;  %3318 = vrot.lane.b32.xlu1 %v9939_v10, %s6519_s20  ;;  %3305 = vrot.lane.b32.xlu0 %v9941_v11, %s6519_s20 }
 0x1ee   :  { %5740 = vst.msk [vmem:[%s13580_s1 + $0x488] ss:$16 sm:$0xc0] %vm13_vm0, %v2567_v12   ;;  %5733 = vst.msk [vmem:[%s13580_s1 + $0x408] ss:$16 sm:$0x3] %vm13_vm0, %v2554_v13  }
 0x1ef   :  { %5734 = vst.msk [vmem:[%s13580_s1 + $0x408] ss:$16 sm:$0xc] %vm13_vm0, %v2554_v13   ;;  %5735 = vst.msk [vmem:[%s13580_s1 + $0x408] ss:$16 sm:$0x30] %vm13_vm0, %v2554_v13   ;;  %v2619_v30 = vpop.permute.xlu1 %2618   ;;  %v2606_v31 = vpop.permute.xlu0 %2605  }
 0x1f0   :  { %5736 = vst.msk [vmem:[%s13580_s1 + $0x408] ss:$16 sm:$0xc0] %vm13_vm0, %v2554_v13   ;;  %v9981_v15 = vld [vmem:[#allocation0 + $0xa0] sm:$0xff]   ;;  %v10019_v26 = vld [vmem:[#allocation0 + $0xb8] sm:$0xff]   ;;  %v10021_v27 = vld [vmem:[#allocation0 + $0xb0] sm:$0xff]  }
 0x1f1   :  { %5745 = vst.msk [vmem:[%s13580_s1 + $0x588] ss:$16 sm:$0x3] %vm13_vm0, %v2593_v22   ;;  %5746 = vst.msk [vmem:[%s13580_s1 + $0x588] ss:$16 sm:$0xc] %vm13_vm0, %v2593_v22   ;;  %3344 = vrot.lane.b32.xlu1 %v9979_v14, %s6519_s20  ;;  %3331 = vrot.lane.b32.xlu0 %v9981_v15, %s6519_s20 }
 0x1f2   :  { %5747 = vst.msk [vmem:[%s13580_s1 + $0x588] ss:$16 sm:$0x30] %vm13_vm0, %v2593_v22   ;;  %5748 = vst.msk [vmem:[%s13580_s1 + $0x588] ss:$16 sm:$0xc0] %vm13_vm0, %v2593_v22  }
 0x1f3   :  { %5741 = vst.msk [vmem:[%s13580_s1 + $0x508] ss:$16 sm:$0x3] %vm13_vm0, %v2580_v23   ;;  %5742 = vst.msk [vmem:[%s13580_s1 + $0x508] ss:$16 sm:$0xc] %vm13_vm0, %v2580_v23   ;;  %v2645_v34 = vpop.permute.xlu1 %2644   ;;  %v2632_v35 = vpop.permute.xlu0 %2631  }
 0x1f4   :  { %5743 = vst.msk [vmem:[%s13580_s1 + $0x508] ss:$16 sm:$0x30] %vm13_vm0, %v2580_v23   ;;  %5744 = vst.msk [vmem:[%s13580_s1 + $0x508] ss:$16 sm:$0xc0] %vm13_vm0, %v2580_v23  }
 0x1f5   :  { %5753 = vst.msk [vmem:[%s13580_s1 + $0x688] ss:$16 sm:$0x3] %vm13_vm0, %v2619_v30   ;;  %5754 = vst.msk [vmem:[%s13580_s1 + $0x688] ss:$16 sm:$0xc] %vm13_vm0, %v2619_v30   ;;  %3370 = vrot.lane.b32.xlu1 %v10019_v26, %s6519_s20  ;;  %3357 = vrot.lane.b32.xlu0 %v10021_v27, %s6519_s20 }
 0x1f6   :  { %5755 = vst.msk [vmem:[%s13580_s1 + $0x688] ss:$16 sm:$0x30] %vm13_vm0, %v2619_v30   ;;  %5756 = vst.msk [vmem:[%s13580_s1 + $0x688] ss:$16 sm:$0xc0] %vm13_vm0, %v2619_v30  }
 0x1f7   :  { %5749 = vst.msk [vmem:[%s13580_s1 + $0x608] ss:$16 sm:$0x3] %vm13_vm0, %v2606_v31   ;;  %5750 = vst.msk [vmem:[%s13580_s1 + $0x608] ss:$16 sm:$0xc] %vm13_vm0, %v2606_v31   ;;  %v2671_v38 = vpop.permute.xlu1 %2670   ;;  %v2658_v39 = vpop.permute.xlu0 %2657  }
 0x1f8   :  { %5751 = vst.msk [vmem:[%s13580_s1 + $0x608] ss:$16 sm:$0x30] %vm13_vm0, %v2606_v31   ;;  %5752 = vst.msk [vmem:[%s13580_s1 + $0x608] ss:$16 sm:$0xc0] %vm13_vm0, %v2606_v31  }
 0x1f9   :  { %5761 = vst.msk [vmem:[%s13580_s1 + $0x788] ss:$16 sm:$0x3] %vm13_vm0, %v2645_v34   ;;  %5762 = vst.msk [vmem:[%s13580_s1 + $0x788] ss:$16 sm:$0xc] %vm13_vm0, %v2645_v34   ;;  %3395 = vrot.lane.b32.xlu1 %v9579_v0, %s6520_s9  ;;  %3382 = vrot.lane.b32.xlu0 %v9581_v2, %s6520_s9 }
 0x1fa   :  { %5763 = vst.msk [vmem:[%s13580_s1 + $0x788] ss:$16 sm:$0x30] %vm13_vm0, %v2645_v34   ;;  %5764 = vst.msk [vmem:[%s13580_s1 + $0x788] ss:$16 sm:$0xc0] %vm13_vm0, %v2645_v34  }
 0x1fb   :  { %5757 = vst.msk [vmem:[%s13580_s1 + $0x708] ss:$16 sm:$0x3] %vm13_vm0, %v2632_v35   ;;  %5758 = vst.msk [vmem:[%s13580_s1 + $0x708] ss:$16 sm:$0xc] %vm13_vm0, %v2632_v35   ;;  %v2697_v42 = vpop.permute.xlu1 %2696   ;;  %v2684_v43 = vpop.permute.xlu0 %2683  }
 0x1fc   :  { %5759 = vst.msk [vmem:[%s13580_s1 + $0x708] ss:$16 sm:$0x30] %vm13_vm0, %v2632_v35   ;;  %5760 = vst.msk [vmem:[%s13580_s1 + $0x708] ss:$16 sm:$0xc0] %vm13_vm0, %v2632_v35  }
 0x1fd   :  { %5769 = vst.msk [vmem:[%s13580_s1 + $0x888] ss:$16 sm:$0x3] %vm13_vm0, %v2671_v38   ;;  %5770 = vst.msk [vmem:[%s13580_s1 + $0x888] ss:$16 sm:$0xc] %vm13_vm0, %v2671_v38   ;;  %3421 = vrot.lane.b32.xlu1 %v9619_v18, %s6520_s9  ;;  %3408 = vrot.lane.b32.xlu0 %v9621_v19, %s6520_s9 }
 0x1fe   :  { %5771 = vst.msk [vmem:[%s13580_s1 + $0x888] ss:$16 sm:$0x30] %vm13_vm0, %v2671_v38   ;;  %5772 = vst.msk [vmem:[%s13580_s1 + $0x888] ss:$16 sm:$0xc0] %vm13_vm0, %v2671_v38  }
 0x1ff   :  { %5765 = vst.msk [vmem:[%s13580_s1 + $0x808] ss:$16 sm:$0x3] %vm13_vm0, %v2658_v39   ;;  %5766 = vst.msk [vmem:[%s13580_s1 + $0x808] ss:$16 sm:$0xc] %vm13_vm0, %v2658_v39   ;;  %v2723_v46 = vpop.permute.xlu1 %2722   ;;  %v2710_v47 = vpop.permute.xlu0 %2709  }
 0x200   :  { %5767 = vst.msk [vmem:[%s13580_s1 + $0x808] ss:$16 sm:$0x30] %vm13_vm0, %v2658_v39   ;;  %5768 = vst.msk [vmem:[%s13580_s1 + $0x808] ss:$16 sm:$0xc0] %vm13_vm0, %v2658_v39  }
 0x201   :  { %5777 = vst.msk [vmem:[%s13580_s1 + $0x988] ss:$16 sm:$0x3] %vm13_vm0, %v2697_v42   ;;  %5778 = vst.msk [vmem:[%s13580_s1 + $0x988] ss:$16 sm:$0xc] %vm13_vm0, %v2697_v42   ;;  %3447 = vrot.lane.b32.xlu1 %v9659_v24, %s6520_s9  ;;  %3434 = vrot.lane.b32.xlu0 %v9661_v25, %s6520_s9 }
 0x202   :  { %5779 = vst.msk [vmem:[%s13580_s1 + $0x988] ss:$16 sm:$0x30] %vm13_vm0, %v2697_v42   ;;  %5780 = vst.msk [vmem:[%s13580_s1 + $0x988] ss:$16 sm:$0xc0] %vm13_vm0, %v2697_v42  }
 0x203   :  { %5773 = vst.msk [vmem:[%s13580_s1 + $0x908] ss:$16 sm:$0x3] %vm13_vm0, %v2684_v43   ;;  %5774 = vst.msk [vmem:[%s13580_s1 + $0x908] ss:$16 sm:$0xc] %vm13_vm0, %v2684_v43   ;;  %v2749_v50 = vpop.permute.xlu1 %2748   ;;  %v2736_v51 = vpop.permute.xlu0 %2735  }
 0x204   :  { %5775 = vst.msk [vmem:[%s13580_s1 + $0x908] ss:$16 sm:$0x30] %vm13_vm0, %v2684_v43   ;;  %5776 = vst.msk [vmem:[%s13580_s1 + $0x908] ss:$16 sm:$0xc0] %vm13_vm0, %v2684_v43  }
 0x205   :  { %5785 = vst.msk [vmem:[%s13580_s1 + $0xa88] ss:$16 sm:$0x3] %vm13_vm0, %v2723_v46   ;;  %5786 = vst.msk [vmem:[%s13580_s1 + $0xa88] ss:$16 sm:$0xc] %vm13_vm0, %v2723_v46   ;;  %3473 = vrot.lane.b32.xlu1 %v9699_v32, %s6520_s9  ;;  %3460 = vrot.lane.b32.xlu0 %v9701_v33, %s6520_s9 }
 0x206   :  { %5787 = vst.msk [vmem:[%s13580_s1 + $0xa88] ss:$16 sm:$0x30] %vm13_vm0, %v2723_v46   ;;  %5788 = vst.msk [vmem:[%s13580_s1 + $0xa88] ss:$16 sm:$0xc0] %vm13_vm0, %v2723_v46  }
 0x207   :  { %5781 = vst.msk [vmem:[%s13580_s1 + $0xa08] ss:$16 sm:$0x3] %vm13_vm0, %v2710_v47   ;;  %5782 = vst.msk [vmem:[%s13580_s1 + $0xa08] ss:$16 sm:$0xc] %vm13_vm0, %v2710_v47   ;;  %v2774_v54 = vpop.permute.xlu1 %2773   ;;  %v2761_v55 = vpop.permute.xlu0 %2760  }
 0x208   :  { %5783 = vst.msk [vmem:[%s13580_s1 + $0xa08] ss:$16 sm:$0x30] %vm13_vm0, %v2710_v47   ;;  %5784 = vst.msk [vmem:[%s13580_s1 + $0xa08] ss:$16 sm:$0xc0] %vm13_vm0, %v2710_v47  }
 0x209   :  { %5793 = vst.msk [vmem:[%s13580_s1 + $0xb88] ss:$16 sm:$0x3] %vm13_vm0, %v2749_v50   ;;  %5794 = vst.msk [vmem:[%s13580_s1 + $0xb88] ss:$16 sm:$0xc] %vm13_vm0, %v2749_v50   ;;  %3499 = vrot.lane.b32.xlu1 %v9739_v40, %s6520_s9  ;;  %3486 = vrot.lane.b32.xlu0 %v9741_v41, %s6520_s9 }
 0x20a   :  { %5795 = vst.msk [vmem:[%s13580_s1 + $0xb88] ss:$16 sm:$0x30] %vm13_vm0, %v2749_v50   ;;  %5796 = vst.msk [vmem:[%s13580_s1 + $0xb88] ss:$16 sm:$0xc0] %vm13_vm0, %v2749_v50  }
 0x20b   :  { %5789 = vst.msk [vmem:[%s13580_s1 + $0xb08] ss:$16 sm:$0x3] %vm13_vm0, %v2736_v51   ;;  %5790 = vst.msk [vmem:[%s13580_s1 + $0xb08] ss:$16 sm:$0xc] %vm13_vm0, %v2736_v51   ;;  %v2800_v58 = vpop.permute.xlu1 %2799   ;;  %v2787_v59 = vpop.permute.xlu0 %2786  }
 0x20c   :  { %5791 = vst.msk [vmem:[%s13580_s1 + $0xb08] ss:$16 sm:$0x30] %vm13_vm0, %v2736_v51   ;;  %5792 = vst.msk [vmem:[%s13580_s1 + $0xb08] ss:$16 sm:$0xc0] %vm13_vm0, %v2736_v51  }
 0x20d   :  { %5801 = vst.msk [vmem:[%s13580_s1 + $0x89] ss:$16 sm:$0x3] %vm13_vm0, %v2774_v54   ;;  %5802 = vst.msk [vmem:[%s13580_s1 + $0x89] ss:$16 sm:$0xc] %vm13_vm0, %v2774_v54   ;;  %3525 = vrot.lane.b32.xlu1 %v9779_v48, %s6520_s9  ;;  %3512 = vrot.lane.b32.xlu0 %v9781_v49, %s6520_s9 }
 0x20e   :  { %5803 = vst.msk [vmem:[%s13580_s1 + $0x89] ss:$16 sm:$0x30] %vm13_vm0, %v2774_v54   ;;  %5804 = vst.msk [vmem:[%s13580_s1 + $0x89] ss:$16 sm:$0xc0] %vm13_vm0, %v2774_v54  }
 0x20f   :  { %5797 = vst.msk [vmem:[%s13580_s1 + $0x9] ss:$16 sm:$0x3] %vm13_vm0, %v2761_v55   ;;  %5798 = vst.msk [vmem:[%s13580_s1 + $0x9] ss:$16 sm:$0xc] %vm13_vm0, %v2761_v55   ;;  %v2826_v62 = vpop.permute.xlu1 %2825   ;;  %v2813_v63 = vpop.permute.xlu0 %2812  }
 0x210   :  { %5799 = vst.msk [vmem:[%s13580_s1 + $0x9] ss:$16 sm:$0x30] %vm13_vm0, %v2761_v55   ;;  %5800 = vst.msk [vmem:[%s13580_s1 + $0x9] ss:$16 sm:$0xc0] %vm13_vm0, %v2761_v55  }
 0x211   :  { %5809 = vst.msk [vmem:[%s13580_s1 + $0x189] ss:$16 sm:$0x3] %vm13_vm0, %v2800_v58   ;;  %5810 = vst.msk [vmem:[%s13580_s1 + $0x189] ss:$16 sm:$0xc] %vm13_vm0, %v2800_v58   ;;  %3551 = vrot.lane.b32.xlu1 %v9819_v56, %s6520_s9  ;;  %3538 = vrot.lane.b32.xlu0 %v9821_v57, %s6520_s9 }
 0x212   :  { %5811 = vst.msk [vmem:[%s13580_s1 + $0x189] ss:$16 sm:$0x30] %vm13_vm0, %v2800_v58   ;;  %5812 = vst.msk [vmem:[%s13580_s1 + $0x189] ss:$16 sm:$0xc0] %vm13_vm0, %v2800_v58  }
 0x213   :  { %5805 = vst.msk [vmem:[%s13580_s1 + $0x109] ss:$16 sm:$0x3] %vm13_vm0, %v2787_v59   ;;  %5806 = vst.msk [vmem:[%s13580_s1 + $0x109] ss:$16 sm:$0xc] %vm13_vm0, %v2787_v59   ;;  %v2852_v16 = vpop.permute.xlu1 %2851   ;;  %v2839_v17 = vpop.permute.xlu0 %2838  }
 0x214   :  { %5807 = vst.msk [vmem:[%s13580_s1 + $0x109] ss:$16 sm:$0x30] %vm13_vm0, %v2787_v59   ;;  %5808 = vst.msk [vmem:[%s13580_s1 + $0x109] ss:$16 sm:$0xc0] %vm13_vm0, %v2787_v59  }
 0x215   :  { %5817 = vst.msk [vmem:[%s13580_s1 + $0x289] ss:$16 sm:$0x3] %vm13_vm0, %v2826_v62   ;;  %5818 = vst.msk [vmem:[%s13580_s1 + $0x289] ss:$16 sm:$0xc] %vm13_vm0, %v2826_v62   ;;  %3577 = vrot.lane.b32.xlu1 %v9859_v1, %s6520_s9  ;;  %3564 = vrot.lane.b32.xlu0 %v9861_v3, %s6520_s9 }
 0x216   :  { %5819 = vst.msk [vmem:[%s13580_s1 + $0x289] ss:$16 sm:$0x30] %vm13_vm0, %v2826_v62   ;;  %5820 = vst.msk [vmem:[%s13580_s1 + $0x289] ss:$16 sm:$0xc0] %vm13_vm0, %v2826_v62  }
 0x217   :  { %5813 = vst.msk [vmem:[%s13580_s1 + $0x209] ss:$16 sm:$0x3] %vm13_vm0, %v2813_v63   ;;  %5814 = vst.msk [vmem:[%s13580_s1 + $0x209] ss:$16 sm:$0xc] %vm13_vm0, %v2813_v63   ;;  %v2878_v20 = vpop.permute.xlu1 %2877   ;;  %v2865_v21 = vpop.permute.xlu0 %2864  }
 0x218   :  { %5815 = vst.msk [vmem:[%s13580_s1 + $0x209] ss:$16 sm:$0x30] %vm13_vm0, %v2813_v63   ;;  %5816 = vst.msk [vmem:[%s13580_s1 + $0x209] ss:$16 sm:$0xc0] %vm13_vm0, %v2813_v63  }
 0x219   :  { %5825 = vst.msk [vmem:[%s13580_s1 + $0x389] ss:$16 sm:$0x3] %vm13_vm0, %v2852_v16   ;;  %5826 = vst.msk [vmem:[%s13580_s1 + $0x389] ss:$16 sm:$0xc] %vm13_vm0, %v2852_v16   ;;  %3603 = vrot.lane.b32.xlu1 %v9899_v6, %s6520_s9  ;;  %3590 = vrot.lane.b32.xlu0 %v9901_v7, %s6520_s9 }
 0x21a   :  { %5827 = vst.msk [vmem:[%s13580_s1 + $0x389] ss:$16 sm:$0x30] %vm13_vm0, %v2852_v16   ;;  %5828 = vst.msk [vmem:[%s13580_s1 + $0x389] ss:$16 sm:$0xc0] %vm13_vm0, %v2852_v16  }
 0x21b   :  { %5821 = vst.msk [vmem:[%s13580_s1 + $0x309] ss:$16 sm:$0x3] %vm13_vm0, %v2839_v17   ;;  %5822 = vst.msk [vmem:[%s13580_s1 + $0x309] ss:$16 sm:$0xc] %vm13_vm0, %v2839_v17   ;;  %v2904_v28 = vpop.permute.xlu1 %2903   ;;  %v2891_v29 = vpop.permute.xlu0 %2890  }
 0x21c   :  { %5823 = vst.msk [vmem:[%s13580_s1 + $0x309] ss:$16 sm:$0x30] %vm13_vm0, %v2839_v17   ;;  %5824 = vst.msk [vmem:[%s13580_s1 + $0x309] ss:$16 sm:$0xc0] %vm13_vm0, %v2839_v17  }
 0x21d   :  { %5833 = vst.msk [vmem:[%s13580_s1 + $0x489] ss:$16 sm:$0x3] %vm13_vm0, %v2878_v20   ;;  %5834 = vst.msk [vmem:[%s13580_s1 + $0x489] ss:$16 sm:$0xc] %vm13_vm0, %v2878_v20   ;;  %3629 = vrot.lane.b32.xlu1 %v9939_v10, %s6520_s9  ;;  %3616 = vrot.lane.b32.xlu0 %v9941_v11, %s6520_s9 }
 0x21e   :  { %5835 = vst.msk [vmem:[%s13580_s1 + $0x489] ss:$16 sm:$0x30] %vm13_vm0, %v2878_v20   ;;  %5836 = vst.msk [vmem:[%s13580_s1 + $0x489] ss:$16 sm:$0xc0] %vm13_vm0, %v2878_v20  }
 0x21f   :  { %5829 = vst.msk [vmem:[%s13580_s1 + $0x409] ss:$16 sm:$0x3] %vm13_vm0, %v2865_v21   ;;  %5830 = vst.msk [vmem:[%s13580_s1 + $0x409] ss:$16 sm:$0xc] %vm13_vm0, %v2865_v21   ;;  %v2930_v36 = vpop.permute.xlu1 %2929   ;;  %v2917_v37 = vpop.permute.xlu0 %2916  }
 0x220   :  { %5831 = vst.msk [vmem:[%s13580_s1 + $0x409] ss:$16 sm:$0x30] %vm13_vm0, %v2865_v21   ;;  %5832 = vst.msk [vmem:[%s13580_s1 + $0x409] ss:$16 sm:$0xc0] %vm13_vm0, %v2865_v21  }
 0x221   :  { %5841 = vst.msk [vmem:[%s13580_s1 + $0x589] ss:$16 sm:$0x3] %vm13_vm0, %v2904_v28   ;;  %5842 = vst.msk [vmem:[%s13580_s1 + $0x589] ss:$16 sm:$0xc] %vm13_vm0, %v2904_v28   ;;  %3655 = vrot.lane.b32.xlu1 %v9979_v14, %s6520_s9  ;;  %3642 = vrot.lane.b32.xlu0 %v9981_v15, %s6520_s9 }
 0x222   :  { %5843 = vst.msk [vmem:[%s13580_s1 + $0x589] ss:$16 sm:$0x30] %vm13_vm0, %v2904_v28   ;;  %5844 = vst.msk [vmem:[%s13580_s1 + $0x589] ss:$16 sm:$0xc0] %vm13_vm0, %v2904_v28  }
 0x223   :  { %5837 = vst.msk [vmem:[%s13580_s1 + $0x509] ss:$16 sm:$0x3] %vm13_vm0, %v2891_v29   ;;  %5838 = vst.msk [vmem:[%s13580_s1 + $0x509] ss:$16 sm:$0xc] %vm13_vm0, %v2891_v29   ;;  %v2956_v44 = vpop.permute.xlu1 %2955   ;;  %v2943_v45 = vpop.permute.xlu0 %2942  }
 0x224   :  { %5839 = vst.msk [vmem:[%s13580_s1 + $0x509] ss:$16 sm:$0x30] %vm13_vm0, %v2891_v29   ;;  %5840 = vst.msk [vmem:[%s13580_s1 + $0x509] ss:$16 sm:$0xc0] %vm13_vm0, %v2891_v29  }
 0x225   :  { %5849 = vst.msk [vmem:[%s13580_s1 + $0x689] ss:$16 sm:$0x3] %vm13_vm0, %v2930_v36   ;;  %5850 = vst.msk [vmem:[%s13580_s1 + $0x689] ss:$16 sm:$0xc] %vm13_vm0, %v2930_v36   ;;  %3681 = vrot.lane.b32.xlu1 %v10019_v26, %s6520_s9  ;;  %3668 = vrot.lane.b32.xlu0 %v10021_v27, %s6520_s9 }
 0x226   :  { %5851 = vst.msk [vmem:[%s13580_s1 + $0x689] ss:$16 sm:$0x30] %vm13_vm0, %v2930_v36   ;;  %5852 = vst.msk [vmem:[%s13580_s1 + $0x689] ss:$16 sm:$0xc0] %vm13_vm0, %v2930_v36  }
 0x227   :  { %5845 = vst.msk [vmem:[%s13580_s1 + $0x609] ss:$16 sm:$0x3] %vm13_vm0, %v2917_v37   ;;  %5846 = vst.msk [vmem:[%s13580_s1 + $0x609] ss:$16 sm:$0xc] %vm13_vm0, %v2917_v37   ;;  %v2982_v52 = vpop.permute.xlu1 %2981   ;;  %v2969_v53 = vpop.permute.xlu0 %2968  }
 0x228   :  { %5847 = vst.msk [vmem:[%s13580_s1 + $0x609] ss:$16 sm:$0x30] %vm13_vm0, %v2917_v37   ;;  %5848 = vst.msk [vmem:[%s13580_s1 + $0x609] ss:$16 sm:$0xc0] %vm13_vm0, %v2917_v37  }
 0x229   :  { %5857 = vst.msk [vmem:[%s13580_s1 + $0x789] ss:$16 sm:$0x3] %vm13_vm0, %v2956_v44   ;;  %5858 = vst.msk [vmem:[%s13580_s1 + $0x789] ss:$16 sm:$0xc] %vm13_vm0, %v2956_v44   ;;  %3706 = vrot.lane.b32.xlu1 %v9579_v0, %s6521_s26  ;;  %3693 = vrot.lane.b32.xlu0 %v9581_v2, %s6521_s26 }
 0x22a   :  { %5859 = vst.msk [vmem:[%s13580_s1 + $0x789] ss:$16 sm:$0x30] %vm13_vm0, %v2956_v44   ;;  %5860 = vst.msk [vmem:[%s13580_s1 + $0x789] ss:$16 sm:$0xc0] %vm13_vm0, %v2956_v44  }
 0x22b   :  { %5853 = vst.msk [vmem:[%s13580_s1 + $0x709] ss:$16 sm:$0x3] %vm13_vm0, %v2943_v45   ;;  %5854 = vst.msk [vmem:[%s13580_s1 + $0x709] ss:$16 sm:$0xc] %vm13_vm0, %v2943_v45   ;;  %v3008_v60 = vpop.permute.xlu1 %3007   ;;  %v2995_v61 = vpop.permute.xlu0 %2994  }
 0x22c   :  { %5855 = vst.msk [vmem:[%s13580_s1 + $0x709] ss:$16 sm:$0x30] %vm13_vm0, %v2943_v45   ;;  %5856 = vst.msk [vmem:[%s13580_s1 + $0x709] ss:$16 sm:$0xc0] %vm13_vm0, %v2943_v45  }
 0x22d   :  { %5865 = vst.msk [vmem:[%s13580_s1 + $0x889] ss:$16 sm:$0x3] %vm13_vm0, %v2982_v52   ;;  %5866 = vst.msk [vmem:[%s13580_s1 + $0x889] ss:$16 sm:$0xc] %vm13_vm0, %v2982_v52   ;;  %3732 = vrot.lane.b32.xlu1 %v9619_v18, %s6521_s26  ;;  %3719 = vrot.lane.b32.xlu0 %v9621_v19, %s6521_s26 }
 0x22e   :  { %5867 = vst.msk [vmem:[%s13580_s1 + $0x889] ss:$16 sm:$0x30] %vm13_vm0, %v2982_v52   ;;  %5868 = vst.msk [vmem:[%s13580_s1 + $0x889] ss:$16 sm:$0xc0] %vm13_vm0, %v2982_v52  }
 0x22f   :  { %5861 = vst.msk [vmem:[%s13580_s1 + $0x809] ss:$16 sm:$0x3] %vm13_vm0, %v2969_v53   ;;  %5862 = vst.msk [vmem:[%s13580_s1 + $0x809] ss:$16 sm:$0xc] %vm13_vm0, %v2969_v53   ;;  %v3034_v4 = vpop.permute.xlu1 %3033   ;;  %v3021_v5 = vpop.permute.xlu0 %3020  }
 0x230   :  { %5863 = vst.msk [vmem:[%s13580_s1 + $0x809] ss:$16 sm:$0x30] %vm13_vm0, %v2969_v53   ;;  %5864 = vst.msk [vmem:[%s13580_s1 + $0x809] ss:$16 sm:$0xc0] %vm13_vm0, %v2969_v53  }
 0x231   :  { %5873 = vst.msk [vmem:[%s13580_s1 + $0x989] ss:$16 sm:$0x3] %vm13_vm0, %v3008_v60   ;;  %5874 = vst.msk [vmem:[%s13580_s1 + $0x989] ss:$16 sm:$0xc] %vm13_vm0, %v3008_v60   ;;  %3758 = vrot.lane.b32.xlu1 %v9659_v24, %s6521_s26  ;;  %3745 = vrot.lane.b32.xlu0 %v9661_v25, %s6521_s26 }
 0x232   :  { %5875 = vst.msk [vmem:[%s13580_s1 + $0x989] ss:$16 sm:$0x30] %vm13_vm0, %v3008_v60   ;;  %5876 = vst.msk [vmem:[%s13580_s1 + $0x989] ss:$16 sm:$0xc0] %vm13_vm0, %v3008_v60  }
 0x233   :  { %5869 = vst.msk [vmem:[%s13580_s1 + $0x909] ss:$16 sm:$0x3] %vm13_vm0, %v2995_v61   ;;  %5870 = vst.msk [vmem:[%s13580_s1 + $0x909] ss:$16 sm:$0xc] %vm13_vm0, %v2995_v61   ;;  %v3060_v8 = vpop.permute.xlu1 %3059   ;;  %v3047_v9 = vpop.permute.xlu0 %3046  }
 0x234   :  { %5871 = vst.msk [vmem:[%s13580_s1 + $0x909] ss:$16 sm:$0x30] %vm13_vm0, %v2995_v61   ;;  %5872 = vst.msk [vmem:[%s13580_s1 + $0x909] ss:$16 sm:$0xc0] %vm13_vm0, %v2995_v61  }
 0x235   :  { %5881 = vst.msk [vmem:[%s13580_s1 + $0xa89] ss:$16 sm:$0x3] %vm13_vm0, %v3034_v4   ;;  %5882 = vst.msk [vmem:[%s13580_s1 + $0xa89] ss:$16 sm:$0xc] %vm13_vm0, %v3034_v4   ;;  %3784 = vrot.lane.b32.xlu1 %v9699_v32, %s6521_s26  ;;  %3771 = vrot.lane.b32.xlu0 %v9701_v33, %s6521_s26 }
 0x236   :  { %5883 = vst.msk [vmem:[%s13580_s1 + $0xa89] ss:$16 sm:$0x30] %vm13_vm0, %v3034_v4   ;;  %5884 = vst.msk [vmem:[%s13580_s1 + $0xa89] ss:$16 sm:$0xc0] %vm13_vm0, %v3034_v4  }
 0x237   :  { %5877 = vst.msk [vmem:[%s13580_s1 + $0xa09] ss:$16 sm:$0x3] %vm13_vm0, %v3021_v5   ;;  %5878 = vst.msk [vmem:[%s13580_s1 + $0xa09] ss:$16 sm:$0xc] %vm13_vm0, %v3021_v5  }
 0x238   :  { %5879 = vst.msk [vmem:[%s13580_s1 + $0xa09] ss:$16 sm:$0x30] %vm13_vm0, %v3021_v5   ;;  %5880 = vst.msk [vmem:[%s13580_s1 + $0xa09] ss:$16 sm:$0xc0] %vm13_vm0, %v3021_v5   ;;  %v3085_v12 = vpop.permute.xlu1 %3084   ;;  %v3072_v13 = vpop.permute.xlu0 %3071  }
 0x239   :  { %5889 = vst.msk [vmem:[%s13580_s1 + $0xb89] ss:$16 sm:$0x3] %vm13_vm0, %v3060_v8   ;;  %5890 = vst.msk [vmem:[%s13580_s1 + $0xb89] ss:$16 sm:$0xc] %vm13_vm0, %v3060_v8   ;;  %3810 = vrot.lane.b32.xlu1 %v9739_v40, %s6521_s26  ;;  %3797 = vrot.lane.b32.xlu0 %v9741_v41, %s6521_s26 }
 0x23a   :  { %5891 = vst.msk [vmem:[%s13580_s1 + $0xb89] ss:$16 sm:$0x30] %vm13_vm0, %v3060_v8   ;;  %5892 = vst.msk [vmem:[%s13580_s1 + $0xb89] ss:$16 sm:$0xc0] %vm13_vm0, %v3060_v8  }
 0x23b   :  { %5885 = vst.msk [vmem:[%s13580_s1 + $0xb09] ss:$16 sm:$0x3] %vm13_vm0, %v3047_v9   ;;  %5886 = vst.msk [vmem:[%s13580_s1 + $0xb09] ss:$16 sm:$0xc] %vm13_vm0, %v3047_v9  }
 0x23c   :  { %5887 = vst.msk [vmem:[%s13580_s1 + $0xb09] ss:$16 sm:$0x30] %vm13_vm0, %v3047_v9   ;;  %5888 = vst.msk [vmem:[%s13580_s1 + $0xb09] ss:$16 sm:$0xc0] %vm13_vm0, %v3047_v9   ;;  %v3111_v22 = vpop.permute.xlu1 %3110   ;;  %v3098_v23 = vpop.permute.xlu0 %3097  }
 0x23d   :  { %5897 = vst.msk [vmem:[%s13580_s1 + $0x8a] ss:$16 sm:$0x3] %vm13_vm0, %v3085_v12   ;;  %5898 = vst.msk [vmem:[%s13580_s1 + $0x8a] ss:$16 sm:$0xc] %vm13_vm0, %v3085_v12   ;;  %3836 = vrot.lane.b32.xlu1 %v9779_v48, %s6521_s26  ;;  %3823 = vrot.lane.b32.xlu0 %v9781_v49, %s6521_s26 }
 0x23e   :  { %5899 = vst.msk [vmem:[%s13580_s1 + $0x8a] ss:$16 sm:$0x30] %vm13_vm0, %v3085_v12   ;;  %5900 = vst.msk [vmem:[%s13580_s1 + $0x8a] ss:$16 sm:$0xc0] %vm13_vm0, %v3085_v12  }
 0x23f   :  { %5893 = vst.msk [vmem:[%s13580_s1 + $0xa] ss:$16 sm:$0x3] %vm13_vm0, %v3072_v13   ;;  %5894 = vst.msk [vmem:[%s13580_s1 + $0xa] ss:$16 sm:$0xc] %vm13_vm0, %v3072_v13  }
 0x240   :  { %5895 = vst.msk [vmem:[%s13580_s1 + $0xa] ss:$16 sm:$0x30] %vm13_vm0, %v3072_v13   ;;  %5896 = vst.msk [vmem:[%s13580_s1 + $0xa] ss:$16 sm:$0xc0] %vm13_vm0, %v3072_v13   ;;  %v3137_v30 = vpop.permute.xlu1 %3136   ;;  %v3124_v31 = vpop.permute.xlu0 %3123  }
 0x241   :  { %5905 = vst.msk [vmem:[%s13580_s1 + $0x18a] ss:$16 sm:$0x3] %vm13_vm0, %v3111_v22   ;;  %5906 = vst.msk [vmem:[%s13580_s1 + $0x18a] ss:$16 sm:$0xc] %vm13_vm0, %v3111_v22   ;;  %3862 = vrot.lane.b32.xlu1 %v9819_v56, %s6521_s26  ;;  %3849 = vrot.lane.b32.xlu0 %v9821_v57, %s6521_s26 }
 0x242   :  { %5907 = vst.msk [vmem:[%s13580_s1 + $0x18a] ss:$16 sm:$0x30] %vm13_vm0, %v3111_v22   ;;  %5908 = vst.msk [vmem:[%s13580_s1 + $0x18a] ss:$16 sm:$0xc0] %vm13_vm0, %v3111_v22  }
 0x243   :  { %5901 = vst.msk [vmem:[%s13580_s1 + $0x10a] ss:$16 sm:$0x3] %vm13_vm0, %v3098_v23   ;;  %5902 = vst.msk [vmem:[%s13580_s1 + $0x10a] ss:$16 sm:$0xc] %vm13_vm0, %v3098_v23  }
 0x244   :  { %5903 = vst.msk [vmem:[%s13580_s1 + $0x10a] ss:$16 sm:$0x30] %vm13_vm0, %v3098_v23   ;;  %5904 = vst.msk [vmem:[%s13580_s1 + $0x10a] ss:$16 sm:$0xc0] %vm13_vm0, %v3098_v23  }
 0x245   :  { %5913 = vst.msk [vmem:[%s13580_s1 + $0x28a] ss:$16 sm:$0x3] %vm13_vm0, %v3137_v30   ;;  %5914 = vst.msk [vmem:[%s13580_s1 + $0x28a] ss:$16 sm:$0xc] %vm13_vm0, %v3137_v30   ;;  %3888 = vrot.lane.b32.xlu1 %v9859_v1, %s6521_s26  ;;  %3875 = vrot.lane.b32.xlu0 %v9861_v3, %s6521_s26  ;;  %v3163_v34 = vpop.permute.xlu1 %3162   ;;  %v3150_v35 = vpop.permute.xlu0 %3149  }
 0x246   :  { %5915 = vst.msk [vmem:[%s13580_s1 + $0x28a] ss:$16 sm:$0x30] %vm13_vm0, %v3137_v30   ;;  %5916 = vst.msk [vmem:[%s13580_s1 + $0x28a] ss:$16 sm:$0xc0] %vm13_vm0, %v3137_v30  }
 0x247   :  { %5909 = vst.msk [vmem:[%s13580_s1 + $0x20a] ss:$16 sm:$0x3] %vm13_vm0, %v3124_v31   ;;  %5910 = vst.msk [vmem:[%s13580_s1 + $0x20a] ss:$16 sm:$0xc] %vm13_vm0, %v3124_v31  }
 0x248   :  { %5911 = vst.msk [vmem:[%s13580_s1 + $0x20a] ss:$16 sm:$0x30] %vm13_vm0, %v3124_v31   ;;  %5912 = vst.msk [vmem:[%s13580_s1 + $0x20a] ss:$16 sm:$0xc0] %vm13_vm0, %v3124_v31  }
 0x249   :  { %5921 = vst.msk [vmem:[%s13580_s1 + $0x38a] ss:$16 sm:$0x3] %vm13_vm0, %v3163_v34   ;;  %5922 = vst.msk [vmem:[%s13580_s1 + $0x38a] ss:$16 sm:$0xc] %vm13_vm0, %v3163_v34   ;;  %3914 = vrot.lane.b32.xlu1 %v9899_v6, %s6521_s26  ;;  %3901 = vrot.lane.b32.xlu0 %v9901_v7, %s6521_s26  ;;  %v3189_v38 = vpop.permute.xlu1 %3188   ;;  %v3176_v39 = vpop.permute.xlu0 %3175  }
 0x24a   :  { %5923 = vst.msk [vmem:[%s13580_s1 + $0x38a] ss:$16 sm:$0x30] %vm13_vm0, %v3163_v34   ;;  %5924 = vst.msk [vmem:[%s13580_s1 + $0x38a] ss:$16 sm:$0xc0] %vm13_vm0, %v3163_v34  }
 0x24b   :  { %5917 = vst.msk [vmem:[%s13580_s1 + $0x30a] ss:$16 sm:$0x3] %vm13_vm0, %v3150_v35   ;;  %5918 = vst.msk [vmem:[%s13580_s1 + $0x30a] ss:$16 sm:$0xc] %vm13_vm0, %v3150_v35  }
 0x24c   :  { %5919 = vst.msk [vmem:[%s13580_s1 + $0x30a] ss:$16 sm:$0x30] %vm13_vm0, %v3150_v35   ;;  %5920 = vst.msk [vmem:[%s13580_s1 + $0x30a] ss:$16 sm:$0xc0] %vm13_vm0, %v3150_v35  }
 0x24d   :  { %5929 = vst.msk [vmem:[%s13580_s1 + $0x48a] ss:$16 sm:$0x3] %vm13_vm0, %v3189_v38   ;;  %5930 = vst.msk [vmem:[%s13580_s1 + $0x48a] ss:$16 sm:$0xc] %vm13_vm0, %v3189_v38   ;;  %3940 = vrot.lane.b32.xlu1 %v9939_v10, %s6521_s26  ;;  %3927 = vrot.lane.b32.xlu0 %v9941_v11, %s6521_s26  ;;  %v3215_v42 = vpop.permute.xlu1 %3214   ;;  %v3202_v43 = vpop.permute.xlu0 %3201  }
 0x24e   :  { %5931 = vst.msk [vmem:[%s13580_s1 + $0x48a] ss:$16 sm:$0x30] %vm13_vm0, %v3189_v38   ;;  %5932 = vst.msk [vmem:[%s13580_s1 + $0x48a] ss:$16 sm:$0xc0] %vm13_vm0, %v3189_v38  }
 0x24f   :  { %5925 = vst.msk [vmem:[%s13580_s1 + $0x40a] ss:$16 sm:$0x3] %vm13_vm0, %v3176_v39   ;;  %5926 = vst.msk [vmem:[%s13580_s1 + $0x40a] ss:$16 sm:$0xc] %vm13_vm0, %v3176_v39  }
 0x250   :  { %5927 = vst.msk [vmem:[%s13580_s1 + $0x40a] ss:$16 sm:$0x30] %vm13_vm0, %v3176_v39   ;;  %5928 = vst.msk [vmem:[%s13580_s1 + $0x40a] ss:$16 sm:$0xc0] %vm13_vm0, %v3176_v39  }
 0x251   :  { %5937 = vst.msk [vmem:[%s13580_s1 + $0x58a] ss:$16 sm:$0x3] %vm13_vm0, %v3215_v42   ;;  %5938 = vst.msk [vmem:[%s13580_s1 + $0x58a] ss:$16 sm:$0xc] %vm13_vm0, %v3215_v42   ;;  %3966 = vrot.lane.b32.xlu1 %v9979_v14, %s6521_s26  ;;  %3953 = vrot.lane.b32.xlu0 %v9981_v15, %s6521_s26 }
 0x252   :  { %5939 = vst.msk [vmem:[%s13580_s1 + $0x58a] ss:$16 sm:$0x30] %vm13_vm0, %v3215_v42   ;;  %5940 = vst.msk [vmem:[%s13580_s1 + $0x58a] ss:$16 sm:$0xc0] %vm13_vm0, %v3215_v42   ;;  %v3241_v46 = vpop.permute.xlu1 %3240   ;;  %v3228_v47 = vpop.permute.xlu0 %3227  }
 0x253   :  { %5933 = vst.msk [vmem:[%s13580_s1 + $0x50a] ss:$16 sm:$0x3] %vm13_vm0, %v3202_v43   ;;  %5934 = vst.msk [vmem:[%s13580_s1 + $0x50a] ss:$16 sm:$0xc] %vm13_vm0, %v3202_v43  }
 0x254   :  { %5935 = vst.msk [vmem:[%s13580_s1 + $0x50a] ss:$16 sm:$0x30] %vm13_vm0, %v3202_v43   ;;  %5936 = vst.msk [vmem:[%s13580_s1 + $0x50a] ss:$16 sm:$0xc0] %vm13_vm0, %v3202_v43  }
 0x255   :  { %5945 = vst.msk [vmem:[%s13580_s1 + $0x68a] ss:$16 sm:$0x3] %vm13_vm0, %v3241_v46   ;;  %5946 = vst.msk [vmem:[%s13580_s1 + $0x68a] ss:$16 sm:$0xc] %vm13_vm0, %v3241_v46   ;;  %3992 = vrot.lane.b32.xlu1 %v10019_v26, %s6521_s26  ;;  %3979 = vrot.lane.b32.xlu0 %v10021_v27, %s6521_s26 }
 0x256   :  { %5947 = vst.msk [vmem:[%s13580_s1 + $0x68a] ss:$16 sm:$0x30] %vm13_vm0, %v3241_v46   ;;  %5948 = vst.msk [vmem:[%s13580_s1 + $0x68a] ss:$16 sm:$0xc0] %vm13_vm0, %v3241_v46   ;;  %v3267_v50 = vpop.permute.xlu1 %3266   ;;  %v3254_v51 = vpop.permute.xlu0 %3253  }
 0x257   :  { %5941 = vst.msk [vmem:[%s13580_s1 + $0x60a] ss:$16 sm:$0x3] %vm13_vm0, %v3228_v47   ;;  %5942 = vst.msk [vmem:[%s13580_s1 + $0x60a] ss:$16 sm:$0xc] %vm13_vm0, %v3228_v47  }
 0x258   :  { %5943 = vst.msk [vmem:[%s13580_s1 + $0x60a] ss:$16 sm:$0x30] %vm13_vm0, %v3228_v47   ;;  %5944 = vst.msk [vmem:[%s13580_s1 + $0x60a] ss:$16 sm:$0xc0] %vm13_vm0, %v3228_v47  }
 0x259   :  { %5953 = vst.msk [vmem:[%s13580_s1 + $0x78a] ss:$16 sm:$0x3] %vm13_vm0, %v3267_v50   ;;  %5954 = vst.msk [vmem:[%s13580_s1 + $0x78a] ss:$16 sm:$0xc] %vm13_vm0, %v3267_v50   ;;  %4017 = vrot.lane.b32.xlu1 %v9579_v0, %s6522_s15  ;;  %4004 = vrot.lane.b32.xlu0 %v9581_v2, %s6522_s15 }
 0x25a   :  { %5955 = vst.msk [vmem:[%s13580_s1 + $0x78a] ss:$16 sm:$0x30] %vm13_vm0, %v3267_v50   ;;  %5956 = vst.msk [vmem:[%s13580_s1 + $0x78a] ss:$16 sm:$0xc0] %vm13_vm0, %v3267_v50   ;;  %v3293_v0 = vpop.permute.xlu1 %3292   ;;  %v3280_v2 = vpop.permute.xlu0 %3279  }
 0x25b   :  { %5949 = vst.msk [vmem:[%s13580_s1 + $0x70a] ss:$16 sm:$0x3] %vm13_vm0, %v3254_v51   ;;  %5950 = vst.msk [vmem:[%s13580_s1 + $0x70a] ss:$16 sm:$0xc] %vm13_vm0, %v3254_v51  }
 0x25c   :  { %5951 = vst.msk [vmem:[%s13580_s1 + $0x70a] ss:$16 sm:$0x30] %vm13_vm0, %v3254_v51   ;;  %5952 = vst.msk [vmem:[%s13580_s1 + $0x70a] ss:$16 sm:$0xc0] %vm13_vm0, %v3254_v51  }
 0x25d   :  { %5961 = vst.msk [vmem:[%s13580_s1 + $0x88a] ss:$16 sm:$0x3] %vm13_vm0, %v3293_v0   ;;  %5962 = vst.msk [vmem:[%s13580_s1 + $0x88a] ss:$16 sm:$0xc] %vm13_vm0, %v3293_v0   ;;  %4043 = vrot.lane.b32.xlu1 %v9619_v18, %s6522_s15  ;;  %4030 = vrot.lane.b32.xlu0 %v9621_v19, %s6522_s15 }
 0x25e   :  { %5963 = vst.msk [vmem:[%s13580_s1 + $0x88a] ss:$16 sm:$0x30] %vm13_vm0, %v3293_v0   ;;  %5964 = vst.msk [vmem:[%s13580_s1 + $0x88a] ss:$16 sm:$0xc0] %vm13_vm0, %v3293_v0  }
 0x25f   :  { %5957 = vst.msk [vmem:[%s13580_s1 + $0x80a] ss:$16 sm:$0x3] %vm13_vm0, %v3280_v2   ;;  %5958 = vst.msk [vmem:[%s13580_s1 + $0x80a] ss:$16 sm:$0xc] %vm13_vm0, %v3280_v2   ;;  %v3319_v18 = vpop.permute.xlu1 %3318   ;;  %v3306_v19 = vpop.permute.xlu0 %3305  }
 0x260   :  { %5959 = vst.msk [vmem:[%s13580_s1 + $0x80a] ss:$16 sm:$0x30] %vm13_vm0, %v3280_v2   ;;  %5960 = vst.msk [vmem:[%s13580_s1 + $0x80a] ss:$16 sm:$0xc0] %vm13_vm0, %v3280_v2  }
 0x261   :  { %5969 = vst.msk [vmem:[%s13580_s1 + $0x98a] ss:$16 sm:$0x3] %vm13_vm0, %v3319_v18   ;;  %5970 = vst.msk [vmem:[%s13580_s1 + $0x98a] ss:$16 sm:$0xc] %vm13_vm0, %v3319_v18   ;;  %4069 = vrot.lane.b32.xlu1 %v9659_v24, %s6522_s15  ;;  %4056 = vrot.lane.b32.xlu0 %v9661_v25, %s6522_s15 }
 0x262   :  { %5971 = vst.msk [vmem:[%s13580_s1 + $0x98a] ss:$16 sm:$0x30] %vm13_vm0, %v3319_v18   ;;  %5972 = vst.msk [vmem:[%s13580_s1 + $0x98a] ss:$16 sm:$0xc0] %vm13_vm0, %v3319_v18  }
 0x263   :  { %5965 = vst.msk [vmem:[%s13580_s1 + $0x90a] ss:$16 sm:$0x3] %vm13_vm0, %v3306_v19   ;;  %5966 = vst.msk [vmem:[%s13580_s1 + $0x90a] ss:$16 sm:$0xc] %vm13_vm0, %v3306_v19   ;;  %v3345_v24 = vpop.permute.xlu1 %3344   ;;  %v3332_v25 = vpop.permute.xlu0 %3331  }
 0x264   :  { %5967 = vst.msk [vmem:[%s13580_s1 + $0x90a] ss:$16 sm:$0x30] %vm13_vm0, %v3306_v19   ;;  %5968 = vst.msk [vmem:[%s13580_s1 + $0x90a] ss:$16 sm:$0xc0] %vm13_vm0, %v3306_v19  }
 0x265   :  { %5977 = vst.msk [vmem:[%s13580_s1 + $0xa8a] ss:$16 sm:$0x3] %vm13_vm0, %v3345_v24   ;;  %5978 = vst.msk [vmem:[%s13580_s1 + $0xa8a] ss:$16 sm:$0xc] %vm13_vm0, %v3345_v24   ;;  %4095 = vrot.lane.b32.xlu1 %v9699_v32, %s6522_s15  ;;  %4082 = vrot.lane.b32.xlu0 %v9701_v33, %s6522_s15 }
 0x266   :  { %5979 = vst.msk [vmem:[%s13580_s1 + $0xa8a] ss:$16 sm:$0x30] %vm13_vm0, %v3345_v24   ;;  %5980 = vst.msk [vmem:[%s13580_s1 + $0xa8a] ss:$16 sm:$0xc0] %vm13_vm0, %v3345_v24  }
 0x267   :  { %5973 = vst.msk [vmem:[%s13580_s1 + $0xa0a] ss:$16 sm:$0x3] %vm13_vm0, %v3332_v25   ;;  %5974 = vst.msk [vmem:[%s13580_s1 + $0xa0a] ss:$16 sm:$0xc] %vm13_vm0, %v3332_v25   ;;  %v3371_v32 = vpop.permute.xlu1 %3370   ;;  %v3358_v33 = vpop.permute.xlu0 %3357  }
 0x268   :  { %5975 = vst.msk [vmem:[%s13580_s1 + $0xa0a] ss:$16 sm:$0x30] %vm13_vm0, %v3332_v25   ;;  %5976 = vst.msk [vmem:[%s13580_s1 + $0xa0a] ss:$16 sm:$0xc0] %vm13_vm0, %v3332_v25  }
 0x269   :  { %5985 = vst.msk [vmem:[%s13580_s1 + $0xb8a] ss:$16 sm:$0x3] %vm13_vm0, %v3371_v32   ;;  %5986 = vst.msk [vmem:[%s13580_s1 + $0xb8a] ss:$16 sm:$0xc] %vm13_vm0, %v3371_v32   ;;  %4121 = vrot.lane.b32.xlu1 %v9739_v40, %s6522_s15  ;;  %4108 = vrot.lane.b32.xlu0 %v9741_v41, %s6522_s15 }
 0x26a   :  { %5987 = vst.msk [vmem:[%s13580_s1 + $0xb8a] ss:$16 sm:$0x30] %vm13_vm0, %v3371_v32   ;;  %5988 = vst.msk [vmem:[%s13580_s1 + $0xb8a] ss:$16 sm:$0xc0] %vm13_vm0, %v3371_v32  }
 0x26b   :  { %5981 = vst.msk [vmem:[%s13580_s1 + $0xb0a] ss:$16 sm:$0x3] %vm13_vm0, %v3358_v33   ;;  %5982 = vst.msk [vmem:[%s13580_s1 + $0xb0a] ss:$16 sm:$0xc] %vm13_vm0, %v3358_v33   ;;  %v3396_v40 = vpop.permute.xlu1 %3395   ;;  %v3383_v41 = vpop.permute.xlu0 %3382  }
 0x26c   :  { %5983 = vst.msk [vmem:[%s13580_s1 + $0xb0a] ss:$16 sm:$0x30] %vm13_vm0, %v3358_v33   ;;  %5984 = vst.msk [vmem:[%s13580_s1 + $0xb0a] ss:$16 sm:$0xc0] %vm13_vm0, %v3358_v33  }
 0x26d   :  { %5993 = vst.msk [vmem:[%s13580_s1 + $0x8b] ss:$16 sm:$0x3] %vm13_vm0, %v3396_v40   ;;  %5994 = vst.msk [vmem:[%s13580_s1 + $0x8b] ss:$16 sm:$0xc] %vm13_vm0, %v3396_v40   ;;  %4147 = vrot.lane.b32.xlu1 %v9779_v48, %s6522_s15  ;;  %4134 = vrot.lane.b32.xlu0 %v9781_v49, %s6522_s15 }
 0x26e   :  { %5995 = vst.msk [vmem:[%s13580_s1 + $0x8b] ss:$16 sm:$0x30] %vm13_vm0, %v3396_v40   ;;  %5996 = vst.msk [vmem:[%s13580_s1 + $0x8b] ss:$16 sm:$0xc0] %vm13_vm0, %v3396_v40  }
 0x26f   :  { %5989 = vst.msk [vmem:[%s13580_s1 + $0xb] ss:$16 sm:$0x3] %vm13_vm0, %v3383_v41   ;;  %5990 = vst.msk [vmem:[%s13580_s1 + $0xb] ss:$16 sm:$0xc] %vm13_vm0, %v3383_v41   ;;  %v3422_v48 = vpop.permute.xlu1 %3421   ;;  %v3409_v49 = vpop.permute.xlu0 %3408  }
 0x270   :  { %5991 = vst.msk [vmem:[%s13580_s1 + $0xb] ss:$16 sm:$0x30] %vm13_vm0, %v3383_v41   ;;  %5992 = vst.msk [vmem:[%s13580_s1 + $0xb] ss:$16 sm:$0xc0] %vm13_vm0, %v3383_v41  }
 0x271   :  { %6001 = vst.msk [vmem:[%s13580_s1 + $0x18b] ss:$16 sm:$0x3] %vm13_vm0, %v3422_v48   ;;  %6002 = vst.msk [vmem:[%s13580_s1 + $0x18b] ss:$16 sm:$0xc] %vm13_vm0, %v3422_v48   ;;  %4173 = vrot.lane.b32.xlu1 %v9819_v56, %s6522_s15  ;;  %4160 = vrot.lane.b32.xlu0 %v9821_v57, %s6522_s15 }
 0x272   :  { %6003 = vst.msk [vmem:[%s13580_s1 + $0x18b] ss:$16 sm:$0x30] %vm13_vm0, %v3422_v48   ;;  %6004 = vst.msk [vmem:[%s13580_s1 + $0x18b] ss:$16 sm:$0xc0] %vm13_vm0, %v3422_v48  }
 0x273   :  { %5997 = vst.msk [vmem:[%s13580_s1 + $0x10b] ss:$16 sm:$0x3] %vm13_vm0, %v3409_v49   ;;  %5998 = vst.msk [vmem:[%s13580_s1 + $0x10b] ss:$16 sm:$0xc] %vm13_vm0, %v3409_v49   ;;  %v3448_v56 = vpop.permute.xlu1 %3447   ;;  %v3435_v57 = vpop.permute.xlu0 %3434  }
 0x274   :  { %5999 = vst.msk [vmem:[%s13580_s1 + $0x10b] ss:$16 sm:$0x30] %vm13_vm0, %v3409_v49   ;;  %6000 = vst.msk [vmem:[%s13580_s1 + $0x10b] ss:$16 sm:$0xc0] %vm13_vm0, %v3409_v49  }
 0x275   :  { %6009 = vst.msk [vmem:[%s13580_s1 + $0x28b] ss:$16 sm:$0x3] %vm13_vm0, %v3448_v56   ;;  %6010 = vst.msk [vmem:[%s13580_s1 + $0x28b] ss:$16 sm:$0xc] %vm13_vm0, %v3448_v56   ;;  %4199 = vrot.lane.b32.xlu1 %v9859_v1, %s6522_s15  ;;  %4186 = vrot.lane.b32.xlu0 %v9861_v3, %s6522_s15 }
 0x276   :  { %6011 = vst.msk [vmem:[%s13580_s1 + $0x28b] ss:$16 sm:$0x30] %vm13_vm0, %v3448_v56   ;;  %6012 = vst.msk [vmem:[%s13580_s1 + $0x28b] ss:$16 sm:$0xc0] %vm13_vm0, %v3448_v56  }
 0x277   :  { %6005 = vst.msk [vmem:[%s13580_s1 + $0x20b] ss:$16 sm:$0x3] %vm13_vm0, %v3435_v57   ;;  %6006 = vst.msk [vmem:[%s13580_s1 + $0x20b] ss:$16 sm:$0xc] %vm13_vm0, %v3435_v57   ;;  %v3474_v1 = vpop.permute.xlu1 %3473   ;;  %v3461_v3 = vpop.permute.xlu0 %3460  }
 0x278   :  { %6007 = vst.msk [vmem:[%s13580_s1 + $0x20b] ss:$16 sm:$0x30] %vm13_vm0, %v3435_v57   ;;  %6008 = vst.msk [vmem:[%s13580_s1 + $0x20b] ss:$16 sm:$0xc0] %vm13_vm0, %v3435_v57  }
 0x279   :  { %6017 = vst.msk [vmem:[%s13580_s1 + $0x38b] ss:$16 sm:$0x3] %vm13_vm0, %v3474_v1   ;;  %6018 = vst.msk [vmem:[%s13580_s1 + $0x38b] ss:$16 sm:$0xc] %vm13_vm0, %v3474_v1   ;;  %4225 = vrot.lane.b32.xlu1 %v9899_v6, %s6522_s15  ;;  %4212 = vrot.lane.b32.xlu0 %v9901_v7, %s6522_s15 }
 0x27a   :  { %6019 = vst.msk [vmem:[%s13580_s1 + $0x38b] ss:$16 sm:$0x30] %vm13_vm0, %v3474_v1   ;;  %6020 = vst.msk [vmem:[%s13580_s1 + $0x38b] ss:$16 sm:$0xc0] %vm13_vm0, %v3474_v1  }
 0x27b   :  { %6013 = vst.msk [vmem:[%s13580_s1 + $0x30b] ss:$16 sm:$0x3] %vm13_vm0, %v3461_v3   ;;  %6014 = vst.msk [vmem:[%s13580_s1 + $0x30b] ss:$16 sm:$0xc] %vm13_vm0, %v3461_v3   ;;  %v3500_v6 = vpop.permute.xlu1 %3499   ;;  %v3487_v7 = vpop.permute.xlu0 %3486  }
 0x27c   :  { %6015 = vst.msk [vmem:[%s13580_s1 + $0x30b] ss:$16 sm:$0x30] %vm13_vm0, %v3461_v3   ;;  %6016 = vst.msk [vmem:[%s13580_s1 + $0x30b] ss:$16 sm:$0xc0] %vm13_vm0, %v3461_v3  }
 0x27d   :  { %6025 = vst.msk [vmem:[%s13580_s1 + $0x48b] ss:$16 sm:$0x3] %vm13_vm0, %v3500_v6   ;;  %6026 = vst.msk [vmem:[%s13580_s1 + $0x48b] ss:$16 sm:$0xc] %vm13_vm0, %v3500_v6   ;;  %4251 = vrot.lane.b32.xlu1 %v9939_v10, %s6522_s15  ;;  %4238 = vrot.lane.b32.xlu0 %v9941_v11, %s6522_s15 }
 0x27e   :  { %6027 = vst.msk [vmem:[%s13580_s1 + $0x48b] ss:$16 sm:$0x30] %vm13_vm0, %v3500_v6   ;;  %6028 = vst.msk [vmem:[%s13580_s1 + $0x48b] ss:$16 sm:$0xc0] %vm13_vm0, %v3500_v6  }
 0x27f   :  { %6021 = vst.msk [vmem:[%s13580_s1 + $0x40b] ss:$16 sm:$0x3] %vm13_vm0, %v3487_v7   ;;  %6022 = vst.msk [vmem:[%s13580_s1 + $0x40b] ss:$16 sm:$0xc] %vm13_vm0, %v3487_v7   ;;  %v3526_v10 = vpop.permute.xlu1 %3525   ;;  %v3513_v11 = vpop.permute.xlu0 %3512  }
 0x280   :  { %6023 = vst.msk [vmem:[%s13580_s1 + $0x40b] ss:$16 sm:$0x30] %vm13_vm0, %v3487_v7   ;;  %6024 = vst.msk [vmem:[%s13580_s1 + $0x40b] ss:$16 sm:$0xc0] %vm13_vm0, %v3487_v7  }
 0x281   :  { %6033 = vst.msk [vmem:[%s13580_s1 + $0x58b] ss:$16 sm:$0x3] %vm13_vm0, %v3526_v10   ;;  %6034 = vst.msk [vmem:[%s13580_s1 + $0x58b] ss:$16 sm:$0xc] %vm13_vm0, %v3526_v10   ;;  %4277 = vrot.lane.b32.xlu1 %v9979_v14, %s6522_s15  ;;  %4264 = vrot.lane.b32.xlu0 %v9981_v15, %s6522_s15 }
 0x282   :  { %6035 = vst.msk [vmem:[%s13580_s1 + $0x58b] ss:$16 sm:$0x30] %vm13_vm0, %v3526_v10   ;;  %6036 = vst.msk [vmem:[%s13580_s1 + $0x58b] ss:$16 sm:$0xc0] %vm13_vm0, %v3526_v10  }
 0x283   :  { %6029 = vst.msk [vmem:[%s13580_s1 + $0x50b] ss:$16 sm:$0x3] %vm13_vm0, %v3513_v11   ;;  %6030 = vst.msk [vmem:[%s13580_s1 + $0x50b] ss:$16 sm:$0xc] %vm13_vm0, %v3513_v11   ;;  %v3552_v14 = vpop.permute.xlu1 %3551   ;;  %v3539_v15 = vpop.permute.xlu0 %3538  }
 0x284   :  { %6031 = vst.msk [vmem:[%s13580_s1 + $0x50b] ss:$16 sm:$0x30] %vm13_vm0, %v3513_v11   ;;  %6032 = vst.msk [vmem:[%s13580_s1 + $0x50b] ss:$16 sm:$0xc0] %vm13_vm0, %v3513_v11  }
 0x285   :  { %6041 = vst.msk [vmem:[%s13580_s1 + $0x68b] ss:$16 sm:$0x3] %vm13_vm0, %v3552_v14   ;;  %6042 = vst.msk [vmem:[%s13580_s1 + $0x68b] ss:$16 sm:$0xc] %vm13_vm0, %v3552_v14   ;;  %4303 = vrot.lane.b32.xlu1 %v10019_v26, %s6522_s15  ;;  %4290 = vrot.lane.b32.xlu0 %v10021_v27, %s6522_s15 }
 0x286   :  { %6043 = vst.msk [vmem:[%s13580_s1 + $0x68b] ss:$16 sm:$0x30] %vm13_vm0, %v3552_v14   ;;  %6044 = vst.msk [vmem:[%s13580_s1 + $0x68b] ss:$16 sm:$0xc0] %vm13_vm0, %v3552_v14  }
 0x287   :  { %6037 = vst.msk [vmem:[%s13580_s1 + $0x60b] ss:$16 sm:$0x3] %vm13_vm0, %v3539_v15   ;;  %6038 = vst.msk [vmem:[%s13580_s1 + $0x60b] ss:$16 sm:$0xc] %vm13_vm0, %v3539_v15   ;;  %v3578_v54 = vpop.permute.xlu1 %3577   ;;  %v3565_v55 = vpop.permute.xlu0 %3564  }
 0x288   :  { %6039 = vst.msk [vmem:[%s13580_s1 + $0x60b] ss:$16 sm:$0x30] %vm13_vm0, %v3539_v15   ;;  %6040 = vst.msk [vmem:[%s13580_s1 + $0x60b] ss:$16 sm:$0xc0] %vm13_vm0, %v3539_v15  }
 0x289   :  { %v11355_v26 = vld [vmem:[#allocation0 + $0x8] sm:$0xff]   ;;  %v11357_v27 = vld [vmem:[#allocation0] sm:$0xff]   ;;  %6049 = vst.msk [vmem:[%s13580_s1 + $0x78b] ss:$16 sm:$0x3] %vm13_vm0, %v3578_v54   ;;  %v11395_v58 = vld [vmem:[#allocation0 + $0x18] sm:$0xff]  }
 0x28a   :  { %6050 = vst.msk [vmem:[%s13580_s1 + $0x78b] ss:$16 sm:$0xc] %vm13_vm0, %v3578_v54   ;;  %6051 = vst.msk [vmem:[%s13580_s1 + $0x78b] ss:$16 sm:$0x30] %vm13_vm0, %v3578_v54   ;;  %4328 = vrot.lane.b32.xlu1 %v11355_v26, %s6523_s4  ;;  %4315 = vrot.lane.b32.xlu0 %v11357_v27, %s6523_s4 }
 0x28b   :  { %6052 = vst.msk [vmem:[%s13580_s1 + $0x78b] ss:$16 sm:$0xc0] %vm13_vm0, %v3578_v54   ;;  %6045 = vst.msk [vmem:[%s13580_s1 + $0x70b] ss:$16 sm:$0x3] %vm13_vm0, %v3565_v55   ;;  %v3604_v62 = vpop.permute.xlu1 %3603   ;;  %v3591_v63 = vpop.permute.xlu0 %3590  }
 0x28c   :  { %6046 = vst.msk [vmem:[%s13580_s1 + $0x70b] ss:$16 sm:$0xc] %vm13_vm0, %v3565_v55   ;;  %6047 = vst.msk [vmem:[%s13580_s1 + $0x70b] ss:$16 sm:$0x30] %vm13_vm0, %v3565_v55  }
 0x28d   :  { %6048 = vst.msk [vmem:[%s13580_s1 + $0x70b] ss:$16 sm:$0xc0] %vm13_vm0, %v3565_v55   ;;  %v11397_v59 = vld [vmem:[#allocation0 + $0x10] sm:$0xff]   ;;  %v11435_v16 = vld [vmem:[#allocation0 + $0x28] sm:$0xff]   ;;  %v11437_v17 = vld [vmem:[#allocation0 + $0x20] sm:$0xff]  }
 0x28e   :  { %6057 = vst.msk [vmem:[%s13580_s1 + $0x88b] ss:$16 sm:$0x3] %vm13_vm0, %v3604_v62   ;;  %6058 = vst.msk [vmem:[%s13580_s1 + $0x88b] ss:$16 sm:$0xc] %vm13_vm0, %v3604_v62   ;;  %4354 = vrot.lane.b32.xlu1 %v11395_v58, %s6523_s4  ;;  %4341 = vrot.lane.b32.xlu0 %v11397_v59, %s6523_s4 }
 0x28f   :  { %6059 = vst.msk [vmem:[%s13580_s1 + $0x88b] ss:$16 sm:$0x30] %vm13_vm0, %v3604_v62   ;;  %6060 = vst.msk [vmem:[%s13580_s1 + $0x88b] ss:$16 sm:$0xc0] %vm13_vm0, %v3604_v62   ;;  %v3630_v20 = vpop.permute.xlu1 %3629   ;;  %v3617_v21 = vpop.permute.xlu0 %3616  }
 0x290   :  { %6053 = vst.msk [vmem:[%s13580_s1 + $0x80b] ss:$16 sm:$0x3] %vm13_vm0, %v3591_v63   ;;  %6054 = vst.msk [vmem:[%s13580_s1 + $0x80b] ss:$16 sm:$0xc] %vm13_vm0, %v3591_v63  }
 0x291   :  { %6055 = vst.msk [vmem:[%s13580_s1 + $0x80b] ss:$16 sm:$0x30] %vm13_vm0, %v3591_v63   ;;  %6056 = vst.msk [vmem:[%s13580_s1 + $0x80b] ss:$16 sm:$0xc0] %vm13_vm0, %v3591_v63  }
 0x292   :  { %6065 = vst.msk [vmem:[%s13580_s1 + $0x98b] ss:$16 sm:$0x3] %vm13_vm0, %v3630_v20   ;;  %6066 = vst.msk [vmem:[%s13580_s1 + $0x98b] ss:$16 sm:$0xc] %vm13_vm0, %v3630_v20   ;;  %4380 = vrot.lane.b32.xlu1 %v11435_v16, %s6523_s4  ;;  %4367 = vrot.lane.b32.xlu0 %v11437_v17, %s6523_s4 }
 0x293   :  { %6067 = vst.msk [vmem:[%s13580_s1 + $0x98b] ss:$16 sm:$0x30] %vm13_vm0, %v3630_v20   ;;  %6068 = vst.msk [vmem:[%s13580_s1 + $0x98b] ss:$16 sm:$0xc0] %vm13_vm0, %v3630_v20   ;;  %v3656_v36 = vpop.permute.xlu1 %3655   ;;  %v3643_v37 = vpop.permute.xlu0 %3642  }
 0x294   :  { %6061 = vst.msk [vmem:[%s13580_s1 + $0x90b] ss:$16 sm:$0x3] %vm13_vm0, %v3617_v21   ;;  %6062 = vst.msk [vmem:[%s13580_s1 + $0x90b] ss:$16 sm:$0xc] %vm13_vm0, %v3617_v21  }
 0x295   :  { %6063 = vst.msk [vmem:[%s13580_s1 + $0x90b] ss:$16 sm:$0x30] %vm13_vm0, %v3617_v21   ;;  %6064 = vst.msk [vmem:[%s13580_s1 + $0x90b] ss:$16 sm:$0xc0] %vm13_vm0, %v3617_v21  }
 0x296   :  { %v11475_v28 = vld [vmem:[#allocation0 + $0x38] sm:$0xff]   ;;  %v11477_v29 = vld [vmem:[#allocation0 + $0x30] sm:$0xff]   ;;  %6073 = vst.msk [vmem:[%s13580_s1 + $0xa8b] ss:$16 sm:$0x3] %vm13_vm0, %v3656_v36   ;;  %v11515_v44 = vld [vmem:[#allocation0 + $0x48] sm:$0xff]  }
 0x297   :  { %6074 = vst.msk [vmem:[%s13580_s1 + $0xa8b] ss:$16 sm:$0xc] %vm13_vm0, %v3656_v36   ;;  %6075 = vst.msk [vmem:[%s13580_s1 + $0xa8b] ss:$16 sm:$0x30] %vm13_vm0, %v3656_v36   ;;  %4406 = vrot.lane.b32.xlu1 %v11475_v28, %s6523_s4  ;;  %4393 = vrot.lane.b32.xlu0 %v11477_v29, %s6523_s4  ;;  %v3682_v52 = vpop.permute.xlu1 %3681   ;;  %v3669_v53 = vpop.permute.xlu0 %3668  }
 0x298   :  { %6076 = vst.msk [vmem:[%s13580_s1 + $0xa8b] ss:$16 sm:$0xc0] %vm13_vm0, %v3656_v36   ;;  %6069 = vst.msk [vmem:[%s13580_s1 + $0xa0b] ss:$16 sm:$0x3] %vm13_vm0, %v3643_v37  }
 0x299   :  { %6070 = vst.msk [vmem:[%s13580_s1 + $0xa0b] ss:$16 sm:$0xc] %vm13_vm0, %v3643_v37   ;;  %6071 = vst.msk [vmem:[%s13580_s1 + $0xa0b] ss:$16 sm:$0x30] %vm13_vm0, %v3643_v37  }
 0x29a   :  { %6072 = vst.msk [vmem:[%s13580_s1 + $0xa0b] ss:$16 sm:$0xc0] %vm13_vm0, %v3643_v37   ;;  %v11517_v45 = vld [vmem:[#allocation0 + $0x40] sm:$0xff]   ;;  %v11555_v60 = vld [vmem:[#allocation0 + $0x58] sm:$0xff]   ;;  %v11557_v61 = vld [vmem:[#allocation0 + $0x50] sm:$0xff]  }
 0x29b   :  { %6081 = vst.msk [vmem:[%s13580_s1 + $0xb8b] ss:$16 sm:$0x3] %vm13_vm0, %v3682_v52   ;;  %6082 = vst.msk [vmem:[%s13580_s1 + $0xb8b] ss:$16 sm:$0xc] %vm13_vm0, %v3682_v52   ;;  %4432 = vrot.lane.b32.xlu1 %v11515_v44, %s6523_s4  ;;  %4419 = vrot.lane.b32.xlu0 %v11517_v45, %s6523_s4  ;;  %v3707_v4 = vpop.permute.xlu1 %3706   ;;  %v3694_v5 = vpop.permute.xlu0 %3693  }
 0x29c   :  { %6083 = vst.msk [vmem:[%s13580_s1 + $0xb8b] ss:$16 sm:$0x30] %vm13_vm0, %v3682_v52   ;;  %6084 = vst.msk [vmem:[%s13580_s1 + $0xb8b] ss:$16 sm:$0xc0] %vm13_vm0, %v3682_v52  }
 0x29d   :  { %6077 = vst.msk [vmem:[%s13580_s1 + $0xb0b] ss:$16 sm:$0x3] %vm13_vm0, %v3669_v53   ;;  %6078 = vst.msk [vmem:[%s13580_s1 + $0xb0b] ss:$16 sm:$0xc] %vm13_vm0, %v3669_v53  }
 0x29e   :  { %6079 = vst.msk [vmem:[%s13580_s1 + $0xb0b] ss:$16 sm:$0x30] %vm13_vm0, %v3669_v53   ;;  %6080 = vst.msk [vmem:[%s13580_s1 + $0xb0b] ss:$16 sm:$0xc0] %vm13_vm0, %v3669_v53  }
 0x29f   :  { %6089 = vst.msk [vmem:[%s13580_s1 + $0x8c] ss:$16 sm:$0x3] %vm13_vm0, %v3707_v4   ;;  %6090 = vst.msk [vmem:[%s13580_s1 + $0x8c] ss:$16 sm:$0xc] %vm13_vm0, %v3707_v4   ;;  %4458 = vrot.lane.b32.xlu1 %v11555_v60, %s6523_s4  ;;  %4445 = vrot.lane.b32.xlu0 %v11557_v61, %s6523_s4  ;;  %v3733_v12 = vpop.permute.xlu1 %3732   ;;  %v3720_v13 = vpop.permute.xlu0 %3719  }
 0x2a0   :  { %6091 = vst.msk [vmem:[%s13580_s1 + $0x8c] ss:$16 sm:$0x30] %vm13_vm0, %v3707_v4   ;;  %6092 = vst.msk [vmem:[%s13580_s1 + $0x8c] ss:$16 sm:$0xc0] %vm13_vm0, %v3707_v4  }
 0x2a1   :  { %6085 = vst.msk [vmem:[%s13580_s1 + $0xc] ss:$16 sm:$0x3] %vm13_vm0, %v3694_v5   ;;  %6086 = vst.msk [vmem:[%s13580_s1 + $0xc] ss:$16 sm:$0xc] %vm13_vm0, %v3694_v5  }
 0x2a2   :  { %6087 = vst.msk [vmem:[%s13580_s1 + $0xc] ss:$16 sm:$0x30] %vm13_vm0, %v3694_v5   ;;  %6088 = vst.msk [vmem:[%s13580_s1 + $0xc] ss:$16 sm:$0xc0] %vm13_vm0, %v3694_v5  }
 0x2a3   :  { %v11595_v8 = vld [vmem:[#allocation0 + $0x68] sm:$0xff]   ;;  %v11597_v9 = vld [vmem:[#allocation0 + $0x60] sm:$0xff]   ;;  %6097 = vst.msk [vmem:[%s13580_s1 + $0x18c] ss:$16 sm:$0x3] %vm13_vm0, %v3733_v12   ;;  %v11635_v22 = vld [vmem:[#allocation0 + $0x78] sm:$0xff]   ;;  %v3759_v30 = vpop.permute.xlu1 %3758   ;;  %v3746_v31 = vpop.permute.xlu0 %3745  }
 0x2a4   :  { %6098 = vst.msk [vmem:[%s13580_s1 + $0x18c] ss:$16 sm:$0xc] %vm13_vm0, %v3733_v12   ;;  %6099 = vst.msk [vmem:[%s13580_s1 + $0x18c] ss:$16 sm:$0x30] %vm13_vm0, %v3733_v12   ;;  %4484 = vrot.lane.b32.xlu1 %v11595_v8, %s6523_s4  ;;  %4471 = vrot.lane.b32.xlu0 %v11597_v9, %s6523_s4 }
 0x2a5   :  { %6100 = vst.msk [vmem:[%s13580_s1 + $0x18c] ss:$16 sm:$0xc0] %vm13_vm0, %v3733_v12   ;;  %6093 = vst.msk [vmem:[%s13580_s1 + $0x10c] ss:$16 sm:$0x3] %vm13_vm0, %v3720_v13  }
 0x2a6   :  { %6094 = vst.msk [vmem:[%s13580_s1 + $0x10c] ss:$16 sm:$0xc] %vm13_vm0, %v3720_v13   ;;  %6095 = vst.msk [vmem:[%s13580_s1 + $0x10c] ss:$16 sm:$0x30] %vm13_vm0, %v3720_v13  }
 0x2a7   :  { %6096 = vst.msk [vmem:[%s13580_s1 + $0x10c] ss:$16 sm:$0xc0] %vm13_vm0, %v3720_v13   ;;  %v11637_v23 = vld [vmem:[#allocation0 + $0x70] sm:$0xff]   ;;  %v11675_v34 = vld [vmem:[#allocation0 + $0x88] sm:$0xff]   ;;  %v11677_v35 = vld [vmem:[#allocation0 + $0x80] sm:$0xff]   ;;  %v3785_v38 = vpop.permute.xlu1 %3784   ;;  %v3772_v39 = vpop.permute.xlu0 %3771  }
 0x2a8   :  { %6105 = vst.msk [vmem:[%s13580_s1 + $0x28c] ss:$16 sm:$0x3] %vm13_vm0, %v3759_v30   ;;  %6106 = vst.msk [vmem:[%s13580_s1 + $0x28c] ss:$16 sm:$0xc] %vm13_vm0, %v3759_v30   ;;  %4510 = vrot.lane.b32.xlu1 %v11635_v22, %s6523_s4  ;;  %4497 = vrot.lane.b32.xlu0 %v11637_v23, %s6523_s4 }
 0x2a9   :  { %6107 = vst.msk [vmem:[%s13580_s1 + $0x28c] ss:$16 sm:$0x30] %vm13_vm0, %v3759_v30   ;;  %6108 = vst.msk [vmem:[%s13580_s1 + $0x28c] ss:$16 sm:$0xc0] %vm13_vm0, %v3759_v30  }
 0x2aa   :  { %6101 = vst.msk [vmem:[%s13580_s1 + $0x20c] ss:$16 sm:$0x3] %vm13_vm0, %v3746_v31   ;;  %6102 = vst.msk [vmem:[%s13580_s1 + $0x20c] ss:$16 sm:$0xc] %vm13_vm0, %v3746_v31  }
 0x2ab   :  { %6103 = vst.msk [vmem:[%s13580_s1 + $0x20c] ss:$16 sm:$0x30] %vm13_vm0, %v3746_v31   ;;  %6104 = vst.msk [vmem:[%s13580_s1 + $0x20c] ss:$16 sm:$0xc0] %vm13_vm0, %v3746_v31   ;;  %v3811_v46 = vpop.permute.xlu1 %3810   ;;  %v3798_v47 = vpop.permute.xlu0 %3797  }
 0x2ac   :  { %6113 = vst.msk [vmem:[%s13580_s1 + $0x38c] ss:$16 sm:$0x3] %vm13_vm0, %v3785_v38   ;;  %6114 = vst.msk [vmem:[%s13580_s1 + $0x38c] ss:$16 sm:$0xc] %vm13_vm0, %v3785_v38   ;;  %4536 = vrot.lane.b32.xlu1 %v11675_v34, %s6523_s4  ;;  %4523 = vrot.lane.b32.xlu0 %v11677_v35, %s6523_s4 }
 0x2ad   :  { %6115 = vst.msk [vmem:[%s13580_s1 + $0x38c] ss:$16 sm:$0x30] %vm13_vm0, %v3785_v38   ;;  %6116 = vst.msk [vmem:[%s13580_s1 + $0x38c] ss:$16 sm:$0xc0] %vm13_vm0, %v3785_v38  }
 0x2ae   :  { %6109 = vst.msk [vmem:[%s13580_s1 + $0x30c] ss:$16 sm:$0x3] %vm13_vm0, %v3772_v39   ;;  %6110 = vst.msk [vmem:[%s13580_s1 + $0x30c] ss:$16 sm:$0xc] %vm13_vm0, %v3772_v39  }
 0x2af   :  { %6111 = vst.msk [vmem:[%s13580_s1 + $0x30c] ss:$16 sm:$0x30] %vm13_vm0, %v3772_v39   ;;  %6112 = vst.msk [vmem:[%s13580_s1 + $0x30c] ss:$16 sm:$0xc0] %vm13_vm0, %v3772_v39   ;;  %v3837_v0 = vpop.permute.xlu1 %3836   ;;  %v3824_v2 = vpop.permute.xlu0 %3823  }
 0x2b0   :  { %v11715_v42 = vld [vmem:[#allocation0 + $0x98] sm:$0xff]   ;;  %v11717_v43 = vld [vmem:[#allocation0 + $0x90] sm:$0xff]   ;;  %6121 = vst.msk [vmem:[%s13580_s1 + $0x48c] ss:$16 sm:$0x3] %vm13_vm0, %v3811_v46   ;;  %v11755_v50 = vld [vmem:[#allocation0 + $0xa8] sm:$0xff]  }
 0x2b1   :  { %6122 = vst.msk [vmem:[%s13580_s1 + $0x48c] ss:$16 sm:$0xc] %vm13_vm0, %v3811_v46   ;;  %6123 = vst.msk [vmem:[%s13580_s1 + $0x48c] ss:$16 sm:$0x30] %vm13_vm0, %v3811_v46   ;;  %4562 = vrot.lane.b32.xlu1 %v11715_v42, %s6523_s4  ;;  %4549 = vrot.lane.b32.xlu0 %v11717_v43, %s6523_s4 }
 0x2b2   :  { %6124 = vst.msk [vmem:[%s13580_s1 + $0x48c] ss:$16 sm:$0xc0] %vm13_vm0, %v3811_v46   ;;  %6117 = vst.msk [vmem:[%s13580_s1 + $0x40c] ss:$16 sm:$0x3] %vm13_vm0, %v3798_v47  }
 0x2b3   :  { %6118 = vst.msk [vmem:[%s13580_s1 + $0x40c] ss:$16 sm:$0xc] %vm13_vm0, %v3798_v47   ;;  %6119 = vst.msk [vmem:[%s13580_s1 + $0x40c] ss:$16 sm:$0x30] %vm13_vm0, %v3798_v47   ;;  %v3863_v24 = vpop.permute.xlu1 %3862   ;;  %v3850_v25 = vpop.permute.xlu0 %3849  }
 0x2b4   :  { %6120 = vst.msk [vmem:[%s13580_s1 + $0x40c] ss:$16 sm:$0xc0] %vm13_vm0, %v3798_v47   ;;  %v11757_v51 = vld [vmem:[#allocation0 + $0xa0] sm:$0xff]   ;;  %v11795_v18 = vld [vmem:[#allocation0 + $0xb8] sm:$0xff]   ;;  %v11797_v19 = vld [vmem:[#allocation0 + $0xb0] sm:$0xff]  }
 0x2b5   :  { %6129 = vst.msk [vmem:[%s13580_s1 + $0x58c] ss:$16 sm:$0x3] %vm13_vm0, %v3837_v0   ;;  %6130 = vst.msk [vmem:[%s13580_s1 + $0x58c] ss:$16 sm:$0xc] %vm13_vm0, %v3837_v0   ;;  %4588 = vrot.lane.b32.xlu1 %v11755_v50, %s6523_s4  ;;  %4575 = vrot.lane.b32.xlu0 %v11757_v51, %s6523_s4 }
 0x2b6   :  { %6131 = vst.msk [vmem:[%s13580_s1 + $0x58c] ss:$16 sm:$0x30] %vm13_vm0, %v3837_v0   ;;  %6132 = vst.msk [vmem:[%s13580_s1 + $0x58c] ss:$16 sm:$0xc0] %vm13_vm0, %v3837_v0  }
 0x2b7   :  { %6125 = vst.msk [vmem:[%s13580_s1 + $0x50c] ss:$16 sm:$0x3] %vm13_vm0, %v3824_v2   ;;  %6126 = vst.msk [vmem:[%s13580_s1 + $0x50c] ss:$16 sm:$0xc] %vm13_vm0, %v3824_v2   ;;  %v3889_v32 = vpop.permute.xlu1 %3888   ;;  %v3876_v33 = vpop.permute.xlu0 %3875  }
 0x2b8   :  { %6127 = vst.msk [vmem:[%s13580_s1 + $0x50c] ss:$16 sm:$0x30] %vm13_vm0, %v3824_v2   ;;  %6128 = vst.msk [vmem:[%s13580_s1 + $0x50c] ss:$16 sm:$0xc0] %vm13_vm0, %v3824_v2  }
 0x2b9   :  { %6137 = vst.msk [vmem:[%s13580_s1 + $0x68c] ss:$16 sm:$0x3] %vm13_vm0, %v3863_v24   ;;  %6138 = vst.msk [vmem:[%s13580_s1 + $0x68c] ss:$16 sm:$0xc] %vm13_vm0, %v3863_v24   ;;  %4614 = vrot.lane.b32.xlu1 %v11795_v18, %s6523_s4  ;;  %4601 = vrot.lane.b32.xlu0 %v11797_v19, %s6523_s4 }
 0x2ba   :  { %6139 = vst.msk [vmem:[%s13580_s1 + $0x68c] ss:$16 sm:$0x30] %vm13_vm0, %v3863_v24   ;;  %6140 = vst.msk [vmem:[%s13580_s1 + $0x68c] ss:$16 sm:$0xc0] %vm13_vm0, %v3863_v24  }
 0x2bb   :  { %6133 = vst.msk [vmem:[%s13580_s1 + $0x60c] ss:$16 sm:$0x3] %vm13_vm0, %v3850_v25   ;;  %6134 = vst.msk [vmem:[%s13580_s1 + $0x60c] ss:$16 sm:$0xc] %vm13_vm0, %v3850_v25   ;;  %v3915_v40 = vpop.permute.xlu1 %3914   ;;  %v3902_v41 = vpop.permute.xlu0 %3901  }
 0x2bc   :  { %6135 = vst.msk [vmem:[%s13580_s1 + $0x60c] ss:$16 sm:$0x30] %vm13_vm0, %v3850_v25   ;;  %6136 = vst.msk [vmem:[%s13580_s1 + $0x60c] ss:$16 sm:$0xc0] %vm13_vm0, %v3850_v25  }
 0x2bd   :  { %6145 = vst.msk [vmem:[%s13580_s1 + $0x78c] ss:$16 sm:$0x3] %vm13_vm0, %v3889_v32   ;;  %6146 = vst.msk [vmem:[%s13580_s1 + $0x78c] ss:$16 sm:$0xc] %vm13_vm0, %v3889_v32   ;;  %4639 = vrot.lane.b32.xlu1 %v11355_v26, %s6524_s21  ;;  %4626 = vrot.lane.b32.xlu0 %v11357_v27, %s6524_s21 }
 0x2be   :  { %6147 = vst.msk [vmem:[%s13580_s1 + $0x78c] ss:$16 sm:$0x30] %vm13_vm0, %v3889_v32   ;;  %6148 = vst.msk [vmem:[%s13580_s1 + $0x78c] ss:$16 sm:$0xc0] %vm13_vm0, %v3889_v32  }
 0x2bf   :  { %6141 = vst.msk [vmem:[%s13580_s1 + $0x70c] ss:$16 sm:$0x3] %vm13_vm0, %v3876_v33   ;;  %6142 = vst.msk [vmem:[%s13580_s1 + $0x70c] ss:$16 sm:$0xc] %vm13_vm0, %v3876_v33   ;;  %v3941_v48 = vpop.permute.xlu1 %3940   ;;  %v3928_v49 = vpop.permute.xlu0 %3927  }
 0x2c0   :  { %6143 = vst.msk [vmem:[%s13580_s1 + $0x70c] ss:$16 sm:$0x30] %vm13_vm0, %v3876_v33   ;;  %6144 = vst.msk [vmem:[%s13580_s1 + $0x70c] ss:$16 sm:$0xc0] %vm13_vm0, %v3876_v33  }
 0x2c1   :  { %6153 = vst.msk [vmem:[%s13580_s1 + $0x88c] ss:$16 sm:$0x3] %vm13_vm0, %v3915_v40   ;;  %6154 = vst.msk [vmem:[%s13580_s1 + $0x88c] ss:$16 sm:$0xc] %vm13_vm0, %v3915_v40   ;;  %4665 = vrot.lane.b32.xlu1 %v11395_v58, %s6524_s21  ;;  %4652 = vrot.lane.b32.xlu0 %v11397_v59, %s6524_s21 }
 0x2c2   :  { %6155 = vst.msk [vmem:[%s13580_s1 + $0x88c] ss:$16 sm:$0x30] %vm13_vm0, %v3915_v40   ;;  %6156 = vst.msk [vmem:[%s13580_s1 + $0x88c] ss:$16 sm:$0xc0] %vm13_vm0, %v3915_v40  }
 0x2c3   :  { %6149 = vst.msk [vmem:[%s13580_s1 + $0x80c] ss:$16 sm:$0x3] %vm13_vm0, %v3902_v41   ;;  %6150 = vst.msk [vmem:[%s13580_s1 + $0x80c] ss:$16 sm:$0xc] %vm13_vm0, %v3902_v41   ;;  %v3967_v56 = vpop.permute.xlu1 %3966   ;;  %v3954_v57 = vpop.permute.xlu0 %3953  }
 0x2c4   :  { %6151 = vst.msk [vmem:[%s13580_s1 + $0x80c] ss:$16 sm:$0x30] %vm13_vm0, %v3902_v41   ;;  %6152 = vst.msk [vmem:[%s13580_s1 + $0x80c] ss:$16 sm:$0xc0] %vm13_vm0, %v3902_v41  }
 0x2c5   :  { %6161 = vst.msk [vmem:[%s13580_s1 + $0x98c] ss:$16 sm:$0x3] %vm13_vm0, %v3941_v48   ;;  %6162 = vst.msk [vmem:[%s13580_s1 + $0x98c] ss:$16 sm:$0xc] %vm13_vm0, %v3941_v48   ;;  %4691 = vrot.lane.b32.xlu1 %v11435_v16, %s6524_s21  ;;  %4678 = vrot.lane.b32.xlu0 %v11437_v17, %s6524_s21 }
 0x2c6   :  { %6163 = vst.msk [vmem:[%s13580_s1 + $0x98c] ss:$16 sm:$0x30] %vm13_vm0, %v3941_v48   ;;  %6164 = vst.msk [vmem:[%s13580_s1 + $0x98c] ss:$16 sm:$0xc0] %vm13_vm0, %v3941_v48  }
 0x2c7   :  { %6157 = vst.msk [vmem:[%s13580_s1 + $0x90c] ss:$16 sm:$0x3] %vm13_vm0, %v3928_v49   ;;  %6158 = vst.msk [vmem:[%s13580_s1 + $0x90c] ss:$16 sm:$0xc] %vm13_vm0, %v3928_v49   ;;  %v3993_v1 = vpop.permute.xlu1 %3992   ;;  %v3980_v3 = vpop.permute.xlu0 %3979  }
 0x2c8   :  { %6159 = vst.msk [vmem:[%s13580_s1 + $0x90c] ss:$16 sm:$0x30] %vm13_vm0, %v3928_v49   ;;  %6160 = vst.msk [vmem:[%s13580_s1 + $0x90c] ss:$16 sm:$0xc0] %vm13_vm0, %v3928_v49  }
 0x2c9   :  { %6169 = vst.msk [vmem:[%s13580_s1 + $0xa8c] ss:$16 sm:$0x3] %vm13_vm0, %v3967_v56   ;;  %6170 = vst.msk [vmem:[%s13580_s1 + $0xa8c] ss:$16 sm:$0xc] %vm13_vm0, %v3967_v56   ;;  %4717 = vrot.lane.b32.xlu1 %v11475_v28, %s6524_s21  ;;  %4704 = vrot.lane.b32.xlu0 %v11477_v29, %s6524_s21 }
 0x2ca   :  { %6171 = vst.msk [vmem:[%s13580_s1 + $0xa8c] ss:$16 sm:$0x30] %vm13_vm0, %v3967_v56   ;;  %6172 = vst.msk [vmem:[%s13580_s1 + $0xa8c] ss:$16 sm:$0xc0] %vm13_vm0, %v3967_v56  }
 0x2cb   :  { %6165 = vst.msk [vmem:[%s13580_s1 + $0xa0c] ss:$16 sm:$0x3] %vm13_vm0, %v3954_v57   ;;  %6166 = vst.msk [vmem:[%s13580_s1 + $0xa0c] ss:$16 sm:$0xc] %vm13_vm0, %v3954_v57   ;;  %v4018_v6 = vpop.permute.xlu1 %4017   ;;  %v4005_v7 = vpop.permute.xlu0 %4004  }
 0x2cc   :  { %6167 = vst.msk [vmem:[%s13580_s1 + $0xa0c] ss:$16 sm:$0x30] %vm13_vm0, %v3954_v57   ;;  %6168 = vst.msk [vmem:[%s13580_s1 + $0xa0c] ss:$16 sm:$0xc0] %vm13_vm0, %v3954_v57  }
 0x2cd   :  { %6177 = vst.msk [vmem:[%s13580_s1 + $0xb8c] ss:$16 sm:$0x3] %vm13_vm0, %v3993_v1   ;;  %6178 = vst.msk [vmem:[%s13580_s1 + $0xb8c] ss:$16 sm:$0xc] %vm13_vm0, %v3993_v1   ;;  %4743 = vrot.lane.b32.xlu1 %v11515_v44, %s6524_s21  ;;  %4730 = vrot.lane.b32.xlu0 %v11517_v45, %s6524_s21 }
 0x2ce   :  { %6179 = vst.msk [vmem:[%s13580_s1 + $0xb8c] ss:$16 sm:$0x30] %vm13_vm0, %v3993_v1   ;;  %6180 = vst.msk [vmem:[%s13580_s1 + $0xb8c] ss:$16 sm:$0xc0] %vm13_vm0, %v3993_v1  }
 0x2cf   :  { %6173 = vst.msk [vmem:[%s13580_s1 + $0xb0c] ss:$16 sm:$0x3] %vm13_vm0, %v3980_v3   ;;  %6174 = vst.msk [vmem:[%s13580_s1 + $0xb0c] ss:$16 sm:$0xc] %vm13_vm0, %v3980_v3   ;;  %v4044_v10 = vpop.permute.xlu1 %4043   ;;  %v4031_v11 = vpop.permute.xlu0 %4030  }
 0x2d0   :  { %6175 = vst.msk [vmem:[%s13580_s1 + $0xb0c] ss:$16 sm:$0x30] %vm13_vm0, %v3980_v3   ;;  %6176 = vst.msk [vmem:[%s13580_s1 + $0xb0c] ss:$16 sm:$0xc0] %vm13_vm0, %v3980_v3  }
 0x2d1   :  { %6185 = vst.msk [vmem:[%s13580_s1 + $0x8d] ss:$16 sm:$0x3] %vm13_vm0, %v4018_v6   ;;  %6186 = vst.msk [vmem:[%s13580_s1 + $0x8d] ss:$16 sm:$0xc] %vm13_vm0, %v4018_v6   ;;  %4769 = vrot.lane.b32.xlu1 %v11555_v60, %s6524_s21  ;;  %4756 = vrot.lane.b32.xlu0 %v11557_v61, %s6524_s21 }
 0x2d2   :  { %6187 = vst.msk [vmem:[%s13580_s1 + $0x8d] ss:$16 sm:$0x30] %vm13_vm0, %v4018_v6   ;;  %6188 = vst.msk [vmem:[%s13580_s1 + $0x8d] ss:$16 sm:$0xc0] %vm13_vm0, %v4018_v6  }
 0x2d3   :  { %6181 = vst.msk [vmem:[%s13580_s1 + $0xd] ss:$16 sm:$0x3] %vm13_vm0, %v4005_v7   ;;  %6182 = vst.msk [vmem:[%s13580_s1 + $0xd] ss:$16 sm:$0xc] %vm13_vm0, %v4005_v7   ;;  %v4070_v14 = vpop.permute.xlu1 %4069   ;;  %v4057_v15 = vpop.permute.xlu0 %4056  }
 0x2d4   :  { %6183 = vst.msk [vmem:[%s13580_s1 + $0xd] ss:$16 sm:$0x30] %vm13_vm0, %v4005_v7   ;;  %6184 = vst.msk [vmem:[%s13580_s1 + $0xd] ss:$16 sm:$0xc0] %vm13_vm0, %v4005_v7  }
 0x2d5   :  { %6193 = vst.msk [vmem:[%s13580_s1 + $0x18d] ss:$16 sm:$0x3] %vm13_vm0, %v4044_v10   ;;  %6194 = vst.msk [vmem:[%s13580_s1 + $0x18d] ss:$16 sm:$0xc] %vm13_vm0, %v4044_v10   ;;  %4795 = vrot.lane.b32.xlu1 %v11595_v8, %s6524_s21  ;;  %4782 = vrot.lane.b32.xlu0 %v11597_v9, %s6524_s21 }
 0x2d6   :  { %6195 = vst.msk [vmem:[%s13580_s1 + $0x18d] ss:$16 sm:$0x30] %vm13_vm0, %v4044_v10   ;;  %6196 = vst.msk [vmem:[%s13580_s1 + $0x18d] ss:$16 sm:$0xc0] %vm13_vm0, %v4044_v10  }
 0x2d7   :  { %6189 = vst.msk [vmem:[%s13580_s1 + $0x10d] ss:$16 sm:$0x3] %vm13_vm0, %v4031_v11   ;;  %6190 = vst.msk [vmem:[%s13580_s1 + $0x10d] ss:$16 sm:$0xc] %vm13_vm0, %v4031_v11   ;;  %v4096_v26 = vpop.permute.xlu1 %4095   ;;  %v4083_v27 = vpop.permute.xlu0 %4082  }
 0x2d8   :  { %6191 = vst.msk [vmem:[%s13580_s1 + $0x10d] ss:$16 sm:$0x30] %vm13_vm0, %v4031_v11   ;;  %6192 = vst.msk [vmem:[%s13580_s1 + $0x10d] ss:$16 sm:$0xc0] %vm13_vm0, %v4031_v11  }
 0x2d9   :  { %6201 = vst.msk [vmem:[%s13580_s1 + $0x28d] ss:$16 sm:$0x3] %vm13_vm0, %v4070_v14   ;;  %6202 = vst.msk [vmem:[%s13580_s1 + $0x28d] ss:$16 sm:$0xc] %vm13_vm0, %v4070_v14   ;;  %4821 = vrot.lane.b32.xlu1 %v11635_v22, %s6524_s21  ;;  %4808 = vrot.lane.b32.xlu0 %v11637_v23, %s6524_s21 }
 0x2da   :  { %6203 = vst.msk [vmem:[%s13580_s1 + $0x28d] ss:$16 sm:$0x30] %vm13_vm0, %v4070_v14   ;;  %6204 = vst.msk [vmem:[%s13580_s1 + $0x28d] ss:$16 sm:$0xc0] %vm13_vm0, %v4070_v14  }
 0x2db   :  { %6197 = vst.msk [vmem:[%s13580_s1 + $0x20d] ss:$16 sm:$0x3] %vm13_vm0, %v4057_v15   ;;  %6198 = vst.msk [vmem:[%s13580_s1 + $0x20d] ss:$16 sm:$0xc] %vm13_vm0, %v4057_v15   ;;  %v4122_v36 = vpop.permute.xlu1 %4121   ;;  %v4109_v37 = vpop.permute.xlu0 %4108  }
 0x2dc   :  { %6199 = vst.msk [vmem:[%s13580_s1 + $0x20d] ss:$16 sm:$0x30] %vm13_vm0, %v4057_v15   ;;  %6200 = vst.msk [vmem:[%s13580_s1 + $0x20d] ss:$16 sm:$0xc0] %vm13_vm0, %v4057_v15  }
 0x2dd   :  { %v12_v54 = vld [vmem:[#allocation0] sm:$0xff]   ;;  %v19_v55 = vld [vmem:[#allocation0 + $0x8] sm:$0xff]   ;;  %v30_v58 = vld [vmem:[#allocation0 + $0x10] sm:$0xff]   ;;  %6209 = vst.msk [vmem:[%s13580_s1 + $0x38d] ss:$16 sm:$0x3] %vm13_vm0, %v4096_v26   ;;  %4847 = vrot.lane.b32.xlu1 %v11675_v34, %s6524_s21  ;;  %4834 = vrot.lane.b32.xlu0 %v11677_v35, %s6524_s21 }
 0x2de   :  { %6210 = vst.msk [vmem:[%s13580_s1 + $0x38d] ss:$16 sm:$0xc] %vm13_vm0, %v4096_v26   ;;  %6211 = vst.msk [vmem:[%s13580_s1 + $0x38d] ss:$16 sm:$0x30] %vm13_vm0, %v4096_v26  }
 0x2df   :  { %6212 = vst.msk [vmem:[%s13580_s1 + $0x38d] ss:$16 sm:$0xc0] %vm13_vm0, %v4096_v26   ;;  %6205 = vst.msk [vmem:[%s13580_s1 + $0x30d] ss:$16 sm:$0x3] %vm13_vm0, %v4083_v27   ;;  %v4148_v22 = vpop.permute.xlu1 %4147   ;;  %v4135_v23 = vpop.permute.xlu0 %4134  }
 0x2e0   :  { %6206 = vst.msk [vmem:[%s13580_s1 + $0x30d] ss:$16 sm:$0xc] %vm13_vm0, %v4083_v27   ;;  %6207 = vst.msk [vmem:[%s13580_s1 + $0x30d] ss:$16 sm:$0x30] %vm13_vm0, %v4083_v27  }
 0x2e1   :  { %6208 = vst.msk [vmem:[%s13580_s1 + $0x30d] ss:$16 sm:$0xc0] %vm13_vm0, %v4083_v27   ;;  %14 = vst.msk [vmem:[%s13580_s1] ss:$16 sm:$0x3] %vm13_vm0, %v12_v54   ;;  %4873 = vrot.lane.b32.xlu1 %v11715_v42, %s6524_s21  ;;  %4860 = vrot.lane.b32.xlu0 %v11717_v43, %s6524_s21 }
 0x2e2   :  { %15 = vst.msk [vmem:[%s13580_s1] ss:$16 sm:$0xc] %vm13_vm0, %v12_v54   ;;  %16 = vst.msk [vmem:[%s13580_s1] ss:$16 sm:$0x30] %vm13_vm0, %v12_v54  }
 0x2e3   :  { %17 = vst.msk [vmem:[%s13580_s1] ss:$16 sm:$0xc0] %vm13_vm0, %v12_v54   ;;  %4937 = vst.msk [vmem:[%s13580_s1 + $0x80] ss:$16 sm:$0x3] %vm13_vm0, %v19_v55   ;;  %v4174_v30 = vpop.permute.xlu1 %4173   ;;  %v4161_v31 = vpop.permute.xlu0 %4160  }
 0x2e4   :  { %4938 = vst.msk [vmem:[%s13580_s1 + $0x80] ss:$16 sm:$0xc] %vm13_vm0, %v19_v55   ;;  %4939 = vst.msk [vmem:[%s13580_s1 + $0x80] ss:$16 sm:$0x30] %vm13_vm0, %v19_v55  }
 0x2e5   :  { %4940 = vst.msk [vmem:[%s13580_s1 + $0x80] ss:$16 sm:$0xc0] %vm13_vm0, %v19_v55   ;;  %4941 = vst.msk [vmem:[%s13580_s1 + $0x100] ss:$16 sm:$0x3] %vm13_vm0, %v30_v58   ;;  %4899 = vrot.lane.b32.xlu1 %v11755_v50, %s6524_s21  ;;  %4886 = vrot.lane.b32.xlu0 %v11757_v51, %s6524_s21 }
 0x2e6   :  { %4942 = vst.msk [vmem:[%s13580_s1 + $0x100] ss:$16 sm:$0xc] %vm13_vm0, %v30_v58   ;;  %4943 = vst.msk [vmem:[%s13580_s1 + $0x100] ss:$16 sm:$0x30] %vm13_vm0, %v30_v58  }
 0x2e7   :  { %4944 = vst.msk [vmem:[%s13580_s1 + $0x100] ss:$16 sm:$0xc0] %vm13_vm0, %v30_v58   ;;  %v41_v59 = vld [vmem:[#allocation0 + $0x18] sm:$0xff]   ;;  %v52_v62 = vld [vmem:[#allocation0 + $0x20] sm:$0xff]   ;;  %v63_v63 = vld [vmem:[#allocation0 + $0x28] sm:$0xff]   ;;  %v4200_v34 = vpop.permute.xlu1 %4199   ;;  %v4187_v35 = vpop.permute.xlu0 %4186  }
 0x2e8   :  { %4945 = vst.msk [vmem:[%s13580_s1 + $0x180] ss:$16 sm:$0x3] %vm13_vm0, %v41_v59   ;;  %4946 = vst.msk [vmem:[%s13580_s1 + $0x180] ss:$16 sm:$0xc] %vm13_vm0, %v41_v59  }
 0x2e9   :  { %4947 = vst.msk [vmem:[%s13580_s1 + $0x180] ss:$16 sm:$0x30] %vm13_vm0, %v41_v59   ;;  %4948 = vst.msk [vmem:[%s13580_s1 + $0x180] ss:$16 sm:$0xc0] %vm13_vm0, %v41_v59   ;;  %4925 = vrot.lane.b32.xlu1 %v11795_v18, %s6524_s21  ;;  %4912 = vrot.lane.b32.xlu0 %v11797_v19, %s6524_s21 }
 0x2ea   :  { %4949 = vst.msk [vmem:[%s13580_s1 + $0x200] ss:$16 sm:$0x3] %vm13_vm0, %v52_v62   ;;  %4950 = vst.msk [vmem:[%s13580_s1 + $0x200] ss:$16 sm:$0xc] %vm13_vm0, %v52_v62  }
 0x2eb   :  { %4951 = vst.msk [vmem:[%s13580_s1 + $0x200] ss:$16 sm:$0x30] %vm13_vm0, %v52_v62   ;;  %4952 = vst.msk [vmem:[%s13580_s1 + $0x200] ss:$16 sm:$0xc0] %vm13_vm0, %v52_v62   ;;  %v4226_v38 = vpop.permute.xlu1 %4225   ;;  %v4213_v39 = vpop.permute.xlu0 %4212  }
 0x2ec   :  { %4953 = vst.msk [vmem:[%s13580_s1 + $0x280] ss:$16 sm:$0x3] %vm13_vm0, %v63_v63   ;;  %4954 = vst.msk [vmem:[%s13580_s1 + $0x280] ss:$16 sm:$0xc] %vm13_vm0, %v63_v63  }
 0x2ed   :  { %4955 = vst.msk [vmem:[%s13580_s1 + $0x280] ss:$16 sm:$0x30] %vm13_vm0, %v63_v63   ;;  %4956 = vst.msk [vmem:[%s13580_s1 + $0x280] ss:$16 sm:$0xc0] %vm13_vm0, %v63_v63  }
 0x2ee   :  { %v74_v16 = vld [vmem:[#allocation0 + $0x30] sm:$0xff]   ;;  %v85_v17 = vld [vmem:[#allocation0 + $0x38] sm:$0xff]   ;;  %v96_v20 = vld [vmem:[#allocation0 + $0x40] sm:$0xff]   ;;  %6217 = vst.msk [vmem:[%s13580_s1 + $0x48d] ss:$16 sm:$0x3] %vm13_vm0, %v4122_v36  }
 0x2ef   :  { %4957 = vst.msk [vmem:[%s13580_s1 + $0x300] ss:$16 sm:$0x3] %vm13_vm0, %v74_v16   ;;  %4958 = vst.msk [vmem:[%s13580_s1 + $0x300] ss:$16 sm:$0xc] %vm13_vm0, %v74_v16   ;;  %v4252_v42 = vpop.permute.xlu1 %4251   ;;  %v4239_v43 = vpop.permute.xlu0 %4238  }
 0x2f0   :  { %4959 = vst.msk [vmem:[%s13580_s1 + $0x300] ss:$16 sm:$0x30] %vm13_vm0, %v74_v16   ;;  %4960 = vst.msk [vmem:[%s13580_s1 + $0x300] ss:$16 sm:$0xc0] %vm13_vm0, %v74_v16  }
 0x2f1   :  { %4961 = vst.msk [vmem:[%s13580_s1 + $0x380] ss:$16 sm:$0x3] %vm13_vm0, %v85_v17   ;;  %4962 = vst.msk [vmem:[%s13580_s1 + $0x380] ss:$16 sm:$0xc] %vm13_vm0, %v85_v17  }
 0x2f2   :  { %4963 = vst.msk [vmem:[%s13580_s1 + $0x380] ss:$16 sm:$0x30] %vm13_vm0, %v85_v17   ;;  %4964 = vst.msk [vmem:[%s13580_s1 + $0x380] ss:$16 sm:$0xc0] %vm13_vm0, %v85_v17  }
 0x2f3   :  { %4965 = vst.msk [vmem:[%s13580_s1 + $0x400] ss:$16 sm:$0x3] %vm13_vm0, %v96_v20   ;;  %4966 = vst.msk [vmem:[%s13580_s1 + $0x400] ss:$16 sm:$0xc] %vm13_vm0, %v96_v20   ;;  %v4278_v46 = vpop.permute.xlu1 %4277   ;;  %v4265_v47 = vpop.permute.xlu0 %4264  }
 0x2f4   :  { %4967 = vst.msk [vmem:[%s13580_s1 + $0x400] ss:$16 sm:$0x30] %vm13_vm0, %v96_v20   ;;  %4968 = vst.msk [vmem:[%s13580_s1 + $0x400] ss:$16 sm:$0xc0] %vm13_vm0, %v96_v20  }
 0x2f5   :  { %v107_v21 = vld [vmem:[#allocation0 + $0x48] sm:$0xff]   ;;  %v118_v28 = vld [vmem:[#allocation0 + $0x50] sm:$0xff]   ;;  %v129_v29 = vld [vmem:[#allocation0 + $0x58] sm:$0xff]   ;;  %6218 = vst.msk [vmem:[%s13580_s1 + $0x48d] ss:$16 sm:$0xc] %vm13_vm0, %v4122_v36  }
 0x2f6   :  { %4969 = vst.msk [vmem:[%s13580_s1 + $0x480] ss:$16 sm:$0x3] %vm13_vm0, %v107_v21   ;;  %4970 = vst.msk [vmem:[%s13580_s1 + $0x480] ss:$16 sm:$0xc] %vm13_vm0, %v107_v21  }
 0x2f7   :  { %4971 = vst.msk [vmem:[%s13580_s1 + $0x480] ss:$16 sm:$0x30] %vm13_vm0, %v107_v21   ;;  %4972 = vst.msk [vmem:[%s13580_s1 + $0x480] ss:$16 sm:$0xc0] %vm13_vm0, %v107_v21   ;;  %v4304_v50 = vpop.permute.xlu1 %4303   ;;  %v4291_v51 = vpop.permute.xlu0 %4290  }
 0x2f8   :  { %4973 = vst.msk [vmem:[%s13580_s1 + $0x500] ss:$16 sm:$0x3] %vm13_vm0, %v118_v28   ;;  %4974 = vst.msk [vmem:[%s13580_s1 + $0x500] ss:$16 sm:$0xc] %vm13_vm0, %v118_v28  }
 0x2f9   :  { %4975 = vst.msk [vmem:[%s13580_s1 + $0x500] ss:$16 sm:$0x30] %vm13_vm0, %v118_v28   ;;  %4976 = vst.msk [vmem:[%s13580_s1 + $0x500] ss:$16 sm:$0xc0] %vm13_vm0, %v118_v28  }
 0x2fa   :  { %4977 = vst.msk [vmem:[%s13580_s1 + $0x580] ss:$16 sm:$0x3] %vm13_vm0, %v129_v29   ;;  %4978 = vst.msk [vmem:[%s13580_s1 + $0x580] ss:$16 sm:$0xc] %vm13_vm0, %v129_v29  }
 0x2fb   :  { %4979 = vst.msk [vmem:[%s13580_s1 + $0x580] ss:$16 sm:$0x30] %vm13_vm0, %v129_v29   ;;  %4980 = vst.msk [vmem:[%s13580_s1 + $0x580] ss:$16 sm:$0xc0] %vm13_vm0, %v129_v29  }
 0x2fc   :  { %v140_v44 = vld [vmem:[#allocation0 + $0x60] sm:$0xff]   ;;  %v151_v45 = vld [vmem:[#allocation0 + $0x68] sm:$0xff]   ;;  %v162_v52 = vld [vmem:[#allocation0 + $0x70] sm:$0xff]   ;;  %6219 = vst.msk [vmem:[%s13580_s1 + $0x48d] ss:$16 sm:$0x30] %vm13_vm0, %v4122_v36   ;;  %v4329_v0 = vpop.permute.xlu1 %4328   ;;  %v4316_v2 = vpop.permute.xlu0 %4315  }
 0x2fd   :  { %6220 = vst.msk [vmem:[%s13580_s1 + $0x48d] ss:$16 sm:$0xc0] %vm13_vm0, %v4122_v36   ;;  %6213 = vst.msk [vmem:[%s13580_s1 + $0x40d] ss:$16 sm:$0x3] %vm13_vm0, %v4109_v37  }
 0x2fe   :  { %6214 = vst.msk [vmem:[%s13580_s1 + $0x40d] ss:$16 sm:$0xc] %vm13_vm0, %v4109_v37   ;;  %6215 = vst.msk [vmem:[%s13580_s1 + $0x40d] ss:$16 sm:$0x30] %vm13_vm0, %v4109_v37  }
 0x2ff   :  { %6216 = vst.msk [vmem:[%s13580_s1 + $0x40d] ss:$16 sm:$0xc0] %vm13_vm0, %v4109_v37   ;;  %4981 = vst.msk [vmem:[%s13580_s1 + $0x600] ss:$16 sm:$0x3] %vm13_vm0, %v140_v44  }
 0x300   :  { %4982 = vst.msk [vmem:[%s13580_s1 + $0x600] ss:$16 sm:$0xc] %vm13_vm0, %v140_v44   ;;  %4983 = vst.msk [vmem:[%s13580_s1 + $0x600] ss:$16 sm:$0x30] %vm13_vm0, %v140_v44   ;;  %v4355_v18 = vpop.permute.xlu1 %4354   ;;  %v4342_v19 = vpop.permute.xlu0 %4341  }
 0x301   :  { %4984 = vst.msk [vmem:[%s13580_s1 + $0x600] ss:$16 sm:$0xc0] %vm13_vm0, %v140_v44   ;;  %4985 = vst.msk [vmem:[%s13580_s1 + $0x680] ss:$16 sm:$0x3] %vm13_vm0, %v151_v45  }
 0x302   :  { %4986 = vst.msk [vmem:[%s13580_s1 + $0x680] ss:$16 sm:$0xc] %vm13_vm0, %v151_v45   ;;  %4987 = vst.msk [vmem:[%s13580_s1 + $0x680] ss:$16 sm:$0x30] %vm13_vm0, %v151_v45  }
 0x303   :  { %4988 = vst.msk [vmem:[%s13580_s1 + $0x680] ss:$16 sm:$0xc0] %vm13_vm0, %v151_v45   ;;  %4989 = vst.msk [vmem:[%s13580_s1 + $0x700] ss:$16 sm:$0x3] %vm13_vm0, %v162_v52  }
 0x304   :  { %4990 = vst.msk [vmem:[%s13580_s1 + $0x700] ss:$16 sm:$0xc] %vm13_vm0, %v162_v52   ;;  %4991 = vst.msk [vmem:[%s13580_s1 + $0x700] ss:$16 sm:$0x30] %vm13_vm0, %v162_v52   ;;  %v4381_v24 = vpop.permute.xlu1 %4380   ;;  %v4368_v25 = vpop.permute.xlu0 %4367  }
 0x305   :  { %4992 = vst.msk [vmem:[%s13580_s1 + $0x700] ss:$16 sm:$0xc0] %vm13_vm0, %v162_v52   ;;  %v173_v53 = vld [vmem:[#allocation0 + $0x78] sm:$0xff]   ;;  %v184_v60 = vld [vmem:[#allocation0 + $0x80] sm:$0xff]   ;;  %v195_v61 = vld [vmem:[#allocation0 + $0x88] sm:$0xff]  }
 0x306   :  { %4993 = vst.msk [vmem:[%s13580_s1 + $0x780] ss:$16 sm:$0x3] %vm13_vm0, %v173_v53   ;;  %4994 = vst.msk [vmem:[%s13580_s1 + $0x780] ss:$16 sm:$0xc] %vm13_vm0, %v173_v53  }
 0x307   :  { %4995 = vst.msk [vmem:[%s13580_s1 + $0x780] ss:$16 sm:$0x30] %vm13_vm0, %v173_v53   ;;  %4996 = vst.msk [vmem:[%s13580_s1 + $0x780] ss:$16 sm:$0xc0] %vm13_vm0, %v173_v53  }
 0x308   :  { %4997 = vst.msk [vmem:[%s13580_s1 + $0x800] ss:$16 sm:$0x3] %vm13_vm0, %v184_v60   ;;  %4998 = vst.msk [vmem:[%s13580_s1 + $0x800] ss:$16 sm:$0xc] %vm13_vm0, %v184_v60  }
 0x309   :  { %4999 = vst.msk [vmem:[%s13580_s1 + $0x800] ss:$16 sm:$0x30] %vm13_vm0, %v184_v60   ;;  %5000 = vst.msk [vmem:[%s13580_s1 + $0x800] ss:$16 sm:$0xc0] %vm13_vm0, %v184_v60   ;;  %v4407_v32 = vpop.permute.xlu1 %4406   ;;  %v4394_v33 = vpop.permute.xlu0 %4393  }
 0x30a   :  { %5001 = vst.msk [vmem:[%s13580_s1 + $0x880] ss:$16 sm:$0x3] %vm13_vm0, %v195_v61   ;;  %5002 = vst.msk [vmem:[%s13580_s1 + $0x880] ss:$16 sm:$0xc] %vm13_vm0, %v195_v61  }
 0x30b   :  { %5003 = vst.msk [vmem:[%s13580_s1 + $0x880] ss:$16 sm:$0x30] %vm13_vm0, %v195_v61   ;;  %5004 = vst.msk [vmem:[%s13580_s1 + $0x880] ss:$16 sm:$0xc0] %vm13_vm0, %v195_v61  }
 0x30c   :  { %v206_v4 = vld [vmem:[#allocation0 + $0x90] sm:$0xff]   ;;  %v217_v5 = vld [vmem:[#allocation0 + $0x98] sm:$0xff]   ;;  %v228_v8 = vld [vmem:[#allocation0 + $0xa0] sm:$0xff]   ;;  %6225 = vst.msk [vmem:[%s13580_s1 + $0x58d] ss:$16 sm:$0x3] %vm13_vm0, %v4148_v22  }
 0x30d   :  { %5005 = vst.msk [vmem:[%s13580_s1 + $0x900] ss:$16 sm:$0x3] %vm13_vm0, %v206_v4   ;;  %5006 = vst.msk [vmem:[%s13580_s1 + $0x900] ss:$16 sm:$0xc] %vm13_vm0, %v206_v4   ;;  %v4433_v40 = vpop.permute.xlu1 %4432   ;;  %v4420_v41 = vpop.permute.xlu0 %4419  }
 0x30e   :  { %5007 = vst.msk [vmem:[%s13580_s1 + $0x900] ss:$16 sm:$0x30] %vm13_vm0, %v206_v4   ;;  %5008 = vst.msk [vmem:[%s13580_s1 + $0x900] ss:$16 sm:$0xc0] %vm13_vm0, %v206_v4  }
 0x30f   :  { %5009 = vst.msk [vmem:[%s13580_s1 + $0x980] ss:$16 sm:$0x3] %vm13_vm0, %v217_v5   ;;  %5010 = vst.msk [vmem:[%s13580_s1 + $0x980] ss:$16 sm:$0xc] %vm13_vm0, %v217_v5  }
 0x310   :  { %5011 = vst.msk [vmem:[%s13580_s1 + $0x980] ss:$16 sm:$0x30] %vm13_vm0, %v217_v5   ;;  %5012 = vst.msk [vmem:[%s13580_s1 + $0x980] ss:$16 sm:$0xc0] %vm13_vm0, %v217_v5  }
 0x311   :  { %5013 = vst.msk [vmem:[%s13580_s1 + $0xa00] ss:$16 sm:$0x3] %vm13_vm0, %v228_v8   ;;  %5014 = vst.msk [vmem:[%s13580_s1 + $0xa00] ss:$16 sm:$0xc] %vm13_vm0, %v228_v8   ;;  %v4459_v48 = vpop.permute.xlu1 %4458   ;;  %v4446_v49 = vpop.permute.xlu0 %4445  }
 0x312   :  { %5015 = vst.msk [vmem:[%s13580_s1 + $0xa00] ss:$16 sm:$0x30] %vm13_vm0, %v228_v8   ;;  %5016 = vst.msk [vmem:[%s13580_s1 + $0xa00] ss:$16 sm:$0xc0] %vm13_vm0, %v228_v8  }
 0x313   :  { %v239_v9 = vld [vmem:[#allocation0 + $0xa8] sm:$0xff]   ;;  %v250_v12 = vld [vmem:[#allocation0 + $0xb0] sm:$0xff]   ;;  %v261_v13 = vld [vmem:[#allocation0 + $0xb8] sm:$0xff]   ;;  %6226 = vst.msk [vmem:[%s13580_s1 + $0x58d] ss:$16 sm:$0xc] %vm13_vm0, %v4148_v22  }
 0x314   :  { %5017 = vst.msk [vmem:[%s13580_s1 + $0xa80] ss:$16 sm:$0x3] %vm13_vm0, %v239_v9   ;;  %5018 = vst.msk [vmem:[%s13580_s1 + $0xa80] ss:$16 sm:$0xc] %vm13_vm0, %v239_v9  }
 0x315   :  { %5019 = vst.msk [vmem:[%s13580_s1 + $0xa80] ss:$16 sm:$0x30] %vm13_vm0, %v239_v9   ;;  %5020 = vst.msk [vmem:[%s13580_s1 + $0xa80] ss:$16 sm:$0xc0] %vm13_vm0, %v239_v9  }
 0x316   :  { %5021 = vst.msk [vmem:[%s13580_s1 + $0xb00] ss:$16 sm:$0x3] %vm13_vm0, %v250_v12   ;;  %5022 = vst.msk [vmem:[%s13580_s1 + $0xb00] ss:$16 sm:$0xc] %vm13_vm0, %v250_v12   ;;  %v4485_v56 = vpop.permute.xlu1 %4484   ;;  %v4472_v57 = vpop.permute.xlu0 %4471  }
 0x317   :  { %5023 = vst.msk [vmem:[%s13580_s1 + $0xb00] ss:$16 sm:$0x30] %vm13_vm0, %v250_v12   ;;  %5024 = vst.msk [vmem:[%s13580_s1 + $0xb00] ss:$16 sm:$0xc0] %vm13_vm0, %v250_v12  }
 0x318   :  { %5025 = vst.msk [vmem:[%s13580_s1 + $0xb80] ss:$16 sm:$0x3] %vm13_vm0, %v261_v13   ;;  %5026 = vst.msk [vmem:[%s13580_s1 + $0xb80] ss:$16 sm:$0xc] %vm13_vm0, %v261_v13  }
 0x319   :  { %5027 = vst.msk [vmem:[%s13580_s1 + $0xb80] ss:$16 sm:$0x30] %vm13_vm0, %v261_v13   ;;  %5028 = vst.msk [vmem:[%s13580_s1 + $0xb80] ss:$16 sm:$0xc0] %vm13_vm0, %v261_v13  }
 0x31a   :  { %6227 = vst.msk [vmem:[%s13580_s1 + $0x58d] ss:$16 sm:$0x30] %vm13_vm0, %v4148_v22   ;;  %6228 = vst.msk [vmem:[%s13580_s1 + $0x58d] ss:$16 sm:$0xc0] %vm13_vm0, %v4148_v22   ;;  %v4511_v1 = vpop.permute.xlu1 %4510   ;;  %v4498_v3 = vpop.permute.xlu0 %4497  }
 0x31b   :  { %6221 = vst.msk [vmem:[%s13580_s1 + $0x50d] ss:$16 sm:$0x3] %vm13_vm0, %v4135_v23   ;;  %6222 = vst.msk [vmem:[%s13580_s1 + $0x50d] ss:$16 sm:$0xc] %vm13_vm0, %v4135_v23  }
 0x31c   :  { %6223 = vst.msk [vmem:[%s13580_s1 + $0x50d] ss:$16 sm:$0x30] %vm13_vm0, %v4135_v23   ;;  %6224 = vst.msk [vmem:[%s13580_s1 + $0x50d] ss:$16 sm:$0xc0] %vm13_vm0, %v4135_v23  }
 0x31d   :  { %6233 = vst.msk [vmem:[%s13580_s1 + $0x68d] ss:$16 sm:$0x3] %vm13_vm0, %v4174_v30   ;;  %6234 = vst.msk [vmem:[%s13580_s1 + $0x68d] ss:$16 sm:$0xc] %vm13_vm0, %v4174_v30  }
 0x31e   :  { %6235 = vst.msk [vmem:[%s13580_s1 + $0x68d] ss:$16 sm:$0x30] %vm13_vm0, %v4174_v30   ;;  %6236 = vst.msk [vmem:[%s13580_s1 + $0x68d] ss:$16 sm:$0xc0] %vm13_vm0, %v4174_v30   ;;  %v4537_v6 = vpop.permute.xlu1 %4536   ;;  %v4524_v7 = vpop.permute.xlu0 %4523  }
 0x31f   :  { %6229 = vst.msk [vmem:[%s13580_s1 + $0x60d] ss:$16 sm:$0x3] %vm13_vm0, %v4161_v31   ;;  %6230 = vst.msk [vmem:[%s13580_s1 + $0x60d] ss:$16 sm:$0xc] %vm13_vm0, %v4161_v31  }
 0x320   :  { %6231 = vst.msk [vmem:[%s13580_s1 + $0x60d] ss:$16 sm:$0x30] %vm13_vm0, %v4161_v31   ;;  %6232 = vst.msk [vmem:[%s13580_s1 + $0x60d] ss:$16 sm:$0xc0] %vm13_vm0, %v4161_v31  }
 0x321   :  { %6241 = vst.msk [vmem:[%s13580_s1 + $0x78d] ss:$16 sm:$0x3] %vm13_vm0, %v4200_v34   ;;  %6242 = vst.msk [vmem:[%s13580_s1 + $0x78d] ss:$16 sm:$0xc] %vm13_vm0, %v4200_v34  }
 0x322   :  { %6243 = vst.msk [vmem:[%s13580_s1 + $0x78d] ss:$16 sm:$0x30] %vm13_vm0, %v4200_v34   ;;  %6244 = vst.msk [vmem:[%s13580_s1 + $0x78d] ss:$16 sm:$0xc0] %vm13_vm0, %v4200_v34  }
 0x323   :  { %6237 = vst.msk [vmem:[%s13580_s1 + $0x70d] ss:$16 sm:$0x3] %vm13_vm0, %v4187_v35   ;;  %6238 = vst.msk [vmem:[%s13580_s1 + $0x70d] ss:$16 sm:$0xc] %vm13_vm0, %v4187_v35   ;;  %v4563_v10 = vpop.permute.xlu1 %4562   ;;  %v4550_v11 = vpop.permute.xlu0 %4549  }
 0x324   :  { %6239 = vst.msk [vmem:[%s13580_s1 + $0x70d] ss:$16 sm:$0x30] %vm13_vm0, %v4187_v35   ;;  %6240 = vst.msk [vmem:[%s13580_s1 + $0x70d] ss:$16 sm:$0xc0] %vm13_vm0, %v4187_v35  }
 0x325   :  { %6249 = vst.msk [vmem:[%s13580_s1 + $0x88d] ss:$16 sm:$0x3] %vm13_vm0, %v4226_v38   ;;  %6250 = vst.msk [vmem:[%s13580_s1 + $0x88d] ss:$16 sm:$0xc] %vm13_vm0, %v4226_v38  }
 0x326   :  { %6251 = vst.msk [vmem:[%s13580_s1 + $0x88d] ss:$16 sm:$0x30] %vm13_vm0, %v4226_v38   ;;  %6252 = vst.msk [vmem:[%s13580_s1 + $0x88d] ss:$16 sm:$0xc0] %vm13_vm0, %v4226_v38  }
 0x327   :  { %6245 = vst.msk [vmem:[%s13580_s1 + $0x80d] ss:$16 sm:$0x3] %vm13_vm0, %v4213_v39   ;;  %6246 = vst.msk [vmem:[%s13580_s1 + $0x80d] ss:$16 sm:$0xc] %vm13_vm0, %v4213_v39   ;;  %v4589_v14 = vpop.permute.xlu1 %4588   ;;  %v4576_v15 = vpop.permute.xlu0 %4575  }
 0x328   :  { %6247 = vst.msk [vmem:[%s13580_s1 + $0x80d] ss:$16 sm:$0x30] %vm13_vm0, %v4213_v39   ;;  %6248 = vst.msk [vmem:[%s13580_s1 + $0x80d] ss:$16 sm:$0xc0] %vm13_vm0, %v4213_v39  }
 0x329   :  { %6257 = vst.msk [vmem:[%s13580_s1 + $0x98d] ss:$16 sm:$0x3] %vm13_vm0, %v4252_v42   ;;  %6258 = vst.msk [vmem:[%s13580_s1 + $0x98d] ss:$16 sm:$0xc] %vm13_vm0, %v4252_v42  }
 0x32a   :  { %6259 = vst.msk [vmem:[%s13580_s1 + $0x98d] ss:$16 sm:$0x30] %vm13_vm0, %v4252_v42   ;;  %6260 = vst.msk [vmem:[%s13580_s1 + $0x98d] ss:$16 sm:$0xc0] %vm13_vm0, %v4252_v42  }
 0x32b   :  { %6253 = vst.msk [vmem:[%s13580_s1 + $0x90d] ss:$16 sm:$0x3] %vm13_vm0, %v4239_v43   ;;  %6254 = vst.msk [vmem:[%s13580_s1 + $0x90d] ss:$16 sm:$0xc] %vm13_vm0, %v4239_v43   ;;  %v4615_v26 = vpop.permute.xlu1 %4614   ;;  %v4602_v27 = vpop.permute.xlu0 %4601  }
 0x32c   :  { %6255 = vst.msk [vmem:[%s13580_s1 + $0x90d] ss:$16 sm:$0x30] %vm13_vm0, %v4239_v43   ;;  %6256 = vst.msk [vmem:[%s13580_s1 + $0x90d] ss:$16 sm:$0xc0] %vm13_vm0, %v4239_v43  }
 0x32d   :  { %6265 = vst.msk [vmem:[%s13580_s1 + $0xa8d] ss:$16 sm:$0x3] %vm13_vm0, %v4278_v46   ;;  %6266 = vst.msk [vmem:[%s13580_s1 + $0xa8d] ss:$16 sm:$0xc] %vm13_vm0, %v4278_v46  }
 0x32e   :  { %6267 = vst.msk [vmem:[%s13580_s1 + $0xa8d] ss:$16 sm:$0x30] %vm13_vm0, %v4278_v46   ;;  %6268 = vst.msk [vmem:[%s13580_s1 + $0xa8d] ss:$16 sm:$0xc0] %vm13_vm0, %v4278_v46  }
 0x32f   :  { %6261 = vst.msk [vmem:[%s13580_s1 + $0xa0d] ss:$16 sm:$0x3] %vm13_vm0, %v4265_v47   ;;  %6262 = vst.msk [vmem:[%s13580_s1 + $0xa0d] ss:$16 sm:$0xc] %vm13_vm0, %v4265_v47   ;;  %v4640_v54 = vpop.permute.xlu1 %4639   ;;  %v4627_v55 = vpop.permute.xlu0 %4626  }
 0x330   :  { %6263 = vst.msk [vmem:[%s13580_s1 + $0xa0d] ss:$16 sm:$0x30] %vm13_vm0, %v4265_v47   ;;  %6264 = vst.msk [vmem:[%s13580_s1 + $0xa0d] ss:$16 sm:$0xc0] %vm13_vm0, %v4265_v47  }
 0x331   :  { %6273 = vst.msk [vmem:[%s13580_s1 + $0xb8d] ss:$16 sm:$0x3] %vm13_vm0, %v4304_v50   ;;  %6274 = vst.msk [vmem:[%s13580_s1 + $0xb8d] ss:$16 sm:$0xc] %vm13_vm0, %v4304_v50  }
 0x332   :  { %6275 = vst.msk [vmem:[%s13580_s1 + $0xb8d] ss:$16 sm:$0x30] %vm13_vm0, %v4304_v50   ;;  %6276 = vst.msk [vmem:[%s13580_s1 + $0xb8d] ss:$16 sm:$0xc0] %vm13_vm0, %v4304_v50  }
 0x333   :  { %6269 = vst.msk [vmem:[%s13580_s1 + $0xb0d] ss:$16 sm:$0x3] %vm13_vm0, %v4291_v51   ;;  %6270 = vst.msk [vmem:[%s13580_s1 + $0xb0d] ss:$16 sm:$0xc] %vm13_vm0, %v4291_v51   ;;  %v4666_v58 = vpop.permute.xlu1 %4665   ;;  %v4653_v59 = vpop.permute.xlu0 %4652  }
 0x334   :  { %6271 = vst.msk [vmem:[%s13580_s1 + $0xb0d] ss:$16 sm:$0x30] %vm13_vm0, %v4291_v51   ;;  %6272 = vst.msk [vmem:[%s13580_s1 + $0xb0d] ss:$16 sm:$0xc0] %vm13_vm0, %v4291_v51  }
 0x335   :  { %6281 = vst.msk [vmem:[%s13580_s1 + $0x8e] ss:$16 sm:$0x3] %vm13_vm0, %v4329_v0   ;;  %6282 = vst.msk [vmem:[%s13580_s1 + $0x8e] ss:$16 sm:$0xc] %vm13_vm0, %v4329_v0  }
 0x336   :  { %6283 = vst.msk [vmem:[%s13580_s1 + $0x8e] ss:$16 sm:$0x30] %vm13_vm0, %v4329_v0   ;;  %6284 = vst.msk [vmem:[%s13580_s1 + $0x8e] ss:$16 sm:$0xc0] %vm13_vm0, %v4329_v0  }
 0x337   :  { %6277 = vst.msk [vmem:[%s13580_s1 + $0xe] ss:$16 sm:$0x3] %vm13_vm0, %v4316_v2   ;;  %6278 = vst.msk [vmem:[%s13580_s1 + $0xe] ss:$16 sm:$0xc] %vm13_vm0, %v4316_v2   ;;  %v4692_v62 = vpop.permute.xlu1 %4691   ;;  %v4679_v63 = vpop.permute.xlu0 %4678  }
 0x338   :  { %6279 = vst.msk [vmem:[%s13580_s1 + $0xe] ss:$16 sm:$0x30] %vm13_vm0, %v4316_v2   ;;  %6280 = vst.msk [vmem:[%s13580_s1 + $0xe] ss:$16 sm:$0xc0] %vm13_vm0, %v4316_v2  }
 0x339   :  { %6289 = vst.msk [vmem:[%s13580_s1 + $0x18e] ss:$16 sm:$0x3] %vm13_vm0, %v4355_v18   ;;  %6290 = vst.msk [vmem:[%s13580_s1 + $0x18e] ss:$16 sm:$0xc] %vm13_vm0, %v4355_v18  }
 0x33a   :  { %6291 = vst.msk [vmem:[%s13580_s1 + $0x18e] ss:$16 sm:$0x30] %vm13_vm0, %v4355_v18   ;;  %6292 = vst.msk [vmem:[%s13580_s1 + $0x18e] ss:$16 sm:$0xc0] %vm13_vm0, %v4355_v18  }
 0x33b   :  { %6285 = vst.msk [vmem:[%s13580_s1 + $0x10e] ss:$16 sm:$0x3] %vm13_vm0, %v4342_v19   ;;  %6286 = vst.msk [vmem:[%s13580_s1 + $0x10e] ss:$16 sm:$0xc] %vm13_vm0, %v4342_v19   ;;  %v4718_v16 = vpop.permute.xlu1 %4717   ;;  %v4705_v17 = vpop.permute.xlu0 %4704  }
 0x33c   :  { %6287 = vst.msk [vmem:[%s13580_s1 + $0x10e] ss:$16 sm:$0x30] %vm13_vm0, %v4342_v19   ;;  %6288 = vst.msk [vmem:[%s13580_s1 + $0x10e] ss:$16 sm:$0xc0] %vm13_vm0, %v4342_v19  }
 0x33d   :  { %6297 = vst.msk [vmem:[%s13580_s1 + $0x28e] ss:$16 sm:$0x3] %vm13_vm0, %v4381_v24   ;;  %6298 = vst.msk [vmem:[%s13580_s1 + $0x28e] ss:$16 sm:$0xc] %vm13_vm0, %v4381_v24  }
 0x33e   :  { %6299 = vst.msk [vmem:[%s13580_s1 + $0x28e] ss:$16 sm:$0x30] %vm13_vm0, %v4381_v24   ;;  %6300 = vst.msk [vmem:[%s13580_s1 + $0x28e] ss:$16 sm:$0xc0] %vm13_vm0, %v4381_v24  }
 0x33f   :  { %6293 = vst.msk [vmem:[%s13580_s1 + $0x20e] ss:$16 sm:$0x3] %vm13_vm0, %v4368_v25   ;;  %6294 = vst.msk [vmem:[%s13580_s1 + $0x20e] ss:$16 sm:$0xc] %vm13_vm0, %v4368_v25   ;;  %v4744_v20 = vpop.permute.xlu1 %4743   ;;  %v4731_v21 = vpop.permute.xlu0 %4730  }
 0x340   :  { %6295 = vst.msk [vmem:[%s13580_s1 + $0x20e] ss:$16 sm:$0x30] %vm13_vm0, %v4368_v25   ;;  %6296 = vst.msk [vmem:[%s13580_s1 + $0x20e] ss:$16 sm:$0xc0] %vm13_vm0, %v4368_v25  }
 0x341   :  { %6305 = vst.msk [vmem:[%s13580_s1 + $0x38e] ss:$16 sm:$0x3] %vm13_vm0, %v4407_v32   ;;  %6306 = vst.msk [vmem:[%s13580_s1 + $0x38e] ss:$16 sm:$0xc] %vm13_vm0, %v4407_v32  }
 0x342   :  { %6307 = vst.msk [vmem:[%s13580_s1 + $0x38e] ss:$16 sm:$0x30] %vm13_vm0, %v4407_v32   ;;  %6308 = vst.msk [vmem:[%s13580_s1 + $0x38e] ss:$16 sm:$0xc0] %vm13_vm0, %v4407_v32  }
 0x343   :  { %6301 = vst.msk [vmem:[%s13580_s1 + $0x30e] ss:$16 sm:$0x3] %vm13_vm0, %v4394_v33   ;;  %6302 = vst.msk [vmem:[%s13580_s1 + $0x30e] ss:$16 sm:$0xc] %vm13_vm0, %v4394_v33   ;;  %v4770_v28 = vpop.permute.xlu1 %4769   ;;  %v4757_v29 = vpop.permute.xlu0 %4756  }
 0x344   :  { %6303 = vst.msk [vmem:[%s13580_s1 + $0x30e] ss:$16 sm:$0x30] %vm13_vm0, %v4394_v33   ;;  %6304 = vst.msk [vmem:[%s13580_s1 + $0x30e] ss:$16 sm:$0xc0] %vm13_vm0, %v4394_v33  }
 0x345   :  { %6313 = vst.msk [vmem:[%s13580_s1 + $0x48e] ss:$16 sm:$0x3] %vm13_vm0, %v4433_v40   ;;  %6314 = vst.msk [vmem:[%s13580_s1 + $0x48e] ss:$16 sm:$0xc] %vm13_vm0, %v4433_v40  }
 0x346   :  { %6315 = vst.msk [vmem:[%s13580_s1 + $0x48e] ss:$16 sm:$0x30] %vm13_vm0, %v4433_v40   ;;  %6316 = vst.msk [vmem:[%s13580_s1 + $0x48e] ss:$16 sm:$0xc0] %vm13_vm0, %v4433_v40  }
 0x347   :  { %6309 = vst.msk [vmem:[%s13580_s1 + $0x40e] ss:$16 sm:$0x3] %vm13_vm0, %v4420_v41   ;;  %6310 = vst.msk [vmem:[%s13580_s1 + $0x40e] ss:$16 sm:$0xc] %vm13_vm0, %v4420_v41   ;;  %v4796_v36 = vpop.permute.xlu1 %4795   ;;  %v4783_v37 = vpop.permute.xlu0 %4782  }
 0x348   :  { %6311 = vst.msk [vmem:[%s13580_s1 + $0x40e] ss:$16 sm:$0x30] %vm13_vm0, %v4420_v41   ;;  %6312 = vst.msk [vmem:[%s13580_s1 + $0x40e] ss:$16 sm:$0xc0] %vm13_vm0, %v4420_v41  }
 0x349   :  { %6321 = vst.msk [vmem:[%s13580_s1 + $0x58e] ss:$16 sm:$0x3] %vm13_vm0, %v4459_v48   ;;  %6322 = vst.msk [vmem:[%s13580_s1 + $0x58e] ss:$16 sm:$0xc] %vm13_vm0, %v4459_v48  }
 0x34a   :  { %6323 = vst.msk [vmem:[%s13580_s1 + $0x58e] ss:$16 sm:$0x30] %vm13_vm0, %v4459_v48   ;;  %6324 = vst.msk [vmem:[%s13580_s1 + $0x58e] ss:$16 sm:$0xc0] %vm13_vm0, %v4459_v48  }
 0x34b   :  { %6317 = vst.msk [vmem:[%s13580_s1 + $0x50e] ss:$16 sm:$0x3] %vm13_vm0, %v4446_v49   ;;  %6318 = vst.msk [vmem:[%s13580_s1 + $0x50e] ss:$16 sm:$0xc] %vm13_vm0, %v4446_v49   ;;  %v4822_v44 = vpop.permute.xlu1 %4821   ;;  %v4809_v45 = vpop.permute.xlu0 %4808  }
 0x34c   :  { %6319 = vst.msk [vmem:[%s13580_s1 + $0x50e] ss:$16 sm:$0x30] %vm13_vm0, %v4446_v49   ;;  %6320 = vst.msk [vmem:[%s13580_s1 + $0x50e] ss:$16 sm:$0xc0] %vm13_vm0, %v4446_v49  }
 0x34d   :  { %6329 = vst.msk [vmem:[%s13580_s1 + $0x68e] ss:$16 sm:$0x3] %vm13_vm0, %v4485_v56   ;;  %6330 = vst.msk [vmem:[%s13580_s1 + $0x68e] ss:$16 sm:$0xc] %vm13_vm0, %v4485_v56  }
 0x34e   :  { %6331 = vst.msk [vmem:[%s13580_s1 + $0x68e] ss:$16 sm:$0x30] %vm13_vm0, %v4485_v56   ;;  %6332 = vst.msk [vmem:[%s13580_s1 + $0x68e] ss:$16 sm:$0xc0] %vm13_vm0, %v4485_v56  }
 0x34f   :  { %6325 = vst.msk [vmem:[%s13580_s1 + $0x60e] ss:$16 sm:$0x3] %vm13_vm0, %v4472_v57   ;;  %6326 = vst.msk [vmem:[%s13580_s1 + $0x60e] ss:$16 sm:$0xc] %vm13_vm0, %v4472_v57   ;;  %v4848_v52 = vpop.permute.xlu1 %4847   ;;  %v4835_v53 = vpop.permute.xlu0 %4834  }
 0x350   :  { %6327 = vst.msk [vmem:[%s13580_s1 + $0x60e] ss:$16 sm:$0x30] %vm13_vm0, %v4472_v57   ;;  %6328 = vst.msk [vmem:[%s13580_s1 + $0x60e] ss:$16 sm:$0xc0] %vm13_vm0, %v4472_v57  }
 0x351   :  { %6337 = vst.msk [vmem:[%s13580_s1 + $0x78e] ss:$16 sm:$0x3] %vm13_vm0, %v4511_v1   ;;  %6338 = vst.msk [vmem:[%s13580_s1 + $0x78e] ss:$16 sm:$0xc] %vm13_vm0, %v4511_v1  }
 0x352   :  { %6339 = vst.msk [vmem:[%s13580_s1 + $0x78e] ss:$16 sm:$0x30] %vm13_vm0, %v4511_v1   ;;  %6340 = vst.msk [vmem:[%s13580_s1 + $0x78e] ss:$16 sm:$0xc0] %vm13_vm0, %v4511_v1  }
 0x353   :  { %6333 = vst.msk [vmem:[%s13580_s1 + $0x70e] ss:$16 sm:$0x3] %vm13_vm0, %v4498_v3   ;;  %6334 = vst.msk [vmem:[%s13580_s1 + $0x70e] ss:$16 sm:$0xc] %vm13_vm0, %v4498_v3   ;;  %v4874_v60 = vpop.permute.xlu1 %4873   ;;  %v4861_v61 = vpop.permute.xlu0 %4860  }
 0x354   :  { %6335 = vst.msk [vmem:[%s13580_s1 + $0x70e] ss:$16 sm:$0x30] %vm13_vm0, %v4498_v3   ;;  %6336 = vst.msk [vmem:[%s13580_s1 + $0x70e] ss:$16 sm:$0xc0] %vm13_vm0, %v4498_v3  }
 0x355   :  { %6345 = vst.msk [vmem:[%s13580_s1 + $0x88e] ss:$16 sm:$0x3] %vm13_vm0, %v4537_v6   ;;  %6346 = vst.msk [vmem:[%s13580_s1 + $0x88e] ss:$16 sm:$0xc] %vm13_vm0, %v4537_v6  }
 0x356   :  { %6347 = vst.msk [vmem:[%s13580_s1 + $0x88e] ss:$16 sm:$0x30] %vm13_vm0, %v4537_v6   ;;  %6348 = vst.msk [vmem:[%s13580_s1 + $0x88e] ss:$16 sm:$0xc0] %vm13_vm0, %v4537_v6  }
 0x357   :  { %6341 = vst.msk [vmem:[%s13580_s1 + $0x80e] ss:$16 sm:$0x3] %vm13_vm0, %v4524_v7   ;;  %6342 = vst.msk [vmem:[%s13580_s1 + $0x80e] ss:$16 sm:$0xc] %vm13_vm0, %v4524_v7   ;;  %v4900_v4 = vpop.permute.xlu1 %4899   ;;  %v4887_v5 = vpop.permute.xlu0 %4886  }
 0x358   :  { %6343 = vst.msk [vmem:[%s13580_s1 + $0x80e] ss:$16 sm:$0x30] %vm13_vm0, %v4524_v7   ;;  %6344 = vst.msk [vmem:[%s13580_s1 + $0x80e] ss:$16 sm:$0xc0] %vm13_vm0, %v4524_v7  }
 0x359   :  { %6353 = vst.msk [vmem:[%s13580_s1 + $0x98e] ss:$16 sm:$0x3] %vm13_vm0, %v4563_v10   ;;  %6354 = vst.msk [vmem:[%s13580_s1 + $0x98e] ss:$16 sm:$0xc] %vm13_vm0, %v4563_v10  }
 0x35a   :  { %6355 = vst.msk [vmem:[%s13580_s1 + $0x98e] ss:$16 sm:$0x30] %vm13_vm0, %v4563_v10   ;;  %6356 = vst.msk [vmem:[%s13580_s1 + $0x98e] ss:$16 sm:$0xc0] %vm13_vm0, %v4563_v10  }
 0x35b   :  { %6349 = vst.msk [vmem:[%s13580_s1 + $0x90e] ss:$16 sm:$0x3] %vm13_vm0, %v4550_v11   ;;  %6350 = vst.msk [vmem:[%s13580_s1 + $0x90e] ss:$16 sm:$0xc] %vm13_vm0, %v4550_v11   ;;  %v4926_v8 = vpop.permute.xlu1 %4925   ;;  %v4913_v9 = vpop.permute.xlu0 %4912  }
 0x35c   :  { %6351 = vst.msk [vmem:[%s13580_s1 + $0x90e] ss:$16 sm:$0x30] %vm13_vm0, %v4550_v11   ;;  %6352 = vst.msk [vmem:[%s13580_s1 + $0x90e] ss:$16 sm:$0xc0] %vm13_vm0, %v4550_v11  }
 0x35d   :  { %6361 = vst.msk [vmem:[%s13580_s1 + $0xa8e] ss:$16 sm:$0x3] %vm13_vm0, %v4589_v14   ;;  %6362 = vst.msk [vmem:[%s13580_s1 + $0xa8e] ss:$16 sm:$0xc] %vm13_vm0, %v4589_v14  }
 0x35e   :  { %6363 = vst.msk [vmem:[%s13580_s1 + $0xa8e] ss:$16 sm:$0x30] %vm13_vm0, %v4589_v14   ;;  %6364 = vst.msk [vmem:[%s13580_s1 + $0xa8e] ss:$16 sm:$0xc0] %vm13_vm0, %v4589_v14  }
 0x35f   :  { %6357 = vst.msk [vmem:[%s13580_s1 + $0xa0e] ss:$16 sm:$0x3] %vm13_vm0, %v4576_v15   ;;  %6358 = vst.msk [vmem:[%s13580_s1 + $0xa0e] ss:$16 sm:$0xc] %vm13_vm0, %v4576_v15  }
 0x360   :  { %6359 = vst.msk [vmem:[%s13580_s1 + $0xa0e] ss:$16 sm:$0x30] %vm13_vm0, %v4576_v15   ;;  %6360 = vst.msk [vmem:[%s13580_s1 + $0xa0e] ss:$16 sm:$0xc0] %vm13_vm0, %v4576_v15  }
 0x361   :  { %6369 = vst.msk [vmem:[%s13580_s1 + $0xb8e] ss:$16 sm:$0x3] %vm13_vm0, %v4615_v26   ;;  %6370 = vst.msk [vmem:[%s13580_s1 + $0xb8e] ss:$16 sm:$0xc] %vm13_vm0, %v4615_v26  }
 0x362   :  { %6371 = vst.msk [vmem:[%s13580_s1 + $0xb8e] ss:$16 sm:$0x30] %vm13_vm0, %v4615_v26   ;;  %6372 = vst.msk [vmem:[%s13580_s1 + $0xb8e] ss:$16 sm:$0xc0] %vm13_vm0, %v4615_v26  }
 0x363   :  { %6365 = vst.msk [vmem:[%s13580_s1 + $0xb0e] ss:$16 sm:$0x3] %vm13_vm0, %v4602_v27   ;;  %6366 = vst.msk [vmem:[%s13580_s1 + $0xb0e] ss:$16 sm:$0xc] %vm13_vm0, %v4602_v27  }
 0x364   :  { %6367 = vst.msk [vmem:[%s13580_s1 + $0xb0e] ss:$16 sm:$0x30] %vm13_vm0, %v4602_v27   ;;  %6368 = vst.msk [vmem:[%s13580_s1 + $0xb0e] ss:$16 sm:$0xc0] %vm13_vm0, %v4602_v27  }
 0x365   :  { %6377 = vst.msk [vmem:[%s13580_s1 + $0x8f] ss:$16 sm:$0x3] %vm13_vm0, %v4640_v54   ;;  %6378 = vst.msk [vmem:[%s13580_s1 + $0x8f] ss:$16 sm:$0xc] %vm13_vm0, %v4640_v54  }
 0x366   :  { %6379 = vst.msk [vmem:[%s13580_s1 + $0x8f] ss:$16 sm:$0x30] %vm13_vm0, %v4640_v54   ;;  %6380 = vst.msk [vmem:[%s13580_s1 + $0x8f] ss:$16 sm:$0xc0] %vm13_vm0, %v4640_v54  }
 0x367   :  { %6373 = vst.msk [vmem:[%s13580_s1 + $0xf] ss:$16 sm:$0x3] %vm13_vm0, %v4627_v55   ;;  %6374 = vst.msk [vmem:[%s13580_s1 + $0xf] ss:$16 sm:$0xc] %vm13_vm0, %v4627_v55  }
 0x368   :  { %6375 = vst.msk [vmem:[%s13580_s1 + $0xf] ss:$16 sm:$0x30] %vm13_vm0, %v4627_v55   ;;  %6376 = vst.msk [vmem:[%s13580_s1 + $0xf] ss:$16 sm:$0xc0] %vm13_vm0, %v4627_v55  }
 0x369   :  { %6385 = vst.msk [vmem:[%s13580_s1 + $0x18f] ss:$16 sm:$0x3] %vm13_vm0, %v4666_v58   ;;  %6386 = vst.msk [vmem:[%s13580_s1 + $0x18f] ss:$16 sm:$0xc] %vm13_vm0, %v4666_v58  }
 0x36a   :  { %6387 = vst.msk [vmem:[%s13580_s1 + $0x18f] ss:$16 sm:$0x30] %vm13_vm0, %v4666_v58   ;;  %6388 = vst.msk [vmem:[%s13580_s1 + $0x18f] ss:$16 sm:$0xc0] %vm13_vm0, %v4666_v58  }
 0x36b   :  { %6381 = vst.msk [vmem:[%s13580_s1 + $0x10f] ss:$16 sm:$0x3] %vm13_vm0, %v4653_v59   ;;  %6382 = vst.msk [vmem:[%s13580_s1 + $0x10f] ss:$16 sm:$0xc] %vm13_vm0, %v4653_v59  }
 0x36c   :  { %6383 = vst.msk [vmem:[%s13580_s1 + $0x10f] ss:$16 sm:$0x30] %vm13_vm0, %v4653_v59   ;;  %6384 = vst.msk [vmem:[%s13580_s1 + $0x10f] ss:$16 sm:$0xc0] %vm13_vm0, %v4653_v59  }
 0x36d   :  { %6393 = vst.msk [vmem:[%s13580_s1 + $0x28f] ss:$16 sm:$0x3] %vm13_vm0, %v4692_v62   ;;  %6394 = vst.msk [vmem:[%s13580_s1 + $0x28f] ss:$16 sm:$0xc] %vm13_vm0, %v4692_v62  }
 0x36e   :  { %6395 = vst.msk [vmem:[%s13580_s1 + $0x28f] ss:$16 sm:$0x30] %vm13_vm0, %v4692_v62   ;;  %6396 = vst.msk [vmem:[%s13580_s1 + $0x28f] ss:$16 sm:$0xc0] %vm13_vm0, %v4692_v62  }
 0x36f   :  { %6389 = vst.msk [vmem:[%s13580_s1 + $0x20f] ss:$16 sm:$0x3] %vm13_vm0, %v4679_v63   ;;  %6390 = vst.msk [vmem:[%s13580_s1 + $0x20f] ss:$16 sm:$0xc] %vm13_vm0, %v4679_v63  }
 0x370   :  { %6391 = vst.msk [vmem:[%s13580_s1 + $0x20f] ss:$16 sm:$0x30] %vm13_vm0, %v4679_v63   ;;  %6392 = vst.msk [vmem:[%s13580_s1 + $0x20f] ss:$16 sm:$0xc0] %vm13_vm0, %v4679_v63  }
 0x371   :  { %6401 = vst.msk [vmem:[%s13580_s1 + $0x38f] ss:$16 sm:$0x3] %vm13_vm0, %v4718_v16   ;;  %6402 = vst.msk [vmem:[%s13580_s1 + $0x38f] ss:$16 sm:$0xc] %vm13_vm0, %v4718_v16  }
 0x372   :  { %6403 = vst.msk [vmem:[%s13580_s1 + $0x38f] ss:$16 sm:$0x30] %vm13_vm0, %v4718_v16   ;;  %6404 = vst.msk [vmem:[%s13580_s1 + $0x38f] ss:$16 sm:$0xc0] %vm13_vm0, %v4718_v16  }
 0x373   :  { %6397 = vst.msk [vmem:[%s13580_s1 + $0x30f] ss:$16 sm:$0x3] %vm13_vm0, %v4705_v17   ;;  %6398 = vst.msk [vmem:[%s13580_s1 + $0x30f] ss:$16 sm:$0xc] %vm13_vm0, %v4705_v17  }
 0x374   :  { %6399 = vst.msk [vmem:[%s13580_s1 + $0x30f] ss:$16 sm:$0x30] %vm13_vm0, %v4705_v17   ;;  %6400 = vst.msk [vmem:[%s13580_s1 + $0x30f] ss:$16 sm:$0xc0] %vm13_vm0, %v4705_v17  }
 0x375   :  { %6409 = vst.msk [vmem:[%s13580_s1 + $0x48f] ss:$16 sm:$0x3] %vm13_vm0, %v4744_v20   ;;  %6410 = vst.msk [vmem:[%s13580_s1 + $0x48f] ss:$16 sm:$0xc] %vm13_vm0, %v4744_v20  }
 0x376   :  { %6411 = vst.msk [vmem:[%s13580_s1 + $0x48f] ss:$16 sm:$0x30] %vm13_vm0, %v4744_v20   ;;  %6412 = vst.msk [vmem:[%s13580_s1 + $0x48f] ss:$16 sm:$0xc0] %vm13_vm0, %v4744_v20  }
 0x377   :  { %6405 = vst.msk [vmem:[%s13580_s1 + $0x40f] ss:$16 sm:$0x3] %vm13_vm0, %v4731_v21   ;;  %6406 = vst.msk [vmem:[%s13580_s1 + $0x40f] ss:$16 sm:$0xc] %vm13_vm0, %v4731_v21  }
 0x378   :  { %6407 = vst.msk [vmem:[%s13580_s1 + $0x40f] ss:$16 sm:$0x30] %vm13_vm0, %v4731_v21   ;;  %6408 = vst.msk [vmem:[%s13580_s1 + $0x40f] ss:$16 sm:$0xc0] %vm13_vm0, %v4731_v21  }
 0x379   :  { %6417 = vst.msk [vmem:[%s13580_s1 + $0x58f] ss:$16 sm:$0x3] %vm13_vm0, %v4770_v28   ;;  %6418 = vst.msk [vmem:[%s13580_s1 + $0x58f] ss:$16 sm:$0xc] %vm13_vm0, %v4770_v28  }
 0x37a   :  { %6419 = vst.msk [vmem:[%s13580_s1 + $0x58f] ss:$16 sm:$0x30] %vm13_vm0, %v4770_v28   ;;  %6420 = vst.msk [vmem:[%s13580_s1 + $0x58f] ss:$16 sm:$0xc0] %vm13_vm0, %v4770_v28  }
 0x37b   :  { %6413 = vst.msk [vmem:[%s13580_s1 + $0x50f] ss:$16 sm:$0x3] %vm13_vm0, %v4757_v29   ;;  %6414 = vst.msk [vmem:[%s13580_s1 + $0x50f] ss:$16 sm:$0xc] %vm13_vm0, %v4757_v29  }
 0x37c   :  { %6415 = vst.msk [vmem:[%s13580_s1 + $0x50f] ss:$16 sm:$0x30] %vm13_vm0, %v4757_v29   ;;  %6416 = vst.msk [vmem:[%s13580_s1 + $0x50f] ss:$16 sm:$0xc0] %vm13_vm0, %v4757_v29  }
 0x37d   :  { %6425 = vst.msk [vmem:[%s13580_s1 + $0x68f] ss:$16 sm:$0x3] %vm13_vm0, %v4796_v36   ;;  %6426 = vst.msk [vmem:[%s13580_s1 + $0x68f] ss:$16 sm:$0xc] %vm13_vm0, %v4796_v36  }
 0x37e   :  { %6427 = vst.msk [vmem:[%s13580_s1 + $0x68f] ss:$16 sm:$0x30] %vm13_vm0, %v4796_v36   ;;  %6428 = vst.msk [vmem:[%s13580_s1 + $0x68f] ss:$16 sm:$0xc0] %vm13_vm0, %v4796_v36  }
 0x37f   :  { %6421 = vst.msk [vmem:[%s13580_s1 + $0x60f] ss:$16 sm:$0x3] %vm13_vm0, %v4783_v37   ;;  %6422 = vst.msk [vmem:[%s13580_s1 + $0x60f] ss:$16 sm:$0xc] %vm13_vm0, %v4783_v37  }
 0x380   :  { %6423 = vst.msk [vmem:[%s13580_s1 + $0x60f] ss:$16 sm:$0x30] %vm13_vm0, %v4783_v37   ;;  %6424 = vst.msk [vmem:[%s13580_s1 + $0x60f] ss:$16 sm:$0xc0] %vm13_vm0, %v4783_v37  }
 0x381   :  { %6433 = vst.msk [vmem:[%s13580_s1 + $0x78f] ss:$16 sm:$0x3] %vm13_vm0, %v4822_v44   ;;  %6434 = vst.msk [vmem:[%s13580_s1 + $0x78f] ss:$16 sm:$0xc] %vm13_vm0, %v4822_v44  }
 0x382   :  { %6435 = vst.msk [vmem:[%s13580_s1 + $0x78f] ss:$16 sm:$0x30] %vm13_vm0, %v4822_v44   ;;  %6436 = vst.msk [vmem:[%s13580_s1 + $0x78f] ss:$16 sm:$0xc0] %vm13_vm0, %v4822_v44  }
 0x383   :  { %6429 = vst.msk [vmem:[%s13580_s1 + $0x70f] ss:$16 sm:$0x3] %vm13_vm0, %v4809_v45   ;;  %6430 = vst.msk [vmem:[%s13580_s1 + $0x70f] ss:$16 sm:$0xc] %vm13_vm0, %v4809_v45  }
 0x384   :  { %6431 = vst.msk [vmem:[%s13580_s1 + $0x70f] ss:$16 sm:$0x30] %vm13_vm0, %v4809_v45   ;;  %6432 = vst.msk [vmem:[%s13580_s1 + $0x70f] ss:$16 sm:$0xc0] %vm13_vm0, %v4809_v45  }
 0x385   :  { %6441 = vst.msk [vmem:[%s13580_s1 + $0x88f] ss:$16 sm:$0x3] %vm13_vm0, %v4848_v52   ;;  %6442 = vst.msk [vmem:[%s13580_s1 + $0x88f] ss:$16 sm:$0xc] %vm13_vm0, %v4848_v52  }
 0x386   :  { %6443 = vst.msk [vmem:[%s13580_s1 + $0x88f] ss:$16 sm:$0x30] %vm13_vm0, %v4848_v52   ;;  %6444 = vst.msk [vmem:[%s13580_s1 + $0x88f] ss:$16 sm:$0xc0] %vm13_vm0, %v4848_v52  }
 0x387   :  { %6437 = vst.msk [vmem:[%s13580_s1 + $0x80f] ss:$16 sm:$0x3] %vm13_vm0, %v4835_v53   ;;  %6438 = vst.msk [vmem:[%s13580_s1 + $0x80f] ss:$16 sm:$0xc] %vm13_vm0, %v4835_v53  }
 0x388   :  { %6439 = vst.msk [vmem:[%s13580_s1 + $0x80f] ss:$16 sm:$0x30] %vm13_vm0, %v4835_v53   ;;  %6440 = vst.msk [vmem:[%s13580_s1 + $0x80f] ss:$16 sm:$0xc0] %vm13_vm0, %v4835_v53  }
 0x389   :  { %6449 = vst.msk [vmem:[%s13580_s1 + $0x98f] ss:$16 sm:$0x3] %vm13_vm0, %v4874_v60   ;;  %6450 = vst.msk [vmem:[%s13580_s1 + $0x98f] ss:$16 sm:$0xc] %vm13_vm0, %v4874_v60  }
 0x38a   :  { %6451 = vst.msk [vmem:[%s13580_s1 + $0x98f] ss:$16 sm:$0x30] %vm13_vm0, %v4874_v60   ;;  %6452 = vst.msk [vmem:[%s13580_s1 + $0x98f] ss:$16 sm:$0xc0] %vm13_vm0, %v4874_v60  }
 0x38b   :  { %6445 = vst.msk [vmem:[%s13580_s1 + $0x90f] ss:$16 sm:$0x3] %vm13_vm0, %v4861_v61   ;;  %6446 = vst.msk [vmem:[%s13580_s1 + $0x90f] ss:$16 sm:$0xc] %vm13_vm0, %v4861_v61  }
 0x38c   :  { %6447 = vst.msk [vmem:[%s13580_s1 + $0x90f] ss:$16 sm:$0x30] %vm13_vm0, %v4861_v61   ;;  %6448 = vst.msk [vmem:[%s13580_s1 + $0x90f] ss:$16 sm:$0xc0] %vm13_vm0, %v4861_v61  }
 0x38d   :  { %6457 = vst.msk [vmem:[%s13580_s1 + $0xa8f] ss:$16 sm:$0x3] %vm13_vm0, %v4900_v4   ;;  %6458 = vst.msk [vmem:[%s13580_s1 + $0xa8f] ss:$16 sm:$0xc] %vm13_vm0, %v4900_v4  }
 0x38e   :  { %6459 = vst.msk [vmem:[%s13580_s1 + $0xa8f] ss:$16 sm:$0x30] %vm13_vm0, %v4900_v4   ;;  %6460 = vst.msk [vmem:[%s13580_s1 + $0xa8f] ss:$16 sm:$0xc0] %vm13_vm0, %v4900_v4  }
 0x38f   :  { %6453 = vst.msk [vmem:[%s13580_s1 + $0xa0f] ss:$16 sm:$0x3] %vm13_vm0, %v4887_v5   ;;  %6454 = vst.msk [vmem:[%s13580_s1 + $0xa0f] ss:$16 sm:$0xc] %vm13_vm0, %v4887_v5  }
 0x390   :  { %6455 = vst.msk [vmem:[%s13580_s1 + $0xa0f] ss:$16 sm:$0x30] %vm13_vm0, %v4887_v5   ;;  %6456 = vst.msk [vmem:[%s13580_s1 + $0xa0f] ss:$16 sm:$0xc0] %vm13_vm0, %v4887_v5  }
 0x391   :  { %6465 = vst.msk [vmem:[%s13580_s1 + $0xb8f] ss:$16 sm:$0x3] %vm13_vm0, %v4926_v8   ;;  %6466 = vst.msk [vmem:[%s13580_s1 + $0xb8f] ss:$16 sm:$0xc] %vm13_vm0, %v4926_v8  }
 0x392   :  { %6467 = vst.msk [vmem:[%s13580_s1 + $0xb8f] ss:$16 sm:$0x30] %vm13_vm0, %v4926_v8   ;;  %6468 = vst.msk [vmem:[%s13580_s1 + $0xb8f] ss:$16 sm:$0xc0] %vm13_vm0, %v4926_v8  }
 0x393   :  { %6461 = vst.msk [vmem:[%s13580_s1 + $0xb0f] ss:$16 sm:$0x3] %vm13_vm0, %v4913_v9   ;;  %6462 = vst.msk [vmem:[%s13580_s1 + $0xb0f] ss:$16 sm:$0xc] %vm13_vm0, %v4913_v9  }
 0x394   :  { %6463 = vst.msk [vmem:[%s13580_s1 + $0xb0f] ss:$16 sm:$0x30] %vm13_vm0, %v4913_v9   ;;  %6464 = vst.msk [vmem:[%s13580_s1 + $0xb0f] ss:$16 sm:$0xc0] %vm13_vm0, %v4913_v9  }
 0x395   :  { %4936 = vsyncpa [#allocation1], 1 }

// kernel: _forward.1
= control target key start
LH: loop header
LB: loop body
LE: loop exit
PB: predicated region body
PF: predicated region fallthrough
CT: control target
= control target key end

     0   :  { %v1613_v21 = vmov 1983009808   ;;  %v122_v23 = vlaneseq  ;;  %vm633_vm0 = vcmask 1043456   ;;  %vm1615_vm1 = vmmov 0   ;;  %s1616_s17 = smov 40   ;;  %s1617_s20 = smov 8   ;;  %s1978_s2 = inlined_call_operand.vmem [shape: bf16[1112,128], index: 2, kind: input, shape index: {}]   ;;  %s1979_s0 = inlined_call_operand.vmem [shape: f32[2,768], index: 0, kind: input, shape index: {}]   ;;  %s1980_s1 = inlined_call_operand.vmem [shape: f32[2,128], index: 1, kind: input, shape index: {}]   ;;  %s1981_s3 = inlined_call_operand.vmem [shape: f32[2,128], index: 3, kind: output, shape index: {}]  }
   0x1   :  { %v1530_v0 = vld [vmem:[%s1978_s2 + $0xec] sm:$0xff]   ;;  %v1534_v4 = vld [vmem:[%s1978_s2 + $0xf4] sm:$0xff]   ;;  %v1538_v8 = vld [vmem:[%s1978_s2 + $0xfc] sm:$0xff]   ;;  %v120_v22 = vunpack.c.l.s4 %v1613_v21  ;;  %vm576_vm2 = vcmask 326656   ;;  %vm578_vm3 = vcmask 588800   ;;  %vm629_vm4 = vcmask 719872  }
   0x2   :  { %v1531_v1 = vld [vmem:[%s1978_s2 + $0xac] sm:$0xff]   ;;  %1353 = vmatprep.subr.bf16.mxu0 %v1530_v0  ;;  %v1535_v5 = vld [vmem:[%s1978_s2 + $0xb4] sm:$0xff]   ;;  %v1539_v9 = vld [vmem:[%s1978_s2 + $0xbc] sm:$0xff]   ;;  %v1724_v29 = vshrl.u32 %v122_v23, 7  ;;  %s1619_s26 = smov 16   ;;  %vm686_vm5 = vcmask 130048  }
   0x3   :  { %v1532_v2 = vld [vmem:[%s1978_s2 + $0x16c] sm:$0xff]   ;;  %1354 = vmatpush3.bf16.msra.mxu0 %v1531_v1  ;;  %v1536_v6 = vld [vmem:[%s1978_s2 + $0x174] sm:$0xff]   ;;  %v1540_v10 = vld [vmem:[%s1978_s2 + $0x17c] sm:$0xff]   ;;  %v121_v28 = vunpack.c.0.s8 %v120_v22  ;;  %vm717_vm6 = vcmask 392192   ;;  %s1626_s12 = smov 32   ;;  %s1627_s15 = smov 9  }
   0x4   :  { %v1533_v3 = vld [vmem:[%s1978_s2 + $0x12c] sm:$0xff]   ;;  %1375 = vmatprep.subr.bf16.mxu1 %v1532_v2  ;;  %1355 = vmatprep.subr.bf16.mxu0 %v1534_v4  ;;  %v1537_v7 = vld [vmem:[%s1978_s2 + $0x134] sm:$0xff]   ;;  %v1541_v11 = vld [vmem:[%s1978_s2 + $0x13c] sm:$0xff]  }
   0x5   :  { %1376 = vmatpush3.bf16.msra.mxu1 %v1533_v3  ;;  %v1542_v12 = vld [vmem:[%s1978_s2 + $0x104] sm:$0xff]   ;;  %v1546_v16 = vld [vmem:[%s1978_s2 + $0x10c] sm:$0xff]   ;;  %v1550_v20 = vld [vmem:[%s1978_s2 + $0x114] sm:$0xff]   ;;  %v124_v34 = vsub.s32 %v121_v28, %v1724_v29 }
   0x6   :  { %1377 = vmatprep.subr.bf16.mxu1 %v1536_v6  ;;  %v1543_v13 = vld [vmem:[%s1978_s2 + $0xc4] sm:$0xff]   ;;  %v1547_v17 = vld [vmem:[%s1978_s2 + $0xcc] sm:$0xff]   ;;  %v1551_v24 = vld [vmem:[%s1978_s2 + $0xd4] sm:$0xff]  }
   0x7   :  { %1356 = vmatpush3.bf16.msra.mxu0 %v1535_v5  ;;  %v1544_v14 = vld [vmem:[%s1978_s2 + $0x184] sm:$0xff]   ;;  %v1548_v18 = vld [vmem:[%s1978_s2 + $0x18c] sm:$0xff]   ;;  %v1552_v25 = vld [vmem:[%s1978_s2 + $0x194] sm:$0xff]   ;;  %v1614_v5 = vmov 0.0  }
   0x8   :  { %1357 = vmatprep.subr.bf16.mxu0 %v1538_v8  ;;  %v1545_v15 = vld [vmem:[%s1978_s2 + $0x144] sm:$0xff]   ;;  %v1549_v19 = vld [vmem:[%s1978_s2 + $0x14c] sm:$0xff]   ;;  %v1553_v26 = vld [vmem:[%s1978_s2 + $0x154] sm:$0xff]  }
   0x9   :  { %1378 = vmatpush3.bf16.msra.mxu1 %v1537_v7  ;;  %v1554_v27 = vld [vmem:[%s1978_s2 + $0x11c] sm:$0xff]   ;;  %v1558_v33 = vld [vmem:[%s1978_s2 + $0x124] sm:$0xff]   ;;  %v1562_v41 = vld [vmem:[%s1978_s2 + $0x1ec] sm:$0xff]  }
   0xa   :  { %1379 = vmatprep.subr.bf16.mxu1 %v1540_v10  ;;  %v1555_v30 = vld [vmem:[%s1978_s2 + $0xdc] sm:$0xff]   ;;  %v1559_v35 = vld [vmem:[%s1978_s2 + $0xe4] sm:$0xff]   ;;  %v1564_v47 = vld [vmem:[%s1978_s2 + $0x1ac] sm:$0xff]  }
   0xb   :  { %1358 = vmatpush3.bf16.msra.mxu0 %v1539_v9  ;;  %v1556_v31 = vld [vmem:[%s1978_s2 + $0x19c] sm:$0xff]   ;;  %v1560_v36 = vld [vmem:[%s1978_s2 + $0x1a4] sm:$0xff]   ;;  %v1565_v49 = vld [vmem:[%s1978_s2 + $0x1f4] sm:$0xff]  }
   0xc   :  { %1359 = vmatprep.subr.bf16.mxu0 %v1542_v12  ;;  %v1557_v32 = vld [vmem:[%s1978_s2 + $0x15c] sm:$0xff]   ;;  %v1561_v39 = vld [vmem:[%s1978_s2 + $0x164] sm:$0xff]   ;;  %v1566_v51 = vld [vmem:[%s1978_s2 + $0x1b4] sm:$0xff]  }
   0xd   :  { %1380 = vmatpush3.bf16.msra.mxu1 %v1541_v11  ;;  %v18_v37 = vld [vmem:[%s1979_s0] sm:$0xff]  ;;  %v1571_v56 = vld [vmem:[%s1978_s2 + $0x20c] sm:$0xff]   ;;  %v1269_v57 = vld.sshfl [vmem:[%s1979_s0 + $0x8] sm:$0x33 pattern:$0x76325410] }
   0xe   :  { %1381 = vmatprep.subr.bf16.mxu1 %v1544_v14  ;;  %v125_v38 = vrot.slane %v18_v37, %v124_v34  ;;  %v118_v40 = vcombine.high %v18_v37, %v18_v37  ;;  %v1567_v52 = vld [vmem:[%s1978_s2 + $0x1fc] sm:$0xff]   ;;  %v1569_v54 = vld [vmem:[%s1978_s2 + $0x204] sm:$0xff]   ;;  %v142_v58 = vcombine.high %v1269_v57, %v1269_v57  ;;  %v1572_v59 = vld [vmem:[%s1978_s2 + $0x1cc] sm:$0xff]   ;;  %v153_v3 = vpack.c.bf16 %v1269_v57, %v1269_v57 }
   0xf   :  { %1360 = vmatpush3.bf16.msra.mxu0 %v1543_v13  ;;  %v1568_v53 = vld [vmem:[%s1978_s2 + $0x1bc] sm:$0xff]   ;;  %v1570_v55 = vld [vmem:[%s1978_s2 + $0x1c4] sm:$0xff]   ;;  %v1573_v60 = vld [vmem:[%s1978_s2 + $0x214] sm:$0xff]   ;;  %v157_v11 = vsub.s32 0, %v1724_v29 }
  0x10   :  { %1361 = vmatprep.subr.bf16.mxu0 %v1546_v16  ;;  %v133_v42 = vcombine.high %v125_v38, %v125_v38  ;;  %v132_v43 = vrot.slane %v118_v40, %v124_v34  ;;  %v149_v44 = vpack.c.bf16 %v125_v38, %v125_v38  ;;  %v154_v61 = vpack.c.bf16 %v142_v58, %v142_v58  ;;  %v1574_v62 = vld [vmem:[%s1978_s2 + $0x1d4] sm:$0xff]   ;;  %v1575_v63 = vld [vmem:[%s1978_s2 + $0x21c] sm:$0xff]   ;;  %v1577_v1 = vld [vmem:[%s1978_s2 + $0x224] sm:$0xff]  }
  0x11   :  { %1382 = vmatpush3.bf16.msra.mxu1 %v1545_v15  ;;  %v1576_v0 = vld [vmem:[%s1978_s2 + $0x1dc] sm:$0xff]   ;;  %v1578_v2 = vld [vmem:[%s1978_s2 + $0x1e4] sm:$0xff]   ;;  %v1581_v7 = vld [vmem:[%s1978_s2 + $0x10] sm:$0xff]  }
  0x12   :  { %1383 = vmatprep.subr.bf16.mxu1 %v1548_v18  ;;  %v150_v45 = vpack.c.bf16 %v133_v42, %v133_v42  ;;  %v134_v46 = vcombine.high %v132_v43, %v132_v43  ;;  %v151_v48 = vpack.c.bf16 %v132_v43, %v132_v43  ;;  %v1579_v4 = vld [vmem:[%s1978_s2] sm:$0xff]   ;;  %v1580_v6 = vld [vmem:[%s1978_s2 + $0x8] sm:$0xff]   ;;  %v1582_v8 = vld [vmem:[%s1978_s2 + $0x18] sm:$0xff]  }
  0x13   :  { %1362 = vmatpush3.bf16.msra.mxu0 %v1547_v17  ;;  %v15_v9 = vld [vmem:[%s1978_s2 + $0xa8] sm:$0xf]  ;;  %v1585_v42 = vld [vmem:[%s1978_s2 + $0x2c] sm:$0xff]   ;;  %v1586_v43 = vld [vmem:[%s1978_s2 + $0x34] sm:$0xff]  }
  0x14   :  { %1363 = vmatprep.subr.bf16.mxu0 %v1550_v20  ;;  %479 = vmatprep.mubr.bf16.mxu0 %v150_v45  ;;  %v152_v50 = vpack.c.bf16 %v134_v46, %v134_v46  ;;  %v1823_v10 = vunpack.c.l.bf16 %v15_v9  ;;  %v1587_v46 = vld [vmem:[%s1978_s2 + $0x3c] sm:$0xff]   ;;  %v1588_v58 = vld [vmem:[%s1978_s2 + $0x44] sm:$0xff]  }
  0x15   :  { %1384 = vmatpush3.bf16.msra.mxu1 %v1549_v19 }
  0x16   :  { %1385 = vmatprep.subr.bf16.mxu1 %v1552_v25  ;;  %519 = vmatprep.mubr.bf16.mxu1 %v152_v50  ;;  %v158_v13 = vrot.slane %v1823_v10, %v157_v11 }
  0x17   :  { %1364 = vmatpush3.bf16.msra.mxu0 %v1551_v24 }
  0x18   :  { %1365 = vmatprep.subr.bf16.mxu0 %v1554_v27 }
  0x19   :  { %1386 = vmatpush3.bf16.msra.mxu1 %v1553_v26 }
  0x1a   :  { %1387 = vmatprep.subr.bf16.mxu1 %v1556_v31 }
  0x1b   :  { %1366 = vmatpush3.bf16.msra.mxu0 %v1555_v30  ;;  %v1583_v30 = vld [vmem:[%s1978_s2 + $0x20] sm:$0xff]  }
  0x1c   :  { %1367 = vmatprep.subr.bf16.mxu0 %v1558_v33  ;;  %v1584_v33 = vld [vmem:[%s1978_s2 + $0x28] ss:$0 sps:$4 sm:$0xff]  }
  0x1d   :  { %1388 = vmatpush3.bf16.msra.mxu1 %v1557_v32  ;;  %v635_v34 = vsel %vm633_vm0, %v1584_v33, 0 }
  0x1e   :  { %1389 = vmatprep.subr.bf16.mxu1 %v1560_v36  ;;  %v1843_v36 = vld [vmem:[%s1980_s1] sm:$0x3]  ;;  %s1618_s1 = smov 88  }
  0x1f   :  { %1368 = vmatpush3.bf16.msra.mxu0 %v1559_v35  ;;  %679 = vrot.lane.b32.xlu1 %v1843_v36, %s1618_s1  ;;  %v855_v11 = vand.u32 2147483647, %v1843_v36  ;;  %vm857_vm14 = vcmp.lt.s32.totalorder %v1843_v36, 0 }
  0x20   :  { %1397 = vmatprep.subr.bf16.mxu0 %v1562_v41 }
  0x21   :  { %1390 = vmatpush3.bf16.msra.mxu1 %v1561_v39  ;;  %vm856_vm15 = vcmp.le.f32.partialorder %v855_v11, 0.7853982 }
  0x22   :  { %480 = vmatmul.mubr.bf16.vlgmr.msra.gmra.mrb[0].mxu0 %v149_v44  ;;  %1446 = vmatprep.subr.bf16.mxu1 %v1614_v5  ;;  %v594_v44 = vsub.s32 1, %v1724_v29 }
  0x23   :  { %1398 = vmatpush3.bf16.msra.mxu0 %v1564_v47  ;;  %559 = vmatprep.mubr.bf16.mxu0 %v154_v61  ;;  %v858_v61 = vand.u32 2139095040, %v1843_v36 }
  0x24   :  { %520 = vmatmul.mubr.bf16.vlgmr.msra.gmra.mrb[0].mxu1 %v151_v48  ;;  %1399 = vmatprep.subr.bf16.mxu0 %v1565_v49  ;;  %v595_v45 = vrot.slane %v1823_v10, %v594_v44 }
  0x25   :  { %1447 = vmatpush3.bf16.msra.mxu1 %v1579_v4  ;;  %1458 = vmatprep.mubr.msk.bf16.mxu1 %vm1615_vm1, %v1614_v5 }
  0x26   :  { %1448 = vmatprep.subr.bf16.mxu1 %v1614_v5 }
  0x27   :  { %1400 = vmatpush3.bf16.msra.mxu0 %v1566_v51 }
  0x28   :  { %1401 = vmatprep.subr.bf16.mxu0 %v1567_v52 }
  0x29   :  { %1449 = vmatpush3.bf16.msra.mxu1 %v1580_v6 }
  0x2a   :  { %1450 = vmatprep.subr.bf16.mxu1 %v1614_v5 }
  0x2b   :  { %1402 = vmatpush3.bf16.msra.mxu0 %v1568_v53 }
  0x2c   :  { %1403 = vmatprep.subr.bf16.mxu0 %v1569_v54 }
  0x2d   :  { %1451 = vmatpush3.bf16.msra.mxu1 %v1581_v7 }
  0x2e   :  { %1452 = vmatprep.subr.bf16.mxu1 %v1614_v5 }
  0x2f   :  { %1404 = vmatpush3.bf16.msra.mxu0 %v1570_v55 }
  0x30   :  { %1405 = vmatprep.subr.bf16.mxu0 %v1571_v56 }
  0x31   :  { %1453 = vmatpush3.bf16.msra.mxu1 %v1582_v8 }
  0x32   :  { %1454 = vmatprep.subr.bf16.mxu1 %v1614_v5 }
  0x33   :  { %1406 = vmatpush3.bf16.msra.mxu0 %v1572_v59  ;;  %v1589_v59 = vld [vmem:[%s1978_s2 + $0x4c] sm:$0xff]  }
  0x34   :  { %1407 = vmatprep.subr.bf16.mxu0 %v1573_v60  ;;  %v1590_v60 = vld [vmem:[%s1978_s2 + $0x54] sm:$0xff]  }
  0x35   :  { %1455 = vmatpush3.bf16.msra.mxu1 %v1583_v30 }
  0x36   :  { %1456 = vmatprep.subr.bf16.mxu1 %v1614_v5 }
  0x37   :  { %1408 = vmatpush3.bf16.msra.mxu0 %v1574_v62  ;;  %v859_v62 = vshrl.u32 %v858_v61, 23 }
  0x38   :  { %1409 = vmatprep.subr.bf16.mxu0 %v1575_v63  ;;  %v697_v63 = vsub.s32 2, %v1724_v29 }
  0x39   :  { %1457 = vmatpush3.bf16.msra.mxu1 %v635_v34  ;;  %v1593_v34 = vld [vmem:[%s1978_s2 + $0x6c] sm:$0xff]  }
  0x3a   :  { %1462 = vmatprep.subr.bf16.mxu1 %v1614_v5 }
  0x3b   :  { %1410 = vmatpush3.bf16.msra.mxu0 %v1576_v0  ;;  %v1334_v0 = vadd.s32 4294967169, %v859_v62 }
  0x3c   :  { %1411 = vmatprep.subr.bf16.mxu0 %v1577_v1  ;;  %v698_v1 = vrot.slane %v1823_v10, %v697_v63 }
  0x3d   :  { %v865_v4 = vadd.s32 1, %v1334_v0 }
  0x3f   :  { %1412 = vmatpush3.bf16.msra.mxu0 %v1578_v2  ;;  %vm866_vm7 = vcmp.gt.s32.totalorder %v865_v4, 0 }
  0x40   :  { %1472 = vmatprep.subr.bf16.mxu0 %v1614_v5 }
  0x42   :  { %560 = vmatmul.mubr.bf16.vlgmr.msra.gmra.mrb[4].mxu0 %v153_v3  ;;  %v1591_v3 = vld [vmem:[%s1978_s2 + $0x5c] sm:$0xff]  }
  0x43   :  { %1480 = vmatprep.mubr.msk.bf16.mxu0 %vm1615_vm1, %v1614_v5  ;;  %1473 = vmatpush3.bf16.msra.mxu0 %v1588_v58 }
  0x44   :  { %1474 = vmatprep.subr.bf16.mxu0 %v1614_v5 }
  0x47   :  { %1475 = vmatpush3.bf16.msra.mxu0 %v1589_v59 }
  0x48   :  { %1476 = vmatprep.subr.bf16.mxu0 %v1614_v5 }
  0x4b   :  { %1477 = vmatpush3.bf16.msra.mxu0 %v1590_v60 }
  0x4c   :  { %1478 = vmatprep.subr.bf16.mxu0 %v1614_v5 }
  0x4f   :  { %1479 = vmatpush3.bf16.msra.mxu0 %v1591_v3 }
  0x50   :  { %1498 = vmatprep.subr.bf16.mxu0 %v1614_v5 }
  0x91   :  { %v680_v54 = vpop.permute.xlu1 %679 }
  0xf5   :  { %v1369_v12 = vpop.f32.mrb[0].mxu0 }
  0xf6   :  { %v1370_v14 = vpop.f32.mrb[1].mxu0 }
  0xf7   :  { %v1371_v15 = vadd.f32 %v1370_v14, %v1369_v12  ;;  %v1372_v16 = vpop.f32.mrb[2].mxu0  ;;  %v1391_v17 = vpop.f32.mrb[0].mxu1  ;;  %v867_v12 = vsel %vm866_vm7, %v865_v4, 0 }
  0xf8   :  { %v1373_v18 = vpop.f32.mrb[3].mxu0  ;;  %v1392_v19 = vpop.f32.mrb[1].mxu1  ;;  %v869_v14 = vand.u32 31, %v867_v12 }
  0xf9   :  { %v482_v20 = vadd.f32 %v1371_v15, %v158_v13  ;;  %v1393_v21 = vadd.f32 %v1392_v19, %v1391_v17  ;;  %v1394_v22 = vpop.f32.mrb[2].mxu1  ;;  %v862_v13 = vand.u32 8388607, %v855_v11  ;;  %v868_v15 = vshrl.u32 %v867_v12, 5 }
  0xfa   :  { %v1395_v23 = vpop.f32.mrb[3].mxu1  ;;  %v870_v16 = vsub.s32 32, %v869_v14  ;;  %v1620_v17 = vmov 683565275   ;;  %v1621_v19 = vmov 2475754826  }
  0xfb   :  { %v522_v24 = vadd.f32 %v1393_v21, %v482_v20  ;;  %v872_v18 = vshll.u32 %v1620_v17, %v869_v14  ;;  %v875_v20 = vshll.u32 %v1621_v19, %v869_v14  ;;  %v1592_v21 = vld [vmem:[%s1978_s2 + $0x64] sm:$0xff]   ;;  %v863_v22 = vor.u32 8388608, %v862_v13 }
  0xfc   :  { %v1622_v23 = vmov 2131351028   ;;  %v871_v30 = vshrl.u32 %v1620_v17, %v870_v16  ;;  %vm887_vm8 = vcmp.lt.s32.totalorder %v868_v15, 1  ;;  %vm888_vm9 = vcmp.lt.s32.totalorder %v868_v15, 2 }
  0xfd   :  { %vm890_vm10 = vcmp.lt.s32.totalorder %v868_v15, 4  ;;  %vm889_vm11 = vcmp.lt.s32.totalorder %v868_v15, 3 }
 0x115   :  { %v1413_v25 = vpop.f32.mrb[4].mxu0 }
 0x116   :  { %v1414_v26 = vpop.f32.mrb[5].mxu0 }
 0x117   :  { %v1415_v27 = vadd.f32 %v1414_v26, %v1413_v25  ;;  %v1416_v28 = vpop.f32.mrb[6].mxu0  ;;  %v1623_v25 = vmov 2102212464  }
 0x118   :  { %v1417_v31 = vpop.f32.mrb[7].mxu0  ;;  %v881_v26 = vshll.u32 %v1623_v25, %v869_v14  ;;  %v879_v33 = vshrl.u32 %v1623_v25, %v870_v16 }
 0x119   :  { %v562_v32 = vadd.f32 %v1415_v27, %v522_v24  ;;  %v878_v24 = vshll.u32 %v1622_v23, %v869_v14  ;;  %v1624_v27 = vmov 920167782   ;;  %v873_v31 = vshrl.u32 %v1621_v19, %v870_v16 }
 0x11a   :  { %v884_v28 = vshll.u32 %v1624_v27, %v869_v14 }
 0x11b   :  { %1601 = vtanh.f32 %v562_v32  ;;  %v876_v32 = vshrl.u32 %v1622_v23, %v870_v16 }
 0x125   :  { %v1602_v35 = vpop.eup %1601 }
 0x126   :  { %569 = vrot.lane.b32.xlu0 %v1602_v35, %s1616_s17  ;;  %v882_v35 = vshrl.u32 %v1624_v27, %v870_v16 }
 0x12a   :  { %573 = vrot.lane.b32.xlu0 %v1843_v36, %s1617_s20 }
 0x198   :  { %v570_v37 = vpop.permute.xlu0 %569 }
 0x199   :  { %v577_v38 = vsel %vm576_vm2, %v1843_v36, %v570_v37  ;;  %v1625_v37 = vmov 1326507024  }
 0x19c   :  { %v574_v39 = vpop.permute.xlu0 %573 }
 0x19d   :  { %v579_v40 = vsel %vm578_vm3, %v577_v38, %v574_v39  ;;  %v885_v38 = vshrl.u32 %v1625_v37, %v870_v16 }
 0x19e   :  { %v591_v41 = vpack.c.bf16 %v579_v40, %v579_v40  ;;  %v874_v40 = vor.u32 %v873_v31, %v872_v18 }
 0x19f   :  { %v886_v44 = vor.u32 %v885_v38, %v884_v28 }
 0x1a0   :  { %1459 = vmatmul.mubr.msk.bf16.vlgmr.msra.gmra.mrb[4].mxu1 %vm629_vm4, %v591_v41  ;;  %v877_v41 = vor.u32 %v876_v32, %v875_v20 }
 0x1a1   :  { %1468 = vmatprep.mubr.msk.bf16.mxu1 %vm1615_vm1, %v1614_v5  ;;  %1463 = vmatpush3.bf16.msra.mxu1 %v1585_v42  ;;  %v880_v42 = vor.u32 %v879_v33, %v878_v24 }
 0x1a2   :  { %1464 = vmatprep.subr.bf16.mxu1 %v1614_v5 }
 0x1a5   :  { %1465 = vmatpush3.bf16.msra.mxu1 %v1586_v43  ;;  %v883_v43 = vor.u32 %v882_v35, %v881_v26 }
 0x1a6   :  { %1466 = vmatprep.subr.bf16.mxu1 %v1614_v5 }
 0x1a9   :  { %1467 = vmatpush3.bf16.msra.mxu1 %v1587_v46  ;;  %v891_v46 = vsel %vm887_vm8, %v871_v30, %v874_v40 }
 0x1aa   :  { %1484 = vmatprep.subr.bf16.mxu1 %v1614_v5 }
 0x273   :  { %v671_v47 = vpop.f32.mrb[4].mxu1 }
 0x274   :  { %v672_v48 = vadd.f32 %v671_v47, %v595_v45  ;;  %v1460_v49 = vpop.f32.mrb[5].mxu1  ;;  %v903_v45 = vshll.u32 %v863_v22, 8  ;;  %v892_v47 = vsel %vm890_vm10, %v880_v42, 2102212464 }
 0x275   :  { %v674_v50 = vpop.f32.mrb[6].mxu1  ;;  %v899_v49 = vsel %vm887_vm8, %v877_v41, %v880_v42 }
 0x276   :  { %1603 = vtanh.f32 %v672_v48  ;;  %v1461_v51 = vpop.f32.mrb[7].mxu1  ;;  %v678_v53 = vmax.f32 %v672_v48, 0.0  ;;  %v895_v48 = vsel %vm887_vm8, %v874_v40, %v877_v41  ;;  %v1594_v50 = vld [vmem:[%s1978_s2 + $0x74] sm:$0xff]  }
 0x277   :  { %v893_v51 = vsel %vm889_vm11, %v877_v41, %v892_v47 }
 0x280   :  { %v1866_v52 = vpop.eup %1603 }
 0x281   :  { %683 = vrot.lane.b32.xlu1 %v1866_v52, %s1619_s26 }
 0x285   :  { %767 = vrot.lane.b32.xlu1 %v678_v53, %s1619_s26  ;;  %v896_v53 = vsel %vm890_vm10, %v883_v43, 920167782 }
 0x2f3   :  { %v684_v55 = vpop.permute.xlu1 %683 }
 0x2f4   :  { %v687_v56 = vsel %vm686_vm5, %v680_v54, %v684_v55  ;;  %v900_v54 = vsel %vm890_vm10, %v886_v44, 1326507024  ;;  %v897_v55 = vsel %vm889_vm11, %v880_v42, %v896_v53  ;;  %vm947_vm10 = vweird.f32 %v1843_v36 }
 0x2f5   :  { %v694_v57 = vpack.c.bf16 %v687_v56, %v687_v56  ;;  %v901_v56 = vsel %vm889_vm11, %v883_v43, %v900_v54  ;;  %v898_v58 = vsel %vm888_vm9, %v895_v48, %v897_v55  ;;  %vm770_vm11 = vcmask 261120  }
 0x2f6   :  { %v902_v59 = vsel %vm888_vm9, %v899_v49, %v901_v56  ;;  %v1918_v62 = vmul.u32.u64.low %v903_v45, %v898_v58  ;;  %v1919_v63 = vmul.u32.u64.high %v903_v45, %v898_v58, %v1918_v62  ;;  %v1595_v56 = vld [vmem:[%s1978_s2 + $0x7c] sm:$0xff]  }
 0x2f7   :  { %1469 = vmatmul.mubr.msk.bf16.vlgmr.msra.gmra.mrb[8].mxu1 %vm717_vm6, %v694_v57  ;;  %v894_v57 = vsel %vm888_vm9, %v891_v46, %v893_v51  ;;  %v1915_v60 = vmul.u32.u64.low %v903_v45, %v902_v59  ;;  %v1916_v61 = vmul.u32.u64.high %v903_v45, %v902_v59, %v1915_v60  ;;  %v768_v53 = vpop.permute.xlu1 %767  ;;  %v784_v59 = vsub.s32 3, %v1724_v29 }
 0x2f8   :  { %1494 = vmatprep.mubr.msk.bf16.mxu1 %vm1615_vm1, %v1614_v5  ;;  %1485 = vmatpush3.bf16.msra.mxu1 %v1592_v21  ;;  %v910_v0 = vmul.u32 %v903_v45, %v894_v57  ;;  %v1596_v57 = vld [vmem:[%s1978_s2 + $0x84] ss:$0 sps:$4 sm:$0xff]  }
 0x2f9   :  { %1486 = vmatprep.subr.bf16.mxu1 %v1614_v5  ;;  %vm912_vm12 = vc.u32 %v1916_v61, %v1918_v62  ;;  %v911_v15 = vadd.s32 %v1918_v62, %v1916_v61  ;;  %v1120_v58 = vsel %vm633_vm0, %v1596_v57, 0  ;;  %v785_v60 = vrot.slane %v1823_v10, %v784_v59 }
 0x2fa   :  { %vm1258_vm0 = vcmask 48128  }
 0x2fc   :  { %1487 = vmatpush3.bf16.msra.mxu1 %v1593_v34 }
 0x2fd   :  { %1488 = vmatprep.subr.bf16.mxu1 %v1614_v5 }
 0x300   :  { %1489 = vmatpush3.bf16.msra.mxu1 %v1594_v50 }
 0x301   :  { %1490 = vmatprep.subr.bf16.mxu1 %v1614_v5 }
 0x304   :  { %1491 = vmatpush3.bf16.msra.mxu1 %v1595_v56 }
 0x305   :  { %1492 = vmatprep.subr.bf16.mxu1 %v1614_v5 }
 0x308   :  { %1493 = vmatpush3.bf16.msra.mxu1 %v1120_v58 }
 0x3ca   :  { %v755_v2 = vpop.f32.mrb[8].mxu1 }
 0x3cb   :  { %v756_v6 = vadd.f32 %v755_v2, %v698_v1  ;;  %v1470_v7 = vpop.f32.mrb[9].mxu1  ;;  %v913_v1 = vadd.s32 1, %v1919_v63 }
 0x3cc   :  { %v758_v8 = vpop.f32.mrb[10].mxu1 }
 0x3cd   :  { %1605 = vtanh.f32 %v756_v6  ;;  %v1471_v9 = vpop.f32.mrb[11].mxu1  ;;  %v914_v2 = vsel %vm912_vm12, %v913_v1, %v1919_v63  ;;  %vm810_vm12 = vcmask 523264  }
 0x3ce   :  { %v915_v3 = vadd.s32 %v914_v2, %v910_v0 }
 0x3d0   :  { %v916_v4 = vadd.s32 536870912, %v915_v3 }
 0x3d2   :  { %v917_v6 = vshrl.u32 %v916_v4, 30 }
 0x3d4   :  { %v918_v7 = vshll.u32 %v917_v6, 30  ;;  %v941_v27 = vsub.s32 4, %v917_v6 }
 0x3d6   :  { %v919_v8 = vsub.s32 %v915_v3, %v918_v7  ;;  %v942_v31 = vsel %vm857_vm14, %v941_v27, %v917_v6 }
 0x3d7   :  { %v1901_v39 = vpop.eup %1605  ;;  %v944_v34 = vsel %vm856_vm15, 0, %v942_v31 }
 0x3d8   :  { %763 = vrot.lane.b32.xlu0 %v1901_v39, %s1626_s12  ;;  %v921_v9 = vsub.s32 0, %v919_v8  ;;  %v1051_v35 = vadd.s32 3, %v944_v34  ;;  %v948_v37 = vand.u32 3, %v944_v34 }
 0x3da   :  { %v1335_v12 = vmin.u32 %v921_v9, %v919_v8  ;;  %v1052_v38 = vand.u32 3, %v1051_v35  ;;  %vm953_vm2 = vcmp.eq.s32.totalorder %v948_v37, 2  ;;  %vm950_vm5 = vcmp.eq.s32.totalorder %v948_v37, 0 }
 0x3db   :  { %vm949_vm8 = vcmp.lt.s32.totalorder %v948_v37, 2 }
 0x3dc   :  { %v923_v13 = vclz %v1335_v12  ;;  %vm1057_vm4 = vcmp.eq.s32.totalorder %v1052_v38, 2  ;;  %vm1054_vm7 = vcmp.eq.s32.totalorder %v1052_v38, 0  ;;  %vm1053_vm9 = vcmp.lt.s32.totalorder %v1052_v38, 2  ;;  %v1597_v12 = vld [vmem:[%s1978_s2 + $0x88] sm:$0xff]  }
 0x3de   :  { %v1336_v14 = vadd.s32 4294967294, %v923_v13  ;;  %v1598_v13 = vld [vmem:[%s1978_s2 + $0x90] sm:$0xff]  }
 0x3e0   :  { %vm1337_vm13 = vcmp.lt.s32.totalorder %v1336_v14, 0 }
 0x3e1   :  { %v926_v16 = vsel %vm1337_vm13, 0, %v1336_v14  ;;  %v1599_v14 = vld [vmem:[%s1978_s2 + $0x98] sm:$0xff]  }
 0x3e2   :  { %v927_v17 = vsub.s32 32, %v926_v16  ;;  %v928_v18 = vshll.u32 %v919_v8, %v926_v16  ;;  %v931_v19 = vsub.s32 4294967266, %v926_v16  ;;  %v1087_v16 = vsub.s32 4, %v1724_v29 }
 0x3e4   :  { %v929_v20 = vshrl.u32 %v911_v15, %v927_v17  ;;  %v932_v21 = vadd.s32 127, %v931_v19  ;;  %v1600_v15 = vld [vmem:[%s1978_s2 + $0xa0] sm:$0xff]   ;;  %v1088_v17 = vrot.slane %v1823_v10, %v1087_v16  ;;  %s1628_s2 = smov 64  }
 0x3e6   :  { %v930_v22 = vor.u32 %v929_v20, %v928_v18  ;;  %v933_v23 = vshll.u32 %v932_v21, 23 }
 0x3e8   :  { %v934_v24 = vor.u32 4788187, %v933_v23  ;;  %v937_v25 = vcvt.s32.f32 %v930_v22 }
 0x3ea   :  { %v935_v26 = vand.u32 2147483647, %v934_v24 }
 0x3ec   :  { %v938_v28 = vmul.f32 %v937_v25, %v935_v26 }
 0x3ee   :  { %v939_v30 = vxor.u32 2147483648, %v938_v28 }
 0x3f0   :  { %v940_v32 = vsel %vm857_vm14, %v939_v30, %v938_v28 }
 0x3f1   :  { %v943_v33 = vsel %vm856_vm15, %v1843_v36, %v940_v32 }
 0x3f2   :  { %1607 = vcosq.f32 %v943_v33 }
 0x3f3   :  { %1609 = vsinq.f32 %v943_v33 }
 0x3fc   :  { %v1608_v40 = vpop.eup %1607 }
 0x3fd   :  { %v1610_v41 = vpop.eup %1609  ;;  %v954_v42 = vxor.u32 2147483648, %v1608_v40 }
 0x3fe   :  { %v951_v11 = vxor.u32 2147483648, %v1610_v41 }
 0x3ff   :  { %v955_v43 = vsel %vm953_vm2, %v954_v42, %v1610_v41  ;;  %v1059_v44 = vsel %vm1057_vm4, %v954_v42, %v1610_v41 }
 0x400   :  { %v952_v45 = vsel %vm950_vm5, %v1608_v40, %v951_v11  ;;  %v1056_v46 = vsel %vm1054_vm7, %v1608_v40, %v951_v11 }
 0x401   :  { %v956_v47 = vsel %vm949_vm8, %v952_v45, %v955_v43  ;;  %v1060_v48 = vsel %vm1053_vm9, %v1056_v46, %v1059_v44 }
 0x402   :  { %v957_v49 = vsel %vm947_vm10, nan, %v956_v47  ;;  %v1061_v50 = vsel %vm947_vm10, nan, %v1060_v48 }
 0x403   :  { %1063 = vrot.lane.b32.xlu0 %v957_v49, %s1617_s20  ;;  %1067 = vrot.lane.b32.xlu1 %v1061_v50, %s1627_s15 }
 0x44a   :  { %v764_v51 = vpop.permute.xlu0 %763 }
 0x44b   :  { %v771_v54 = vsel %vm770_vm11, %v1866_v52, %v764_v51 }
 0x44c   :  { %v772_v36 = vsel %vm717_vm6, %v771_v54, %v768_v53  ;;  %vm1073_vm6 = vcmask 539648  }
 0x44d   :  { %v781_v55 = vpack.c.bf16 %v772_v36, %v772_v36 }
 0x44f   :  { %1481 = vmatmul.mubr.msk.bf16.vlgmr.msra.gmra.mrb[8].mxu0 %vm810_vm12, %v781_v55 }
 0x450   :  { %1506 = vmatprep.mubr.msk.bf16.mxu0 %vm1615_vm1, %v1614_v5  ;;  %vm1071_vm1 = vcmask 531456   ;;  %1499 = vmatpush3.bf16.msra.mxu0 %v1597_v12 }
 0x451   :  { %1500 = vmatprep.subr.bf16.mxu0 %v1614_v5 }
 0x454   :  { %1501 = vmatpush3.bf16.msra.mxu0 %v1598_v13 }
 0x455   :  { %1502 = vmatprep.subr.bf16.mxu0 %v1614_v5 }
 0x458   :  { %1503 = vmatpush3.bf16.msra.mxu0 %v1599_v14 }
 0x459   :  { %1504 = vmatprep.subr.bf16.mxu0 %v1614_v5  ;;  %v1174_v5 = vsub.s32 5, %v1724_v29 }
 0x45b   :  { %v1175_v25 = vrot.slane %v1823_v10, %v1174_v5 }
 0x45c   :  { %1505 = vmatpush3.bf16.msra.mxu0 %v1600_v15 }
 0x475   :  { %v1064_v1 = vpop.permute.xlu0 %1063  ;;  %v1068_v4 = vpop.permute.xlu1 %1067 }
 0x522   :  { %v848_v61 = vpop.f32.mrb[8].mxu0 }
 0x523   :  { %v849_v62 = vadd.f32 %v848_v61, %v785_v60  ;;  %v1482_v63 = vpop.f32.mrb[9].mxu0 }
 0x524   :  { %v851_v0 = vpop.f32.mrb[10].mxu0 }
 0x525   :  { %v854_v2 = vmax.f32 %v849_v62, 0.0  ;;  %v1483_v3 = vpop.f32.mrb[11].mxu0 }
 0x527   :  { %v1070_v6 = vsel %vm810_vm12, %v854_v2, %v1064_v1 }
 0x528   :  { %v1072_v7 = vsel %vm1071_vm1, %v1070_v6, %v1068_v4 }
 0x529   :  { %v1074_v8 = vsel %vm1073_vm6, %v1072_v7, 0.0 }
 0x52a   :  { %v1084_v9 = vpack.c.bf16 %v1074_v8, %v1074_v8 }
 0x52c   :  { %1495 = vmatmul.mubr.msk.bf16.vlgmr.msra.gmra.mrb[12].mxu1 %vm578_vm3, %v1084_v9  ;;  %vm1262_vm3 = vcmask 654336  }
 0x5ff   :  { %v1156_v18 = vpop.f32.mrb[12].mxu1 }
 0x600   :  { %v1157_v19 = vadd.f32 %v1156_v18, %v1088_v17  ;;  %v1496_v20 = vpop.f32.mrb[13].mxu1 }
 0x601   :  { %v1159_v21 = vpop.f32.mrb[14].mxu1 }
 0x602   :  { %1611 = vtanh.f32 %v1157_v19  ;;  %v1497_v22 = vpop.f32.mrb[15].mxu1 }
 0x60c   :  { %v1612_v23 = vpop.eup %1611 }
 0x60d   :  { %v1171_v24 = vpack.c.bf16 %v1612_v23, %v1612_v23 }
 0x60f   :  { %1507 = vmatmul.mubr.msk.bf16.vlgmr.msra.gmra.mrb[12].mxu0 %vm810_vm12, %v1171_v24 }
 0x6e2   :  { %v1237_v26 = vpop.f32.mrb[12].mxu0 }
 0x6e3   :  { %v1238_v27 = vadd.f32 %v1237_v26, %v1175_v25  ;;  %v1508_v28 = vpop.f32.mrb[13].mxu0 }
 0x6e4   :  { %v1240_v30 = vpop.f32.mrb[14].mxu0 }
 0x6e5   :  { %1244 = vrot.lane.b32.xlu0 %v1238_v27, %s1628_s2  ;;  %v1509_v31 = vpop.f32.mrb[15].mxu0 }
 0x6e9   :  { %1252 = vrot.lane.b32.xlu0 %v1866_v52, %s1626_s12 }
 0x757   :  { %v1245_v32 = vpop.permute.xlu0 %1244 }
 0x758   :  { %v1247_v33 = vadd.f32 %v1245_v32, %v849_v62 }
 0x75a   :  { %1249 = vrot.lane.b32.xlu1 %v1247_v33, %s1628_s2 }
 0x75b   :  { %v1253_v35 = vpop.permute.xlu0 %1252 }
 0x75e   :  { %1255 = vrot.lane.b32.xlu1 %v1901_v39, %s1628_s2 }
 0x7cc   :  { %v1250_v34 = vpop.permute.xlu1 %1249 }
 0x7cd   :  { %v1259_v29 = vsel %vm1258_vm0, %v1250_v34, 0.0 }
 0x7ce   :  { %v1260_v10 = vsel %vm770_vm11, %v1259_v29, %v1253_v35 }
 0x7d0   :  { %v1256_v37 = vpop.permute.xlu1 %1255 }
 0x7d1   :  { %v1261_v38 = vsel %vm810_vm12, %v1260_v10, %v1256_v37 }
 0x7d2   :  { %v1263_v40 = vsel %vm1262_vm3, %v1261_v38, 0.0 }
 0x7d3   :  { %1264 = vst [vmem:[%s1981_s3] sm:$0x3] %v1263_v40 }

</bundles_post_ra>
